<compile_context>
chip_gen: v7x
topology: tpu7x:2x2x1
jax: 0.10.0
libtpu: 0.0.40
codegen_flags: <defaults>
</compile_context>

<pallas_src>
import functools
import math

import jax
import jax.numpy as jnp
from jax.experimental import pallas as pl
from jax.experimental.pallas import tpu as pltpu


MATMUL_DTYPE = jnp.bfloat16   # MXU operand dtype (accumulation stays f32)
ACT_DTYPE = jnp.bfloat16      # activation stream between fused sub-blocks
PARAM_DTYPE = jnp.bfloat16    # weights / biases / LN params / PE table in HBM
LN_EPS = 1e-5


# --------------------------------------------------------------------------
# Small helpers
# --------------------------------------------------------------------------

@functools.lru_cache(maxsize=None)
def _vmem_limit_bytes():
    """Generation-aware scoped-VMEM limit (~75% of physical); None -> compiler default."""
    try:
        cap = int(pltpu.get_tpu_info().vmem_capacity_bytes)
        return int(cap * 0.75)
    except Exception:
        return None


def _compiler_params(semantics):
    return pltpu.CompilerParams(dimension_semantics=semantics,
                                vmem_limit_bytes=_vmem_limit_bytes())


def _const_spec(shape):
    """BlockSpec for operands whose block index never changes across the grid.

    Single-buffered via pipeline_mode=pl.Buffered(1): halves resident VMEM for
    weights / biases / LN params compared to the default double buffer.
    """
    idx = lambda *_: (0,) * len(shape)
    try:
        return pl.BlockSpec(shape, idx, pipeline_mode=pl.Buffered(1))
    except (TypeError, AttributeError):   # older jax: fall back to default buffering
        return pl.BlockSpec(shape, idx)


def _pick_row_tile(n):
    # Largest power-of-two tile (multiple of 8) dividing the (padded) row count.
    cap = 512 if (_vmem_limit_bytes() or 0) < (64 << 20) else 1024
    t = cap
    while t >= 8:
        if n >= t and n % t == 0:
            return t
        t //= 2
    return n


def _pick_q_tile(s):
    for t in (256, 128, 64, 32, 16, 8):
        if s >= t and s % t == 0:
            return t
    return s


def _pick_f_tile(f):
    # Prefer lane-dense (multiple-of-128) F tiles; otherwise keep F resident.
    for t in (1024, 512, 256, 128):
        if f >= t and f % t == 0:
            return t
    return f


def _pad_rows(x2d, multiple=8):
    n = x2d.shape[0]
    pad = (-n) % multiple
    if pad:
        x2d = jnp.pad(x2d, ((0, pad), (0, 0)))
    return x2d


def _mm(a, w):
    """bf16-operand matmul with f32 accumulation (weights already stored bf16)."""
    return jnp.dot(a.astype(MATMUL_DTYPE), w.astype(MATMUL_DTYPE),
                   preferred_element_type=jnp.float32)


def _layernorm_f32(x, g, b, eps):
    mu = jnp.mean(x, axis=-1, keepdims=True)
    xc = x - mu
    var = jnp.mean(xc * xc, axis=-1, keepdims=True)
    return xc * jax.lax.rsqrt(var + eps) * g.astype(jnp.float32) + b.astype(jnp.float32)


# --------------------------------------------------------------------------
# Fused kernels
# --------------------------------------------------------------------------

def _input_proj_kernel(x_ref, w_ref, b_ref, pe_ref, o_ref, *, pe_scale):
    # x: (S, Din)  w: (Din, D)  b: (1, D)  pe: (S, D)
    acc = _mm(x_ref[...], w_ref[...]) + b_ref[...]
    o_ref[...] = (acc + pe_ref[...].astype(jnp.float32) * pe_scale).astype(o_ref.dtype)


def _attn_qtile_core(x, xn, wq, bq, wo, bo, k_sc, v_sc, o_ref,
                     *, nhead, scale, causal, q_start):
    """One query tile of multi-head attention; K/V already in (H, Skv, Dh) scratch."""
    TQ, D = x.shape
    Dh = D // nhead
    Skv = k_sc.shape[1]

    # Scale folded into q (D-sized work) instead of the (H, TQ, Skv) score tensor.
    q = (_mm(xn, wq) + bq) * scale                       # (TQ, D) f32
    qh = q.reshape(TQ, nhead, Dh).transpose(1, 0, 2)     # (H, TQ, Dh) small per-tile relayout

    s = jnp.einsum("hqd,hkd->hqk", qh.astype(MATMUL_DTYPE), k_sc[...],
                   preferred_element_type=jnp.float32)   # (H, TQ, Skv)
    if causal:
        row = q_start + jax.lax.broadcasted_iota(jnp.int32, (TQ, Skv), 0)
        col = jax.lax.broadcasted_iota(jnp.int32, (TQ, Skv), 1)
        s = jnp.where((col <= row)[None, :, :], s, jnp.float32(-1e30))

    m = jnp.max(s, axis=-1, keepdims=True)
    p = jnp.exp(s - m)
    p = p * pl.reciprocal(jnp.sum(p, axis=-1, keepdims=True), approx=True)

    av = jnp.einsum("hqk,hkd->hqd", p.astype(MATMUL_DTYPE), v_sc[...],
                    preferred_element_type=jnp.float32)  # (H, TQ, Dh)
    attn = av.transpose(1, 0, 2).reshape(TQ, D)
    out = _mm(attn, wo) + bo
    o_ref[...] = (x + out).astype(o_ref.dtype)           # residual fused, stored bf16


def _self_attn_block_kernel(xf_ref, xq_ref, g_ref, b_ref,
                            wq_ref, bq_ref, wk_ref, bk_ref, wv_ref, bv_ref,
                            wo_ref, bo_ref, o_ref, k_sc, v_sc,
                            *, nhead, eps, scale):
    qi = pl.program_id(1)
    Skv = k_sc.shape[1]
    Dh = k_sc.shape[2]

    @pl.when(qi == 0)
    def _():
        # K/V projected once per batch from LN(full x), stored transposed + bf16.
        xn_all = _layernorm_f32(xf_ref[...].astype(jnp.float32),
                                g_ref[...], b_ref[...], eps)
        k = _mm(xn_all, wk_ref[...]) + bk_ref[...]
        v = _mm(xn_all, wv_ref[...]) + bv_ref[...]
        k_sc[...] = k.reshape(Skv, nhead, Dh).transpose(1, 0, 2).astype(MATMUL_DTYPE)
        v_sc[...] = v.reshape(Skv, nhead, Dh).transpose(1, 0, 2).astype(MATMUL_DTYPE)

    x = xq_ref[...].astype(jnp.float32)                  # (TQ, D) residual input
    xn = _layernorm_f32(x, g_ref[...], b_ref[...], eps)
    tq = x.shape[0]
    _attn_qtile_core(x, xn, wq_ref[...], bq_ref[...], wo_ref[...], bo_ref[...],
                     k_sc, v_sc, o_ref, nhead=nhead, scale=scale,
                     causal=True, q_start=qi * tq)


def _cross_attn_block_kernel(xq_ref, mem_ref, g_ref, b_ref,
                             wq_ref, bq_ref, wk_ref, bk_ref, wv_ref, bv_ref,
                             wo_ref, bo_ref, o_ref, k_sc, v_sc,
                             *, nhead, eps, scale):
    qi = pl.program_id(1)
    Skv = k_sc.shape[1]
    Dh = k_sc.shape[2]

    @pl.when(qi == 0)
    def _():
        mem = mem_ref[...]                               # bf16 memory, cast inside _mm
        k = _mm(mem, wk_ref[...]) + bk_ref[...]
        v = _mm(mem, wv_ref[...]) + bv_ref[...]
        k_sc[...] = k.reshape(Skv, nhead, Dh).transpose(1, 0, 2).astype(MATMUL_DTYPE)
        v_sc[...] = v.reshape(Skv, nhead, Dh).transpose(1, 0, 2).astype(MATMUL_DTYPE)

    x = xq_ref[...].astype(jnp.float32)
    xn = _layernorm_f32(x, g_ref[...], b_ref[...], eps)
    _attn_qtile_core(x, xn, wq_ref[...], bq_ref[...], wo_ref[...], bo_ref[...],
                     k_sc, v_sc, o_ref, nhead=nhead, scale=scale,
                     causal=False, q_start=0)


def _ffn_block_kernel(x_ref, g_ref, beta_ref, wg_ref, bg_ref, wu_ref, bu_ref,
                      wd_ref, bd_ref, o_ref, xn_sc, acc_sc, *, eps):
    # Fused: LayerNorm -> SwiGLU FFN (F-tiled, f32 accumulator) -> residual add.
    f = pl.program_id(1)

    @pl.when(f == 0)
    def _():
        x = x_ref[...].astype(jnp.float32)
        xn_sc[...] = _layernorm_f32(x, g_ref[...], beta_ref[...], eps).astype(MATMUL_DTYPE)
        acc_sc[...] = jnp.zeros_like(acc_sc)

    xn = xn_sc[...]
    g = _mm(xn, wg_ref[...]) + bg_ref[...]
    u = _mm(xn, wu_ref[...]) + bu_ref[...]
    h = (g * jax.nn.sigmoid(g)) * u                      # SwiGLU, f32
    acc_sc[...] += _mm(h, wd_ref[...])

    @pl.when(f == pl.num_programs(1) - 1)
    def _():
        x = x_ref[...].astype(jnp.float32)
        o_ref[...] = (x + acc_sc[...] + bd_ref[...]).astype(o_ref.dtype)


def _final_head_kernel(x_ref, g_ref, beta_ref, w_ref, b_ref, o_ref, *, eps):
    # Fused: final LayerNorm -> output projection (lane-dense padded output).
    x = x_ref[...].astype(jnp.float32)
    xn = _layernorm_f32(x, g_ref[...], beta_ref[...], eps)
    o_ref[...] = (_mm(xn, w_ref[...]) + b_ref[...]).astype(o_ref.dtype)


# --------------------------------------------------------------------------
# pallas_call wrappers
# --------------------------------------------------------------------------

def pallas_input_proj(tgt, w, b, pe_slice, pe_scale):
    B, S, Din = tgt.shape
    D = w.shape[1]
    kern = functools.partial(_input_proj_kernel, pe_scale=pe_scale)
    ce = pl.CostEstimate(
        flops=2 * B * S * Din * D, transcendentals=0,
        bytes_accessed=B * S * Din * tgt.dtype.itemsize + (Din * D + D + S * D) * 2
                       + B * S * D * 2)
    return pl.pallas_call(
        kern,
        grid=(B,),
        in_specs=[
            pl.BlockSpec((None, S, Din), lambda b_: (b_, 0, 0)),
            _const_spec((Din, D)),
            _const_spec((1, D)),
            _const_spec((S, D)),
        ],
        out_specs=pl.BlockSpec((None, S, D), lambda b_: (b_, 0, 0)),
        out_shape=jax.ShapeDtypeStruct((B, S, D), ACT_DTYPE),
        compiler_params=_compiler_params(("parallel",)),
        cost_estimate=ce,
    )(tgt, w, b.reshape(1, D), pe_slice)


def pallas_self_attn_block(x, gamma, beta, wq, bq, wk, bk, wv, bv, wo, bo,
                           *, nhead, eps=LN_EPS):
    B, S, D = x.shape
    Dh = D // nhead
    scale = 1.0 / math.sqrt(Dh)
    TQ = _pick_q_tile(S)
    nq = S // TQ
    kern = functools.partial(_self_attn_block_kernel, nhead=nhead, eps=eps, scale=scale)
    vec = _const_spec((1, D))
    mat = _const_spec((D, D))
    ce = pl.CostEstimate(
        flops=B * (8 * S * D * D + 4 * S * S * D),
        transcendentals=B * nhead * S * S,
        bytes_accessed=3 * B * S * D * 2 + 4 * (D * D + D) * 2)
    return pl.pallas_call(
        kern,
        grid=(B, nq),
        in_specs=[pl.BlockSpec((None, S, D), lambda b_, q_: (b_, 0, 0)),   # full x (KV)
                  pl.BlockSpec((None, TQ, D), lambda b_, q_: (b_, q_, 0)),  # q tile
                  vec, vec, mat, vec, mat, vec, mat, vec, mat, vec],
        out_specs=pl.BlockSpec((None, TQ, D), lambda b_, q_: (b_, q_, 0)),
        out_shape=jax.ShapeDtypeStruct((B, S, D), ACT_DTYPE),
        scratch_shapes=[pltpu.VMEM((nhead, S, Dh), MATMUL_DTYPE),
                        pltpu.VMEM((nhead, S, Dh), MATMUL_DTYPE)],
        compiler_params=_compiler_params(("parallel", "arbitrary")),
        cost_estimate=ce,
    )(x, x, gamma.reshape(1, D), beta.reshape(1, D),
      wq, bq.reshape(1, D), wk, bk.reshape(1, D),
      wv, bv.reshape(1, D), wo, bo.reshape(1, D))


def pallas_cross_attn_block(x, memory, gamma, beta, wq, bq, wk, bk, wv, bv, wo, bo,
                            *, nhead, eps=LN_EPS):
    B, S, D = x.shape
    Sm = memory.shape[1]
    Dh = D // nhead
    scale = 1.0 / math.sqrt(Dh)
    TQ = _pick_q_tile(S)
    nq = S // TQ
    kern = functools.partial(_cross_attn_block_kernel, nhead=nhead, eps=eps, scale=scale)
    vec = _const_spec((1, D))
    mat = _const_spec((D, D))
    ce = pl.CostEstimate(
        flops=B * (4 * S * D * D + 4 * Sm * D * D + 4 * S * Sm * D),
        transcendentals=B * nhead * S * Sm,
        bytes_accessed=(2 * B * S * D + B * Sm * D) * 2 + 4 * (D * D + D) * 2)
    return pl.pallas_call(
        kern,
        grid=(B, nq),
        in_specs=[pl.BlockSpec((None, TQ, D), lambda b_, q_: (b_, q_, 0)),
                  pl.BlockSpec((None, Sm, D), lambda b_, q_: (b_, 0, 0)),
                  vec, vec, mat, vec, mat, vec, mat, vec, mat, vec],
        out_specs=pl.BlockSpec((None, TQ, D), lambda b_, q_: (b_, q_, 0)),
        out_shape=jax.ShapeDtypeStruct((B, S, D), ACT_DTYPE),
        scratch_shapes=[pltpu.VMEM((nhead, Sm, Dh), MATMUL_DTYPE),
                        pltpu.VMEM((nhead, Sm, Dh), MATMUL_DTYPE)],
        compiler_params=_compiler_params(("parallel", "arbitrary")),
        cost_estimate=ce,
    )(x, memory, gamma.reshape(1, D), beta.reshape(1, D),
      wq, bq.reshape(1, D), wk, bk.reshape(1, D),
      wv, bv.reshape(1, D), wo, bo.reshape(1, D))


def pallas_ffn_block(x, gamma, beta, wg, bg, wu, bu, wd, bd, *, eps=LN_EPS):
    B, S, D = x.shape
    F = wg.shape[1]
    N = B * S
    x2 = _pad_rows(x.reshape(N, D))
    Np = x2.shape[0]
    TM = _pick_row_tile(Np)
    TF = _pick_f_tile(F)
    nf = F // TF
    kern = functools.partial(_ffn_block_kernel, eps=eps)
    ce = pl.CostEstimate(
        flops=6 * N * D * F, transcendentals=N * F,
        bytes_accessed=2 * N * D * 2 + (3 * D * F + 2 * F + 2 * D) * 2)
    out = pl.pallas_call(
        kern,
        grid=(Np // TM, nf),
        in_specs=[
            pl.BlockSpec((TM, D), lambda i, f: (i, 0)),
            _const_spec((1, D)),
            _const_spec((1, D)),
            pl.BlockSpec((D, TF), lambda i, f: (0, f)),
            pl.BlockSpec((1, TF), lambda i, f: (0, f)),
            pl.BlockSpec((D, TF), lambda i, f: (0, f)),
            pl.BlockSpec((1, TF), lambda i, f: (0, f)),
            pl.BlockSpec((TF, D), lambda i, f: (f, 0)),
            _const_spec((1, D)),
        ],
        out_specs=pl.BlockSpec((TM, D), lambda i, f: (i, 0)),
        out_shape=jax.ShapeDtypeStruct((Np, D), ACT_DTYPE),
        scratch_shapes=[pltpu.VMEM((TM, D), MATMUL_DTYPE),   # LayerNorm(x), bf16
                        pltpu.VMEM((TM, D), jnp.float32)],   # f32 accumulator
        compiler_params=_compiler_params(("parallel", "arbitrary")),
        cost_estimate=ce,
    )(x2, gamma.reshape(1, D), beta.reshape(1, D),
      wg, bg.reshape(1, F), wu, bu.reshape(1, F), wd, bd.reshape(1, D))
    return out[:N].reshape(B, S, D)


def pallas_final_head(x, gamma, beta, w, b, *, eps=LN_EPS):
    B, S, D = x.shape
    Dout = w.shape[1]
    Dpad = ((Dout + 127) // 128) * 128          # lane-dense output (unmasked stores)
    if Dpad != Dout:
        w = jnp.pad(w, ((0, 0), (0, Dpad - Dout)))
        b = jnp.pad(b, ((0, Dpad - Dout),))
    N = B * S
    x2 = _pad_rows(x.reshape(N, D))
    Np = x2.shape[0]
    TM = _pick_row_tile(Np)
    kern = functools.partial(_final_head_kernel, eps=eps)
    ce = pl.CostEstimate(
        flops=2 * N * D * Dpad, transcendentals=0,
        bytes_accessed=N * D * 2 + (D * Dpad + Dpad) * 2 + N * Dpad * 4)
    out = pl.pallas_call(
        kern,
        grid=(Np // TM,),
        in_specs=[
            pl.BlockSpec((TM, D), lambda i: (i, 0)),
            _const_spec((1, D)),
            _const_spec((1, D)),
            _const_spec((D, Dpad)),
            _const_spec((1, Dpad)),
        ],
        out_specs=pl.BlockSpec((TM, Dpad), lambda i: (i, 0)),
        out_shape=jax.ShapeDtypeStruct((Np, Dpad), jnp.float32),
        compiler_params=_compiler_params(("parallel",)),
        cost_estimate=ce,
    )(x2, gamma.reshape(1, D), beta.reshape(1, D), w, b.reshape(1, Dpad))
    return out[:N, :Dout].reshape(B, S, Dout)


# --------------------------------------------------------------------------
# Parameter construction (mirrors the PyTorch __init__ shapes / init; bf16 storage)
# --------------------------------------------------------------------------

def _xavier_uniform(key, fan_in, fan_out):
    limit = math.sqrt(6.0 / (fan_in + fan_out))
    return jax.random.uniform(key, (fan_in, fan_out), jnp.float32, -limit, limit)


def _sinusoidal_pe(max_len, d_model):
    pos = jnp.arange(max_len, dtype=jnp.float32)[:, None]
    div = jnp.exp(jnp.arange(0, d_model, 2, dtype=jnp.float32)
                  * (-math.log(10000.0) / d_model))
    pe = jnp.zeros((max_len, d_model), jnp.float32)
    pe = pe.at[:, 0::2].set(jnp.sin(pos * div))
    pe = pe.at[:, 1::2].set(jnp.cos(pos * div))
    return pe


def init_decoder_params(key, *, input_size, output_size, d_model, nhead,
                        num_layers, dim_feedforward, max_seq_len=64,
                        pos_encoding_scale=1.0):
    keys = iter(jax.random.split(key, 4 + num_layers * 16))

    def lin(din, dout):
        return (_xavier_uniform(next(keys), din, dout).astype(PARAM_DTYPE),
                jnp.zeros((dout,), PARAM_DTYPE))

    params = {
        "d_model": d_model,
        "nhead": nhead,
        "pe": _sinusoidal_pe(max_seq_len, d_model).astype(PARAM_DTYPE),
        "pe_scale": float(pos_encoding_scale),
    }
    params["w_in"], params["b_in"] = lin(input_size, d_model)

    layers = []
    for _ in range(num_layers):
        lp = {}
        for pfx in ("sa", "ca"):  # self-attn / cross-attn q,k,v,out projections
            for name in ("q", "k", "v", "o"):
                lp[f"{pfx}_w{name}"], lp[f"{pfx}_b{name}"] = lin(d_model, d_model)
        lp["ff_wg"], lp["ff_bg"] = lin(d_model, dim_feedforward)
        lp["ff_wu"], lp["ff_bu"] = lin(d_model, dim_feedforward)
        lp["ff_wd"], lp["ff_bd"] = lin(dim_feedforward, d_model)
        for n in (1, 2, 3):  # LayerNorms: weight=1, bias=0
            lp[f"ln{n}_g"] = jnp.ones((d_model,), PARAM_DTYPE)
            lp[f"ln{n}_b"] = jnp.zeros((d_model,), PARAM_DTYPE)
        layers.append(lp)
    params["layers"] = layers

    params["fn_g"] = jnp.ones((d_model,), PARAM_DTYPE)   # final norm
    params["fn_b"] = jnp.zeros((d_model,), PARAM_DTYPE)
    params["w_out"], params["b_out"] = lin(d_model, output_size)
    return params


# --------------------------------------------------------------------------
# Decoder forward (pre_norm, causal self-attn, cross-attn, SwiGLU FF)
# --------------------------------------------------------------------------

def transformer_decoder_forward(params, tgt, memory):
    B, S, _ = tgt.shape
    H = params["nhead"]
    pe = params["pe"]
    assert S <= pe.shape[0], "sequence length exceeds positional-encoding table"

    memory = memory.astype(ACT_DTYPE)   # bf16 KV source; matmuls cast anyway

    # input projection + positional encoding (dropout is a no-op in eval mode)
    x = pallas_input_proj(tgt, params["w_in"], params["b_in"],
                          pe[:S], params["pe_scale"])

    for lp in params["layers"]:
        # causal self-attention block (pre-norm, residual fused in-kernel)
        x = pallas_self_attn_block(
            x, lp["ln1_g"], lp["ln1_b"],
            lp["sa_wq"], lp["sa_bq"], lp["sa_wk"], lp["sa_bk"],
            lp["sa_wv"], lp["sa_bv"], lp["sa_wo"], lp["sa_bo"], nhead=H)
        # cross-attention block
        x = pallas_cross_attn_block(
            x, memory, lp["ln2_g"], lp["ln2_b"],
            lp["ca_wq"], lp["ca_bq"], lp["ca_wk"], lp["ca_bk"],
            lp["ca_wv"], lp["ca_bv"], lp["ca_wo"], lp["ca_bo"], nhead=H)
        # SwiGLU feed-forward block (F-tiled, f32 accumulator)
        x = pallas_ffn_block(
            x, lp["ln3_g"], lp["ln3_b"],
            lp["ff_wg"], lp["ff_bg"], lp["ff_wu"], lp["ff_bu"],
            lp["ff_wd"], lp["ff_bd"])

    # final norm + output projection (lane-dense padded, sliced back)
    return pallas_final_head(x, params["fn_g"], params["fn_b"],
                             params["w_out"], params["b_out"])


# --------------------------------------------------------------------------
# Pure-JAX reference (mirrors the kernels' bf16-weight / bf16-activation /
# f32-accumulate numerics; softmax uses exact division instead of approx recip)
# --------------------------------------------------------------------------

def _ref_forward(params, tgt, memory, eps=LN_EPS):
    D = params["d_model"]
    H = params["nhead"]
    f32 = jnp.float32

    def rnd(a):   # bf16 activation stream between fused sub-blocks
        return a.astype(ACT_DTYPE).astype(f32)

    def ln(x, g, b):
        mu = jnp.mean(x, axis=-1, keepdims=True)
        xc = x - mu
        var = jnp.mean(xc * xc, axis=-1, keepdims=True)
        return xc * jax.lax.rsqrt(var + eps) * g.astype(f32) + b.astype(f32)

    def attn(xq_n, xkv, wq, bq, wk, bk, wv, bv, wo, bo, causal):
        B_, S, _ = xq_n.shape
        Skv = xkv.shape[1]
        Dh = D // H
        scale = 1.0 / math.sqrt(Dh)
        q = ((_mm(xq_n, wq) + bq) * scale).reshape(B_, S, H, Dh)
        k = (_mm(xkv, wk) + bk).reshape(B_, Skv, H, Dh)
        v = (_mm(xkv, wv) + bv).reshape(B_, Skv, H, Dh)
        s = jnp.einsum("bqhd,bkhd->bhqk", q.astype(MATMUL_DTYPE),
                       k.astype(MATMUL_DTYPE), preferred_element_type=f32)
        if causal:
            mask = jnp.arange(Skv)[None, :] <= jnp.arange(S)[:, None]
            s = jnp.where(mask, s, -1e30)
        p = jax.nn.softmax(s, axis=-1)
        av = jnp.einsum("bhqk,bkhd->bqhd", p.astype(MATMUL_DTYPE),
                        v.astype(MATMUL_DTYPE), preferred_element_type=f32)
        return _mm(av.reshape(B_, S, D), wo) + bo

    x = rnd(_mm(tgt, params["w_in"]) + params["b_in"]
            + params["pe"][: tgt.shape[1]].astype(f32) * params["pe_scale"])
    mem = memory
    for lp in params["layers"]:
        xn = ln(x, lp["ln1_g"], lp["ln1_b"])
        x = rnd(x + attn(xn, xn, lp["sa_wq"], lp["sa_bq"], lp["sa_wk"], lp["sa_bk"],
                         lp["sa_wv"], lp["sa_bv"], lp["sa_wo"], lp["sa_bo"], True))
        xn = ln(x, lp["ln2_g"], lp["ln2_b"])
        x = rnd(x + attn(xn, mem, lp["ca_wq"], lp["ca_bq"], lp["ca_wk"], lp["ca_bk"],
                         lp["ca_wv"], lp["ca_bv"], lp["ca_wo"], lp["ca_bo"], False))
        xn = ln(x, lp["ln3_g"], lp["ln3_b"])
        g = _mm(xn, lp["ff_wg"]) + lp["ff_bg"]
        u = _mm(xn, lp["ff_wu"]) + lp["ff_bu"]
        x = rnd(x + _mm(jax.nn.silu(g) * u, lp["ff_wd"]) + lp["ff_bd"])
    x = ln(x, params["fn_g"], params["fn_b"])
    return _mm(x, params["w_out"]) + params["b_out"]


# --------------------------------------------------------------------------
# Main
# --------------------------------------------------------------------------

if __name__ == "__main__":
    B = 2            # batch
    S_TGT = 8        # target sequence length
    S_MEM = 8        # memory (encoder) sequence length
    INPUT_SIZE = 16  # tgt feature size
    D_MODEL = 32
    NHEAD = 4
    NUM_LAYERS = 2
    DIM_FF = 64
    OUTPUT_SIZE = 8

    key = jax.random.PRNGKey(0)
    k_param, k_tgt, k_mem = jax.random.split(key, 3)

    params = init_decoder_params(
        k_param,
        input_size=INPUT_SIZE, output_size=OUTPUT_SIZE,
        d_model=D_MODEL, nhead=NHEAD, num_layers=NUM_LAYERS,
        dim_feedforward=DIM_FF, max_seq_len=64)

    tgt = jax.random.normal(k_tgt, (B, S_TGT, INPUT_SIZE), jnp.float32)
    memory = jax.random.normal(k_mem, (B, S_MEM, D_MODEL), jnp.float32)

    fwd = jax.jit(lambda t, m: transformer_decoder_forward(params, t, m))
    out = jax.block_until_ready(fwd(tgt, memory))

    assert out.shape == (B, S_TGT, OUTPUT_SIZE), out.shape
    assert bool(jnp.all(jnp.isfinite(out)))

    # cross-check against a pure-JAX reference using the same bf16/f32 math
    ref = jax.block_until_ready(_ref_forward(params, tgt, memory))
    max_err = float(jnp.max(jnp.abs(out - ref)))
    assert max_err < 5e-2, f"kernel/reference mismatch: max abs err {max_err}"

    print("KERNEL_OK")
</pallas_src>

<mosaic_0001>
module attributes {stable_mosaic.version = 11 : i64} {
  func.func @_self_attn_block_kernel(%arg0: i32, %arg1: i32, %arg2: memref<1x8x32xbf16, #tpu.memory_space<vmem>>, %arg3: memref<1x8x32xbf16, #tpu.memory_space<vmem>>, %arg4: memref<1x32xbf16, #tpu.memory_space<vmem>>, %arg5: memref<1x32xbf16, #tpu.memory_space<vmem>>, %arg6: memref<32x32xbf16, #tpu.memory_space<vmem>>, %arg7: memref<1x32xbf16, #tpu.memory_space<vmem>>, %arg8: memref<32x32xbf16, #tpu.memory_space<vmem>>, %arg9: memref<1x32xbf16, #tpu.memory_space<vmem>>, %arg10: memref<32x32xbf16, #tpu.memory_space<vmem>>, %arg11: memref<1x32xbf16, #tpu.memory_space<vmem>>, %arg12: memref<32x32xbf16, #tpu.memory_space<vmem>>, %arg13: memref<1x32xbf16, #tpu.memory_space<vmem>>, %arg14: memref<1x8x32xbf16, #tpu.memory_space<vmem>>, %arg15: memref<4x8x8xbf16, #tpu.memory_space<vmem>>, %arg16: memref<4x8x8xbf16, #tpu.memory_space<vmem>>) attributes {dimension_semantics = [#tpu.dimension_semantics<parallel>, #tpu.dimension_semantics<arbitrary>], iteration_bounds = array<i64: 2, 1>, scalar_prefetch = 0 : i64, scratch_operands = 2 : i64, tpu.core_type = #tpu.core_type<tc>, window_params = [{transform_indices = @transform_0, window_bounds = array<i64: 1, 8, 32>}, {transform_indices = @transform_1, window_bounds = array<i64: 1, 8, 32>}, {pipeline_mode = #tpu.pipeline_mode<synchronous>, transform_indices = @transform_2, window_bounds = array<i64: 1, 32>}, {pipeline_mode = #tpu.pipeline_mode<synchronous>, transform_indices = @transform_3, window_bounds = array<i64: 1, 32>}, {pipeline_mode = #tpu.pipeline_mode<synchronous>, transform_indices = @transform_4, window_bounds = array<i64: 32, 32>}, {pipeline_mode = #tpu.pipeline_mode<synchronous>, transform_indices = @transform_5, window_bounds = array<i64: 1, 32>}, {pipeline_mode = #tpu.pipeline_mode<synchronous>, transform_indices = @transform_6, window_bounds = array<i64: 32, 32>}, {pipeline_mode = #tpu.pipeline_mode<synchronous>, transform_indices = @transform_7, window_bounds = array<i64: 1, 32>}, {pipeline_mode = #tpu.pipeline_mode<synchronous>, transform_indices = @transform_8, window_bounds = array<i64: 32, 32>}, {pipeline_mode = #tpu.pipeline_mode<synchronous>, transform_indices = @transform_9, window_bounds = array<i64: 1, 32>}, {pipeline_mode = #tpu.pipeline_mode<synchronous>, transform_indices = @transform_10, window_bounds = array<i64: 32, 32>}, {pipeline_mode = #tpu.pipeline_mode<synchronous>, transform_indices = @transform_11, window_bounds = array<i64: 1, 32>}, {transform_indices = @transform_12, window_bounds = array<i64: 1, 8, 32>}]} {
    %c0_i32 = arith.constant 0 : i32
    %0 = arith.cmpi eq, %arg1, %c0_i32 : i32
    %1 = arith.extui %0 : i1 to i32
    %c0_i32_0 = arith.constant 0 : i32
    %2 = arith.cmpi ne, %1, %c0_i32_0 : i32
    scf.if %2 {
      %c0_36 = arith.constant 0 : index
      %c0_37 = arith.constant 0 : index
      %c0_38 = arith.constant 0 : index
      %82 = vector.load %arg2[%c0_36, %c0_37, %c0_38] : memref<1x8x32xbf16, #tpu.memory_space<vmem>>, vector<1x8x32xbf16>
      %83 = vector.shape_cast %82 : vector<1x8x32xbf16> to vector<8x32xbf16>
      %84 = arith.extf %83 : vector<8x32xbf16> to vector<8x32xf32>
      %c0_39 = arith.constant 0 : index
      %c0_40 = arith.constant 0 : index
      %85 = vector.load %arg4[%c0_39, %c0_40] : memref<1x32xbf16, #tpu.memory_space<vmem>>, vector<1x32xbf16>
      %c0_41 = arith.constant 0 : index
      %c0_42 = arith.constant 0 : index
      %86 = vector.load %arg5[%c0_41, %c0_42] : memref<1x32xbf16, #tpu.memory_space<vmem>>, vector<1x32xbf16>
      %cst_43 = arith.constant dense<0.000000e+00> : vector<8xf32>
      %87 = vector.multi_reduction <add>, %84, %cst_43 [1] : vector<8x32xf32> to vector<8xf32>
      %88 = vector.shape_cast %87 : vector<8xf32> to vector<8x1xf32>
      %cst_44 = arith.constant 3.200000e+01 : f32
      %89 = vector.broadcast %cst_44 : f32 to vector<8x1xf32>
      %90 = arith.divf %88, %89 : vector<8x1xf32>
      %91 = vector.broadcast %90 : vector<8x1xf32> to vector<8x32xf32>
      %92 = arith.subf %84, %91 : vector<8x32xf32>
      %93 = arith.mulf %92, %92 : vector<8x32xf32>
      %cst_45 = arith.constant dense<0.000000e+00> : vector<8xf32>
      %94 = vector.multi_reduction <add>, %93, %cst_45 [1] : vector<8x32xf32> to vector<8xf32>
      %95 = vector.shape_cast %94 : vector<8xf32> to vector<8x1xf32>
      %cst_46 = arith.constant 3.200000e+01 : f32
      %96 = vector.broadcast %cst_46 : f32 to vector<8x1xf32>
      %97 = arith.divf %95, %96 : vector<8x1xf32>
      %cst_47 = arith.constant 9.99999974E-6 : f32
      %98 = vector.broadcast %cst_47 : f32 to vector<8x1xf32>
      %99 = arith.addf %97, %98 : vector<8x1xf32>
      %100 = math.rsqrt %99 : vector<8x1xf32>
      %101 = vector.broadcast %100 : vector<8x1xf32> to vector<8x32xf32>
      %102 = arith.mulf %92, %101 : vector<8x32xf32>
      %103 = arith.extf %85 : vector<1x32xbf16> to vector<1x32xf32>
      %104 = vector.broadcast %103 : vector<1x32xf32> to vector<8x32xf32>
      %105 = arith.mulf %102, %104 : vector<8x32xf32>
      %106 = arith.extf %86 : vector<1x32xbf16> to vector<1x32xf32>
      %107 = vector.broadcast %106 : vector<1x32xf32> to vector<8x32xf32>
      %108 = arith.addf %105, %107 : vector<8x32xf32>
      %c0_48 = arith.constant 0 : index
      %c0_49 = arith.constant 0 : index
      %109 = vector.load %arg8[%c0_48, %c0_49] : memref<32x32xbf16, #tpu.memory_space<vmem>>, vector<32x32xbf16>
      %110 = arith.truncf %108 : vector<8x32xf32> to vector<8x32xbf16>
      %cst_50 = arith.constant dense<0.000000e+00> : vector<8x32xf32>
      %111 = tpu.matmul %110, %109, %cst_50 {dimension_numbers = #tpu.dot_dimension_numbers<[1], [0], [0], [1], [0, 0, 1, 1], [], []>} : vector<8x32xbf16>, vector<32x32xbf16>, vector<8x32xf32> -> vector<8x32xf32>
      %c0_51 = arith.constant 0 : index
      %c0_52 = arith.constant 0 : index
      %112 = vector.load %arg9[%c0_51, %c0_52] : memref<1x32xbf16, #tpu.memory_space<vmem>>, vector<1x32xbf16>
      %113 = arith.extf %112 : vector<1x32xbf16> to vector<1x32xf32>
      %114 = vector.broadcast %113 : vector<1x32xf32> to vector<8x32xf32>
      %115 = arith.addf %111, %114 : vector<8x32xf32>
      %c0_53 = arith.constant 0 : index
      %c0_54 = arith.constant 0 : index
      %116 = vector.load %arg10[%c0_53, %c0_54] : memref<32x32xbf16, #tpu.memory_space<vmem>>, vector<32x32xbf16>
      %117 = arith.truncf %108 : vector<8x32xf32> to vector<8x32xbf16>
      %cst_55 = arith.constant dense<0.000000e+00> : vector<8x32xf32>
      %118 = tpu.matmul %117, %116, %cst_55 {dimension_numbers = #tpu.dot_dimension_numbers<[1], [0], [0], [1], [0, 0, 1, 1], [], []>} : vector<8x32xbf16>, vector<32x32xbf16>, vector<8x32xf32> -> vector<8x32xf32>
      %c0_56 = arith.constant 0 : index
      %c0_57 = arith.constant 0 : index
      %119 = vector.load %arg11[%c0_56, %c0_57] : memref<1x32xbf16, #tpu.memory_space<vmem>>, vector<1x32xbf16>
      %120 = arith.extf %119 : vector<1x32xbf16> to vector<1x32xf32>
      %121 = vector.broadcast %120 : vector<1x32xf32> to vector<8x32xf32>
      %122 = arith.addf %118, %121 : vector<8x32xf32>
      %123 = vector.shape_cast %115 : vector<8x32xf32> to vector<8x4x8xf32>
      %124 = tpu.transpose %123, [1, 0, 2] : vector<8x4x8xf32> -> vector<4x8x8xf32>
      %125 = arith.truncf %124 : vector<4x8x8xf32> to vector<4x8x8xbf16>
      %c0_58 = arith.constant 0 : index
      %c0_59 = arith.constant 0 : index
      %c0_60 = arith.constant 0 : index
      %126 = vector.load %arg15[%c0_58, %c0_59, %c0_60] : memref<4x8x8xbf16, #tpu.memory_space<vmem>>, vector<4x8x8xbf16>
      tpu.vector_store %arg15[%c0_58, %c0_59, %c0_60], %125 {strides = array<i32>} : memref<4x8x8xbf16, #tpu.memory_space<vmem>>, vector<4x8x8xbf16>,
      %127 = vector.shape_cast %122 : vector<8x32xf32> to vector<8x4x8xf32>
      %128 = tpu.transpose %127, [1, 0, 2] : vector<8x4x8xf32> -> vector<4x8x8xf32>
      %129 = arith.truncf %128 : vector<4x8x8xf32> to vector<4x8x8xbf16>
      %c0_61 = arith.constant 0 : index
      %c0_62 = arith.constant 0 : index
      %c0_63 = arith.constant 0 : index
      %130 = vector.load %arg16[%c0_61, %c0_62, %c0_63] : memref<4x8x8xbf16, #tpu.memory_space<vmem>>, vector<4x8x8xbf16>
      tpu.vector_store %arg16[%c0_61, %c0_62, %c0_63], %129 {strides = array<i32>} : memref<4x8x8xbf16, #tpu.memory_space<vmem>>, vector<4x8x8xbf16>,
    } else {
    }
    %c0 = arith.constant 0 : index
    %c0_1 = arith.constant 0 : index
    %c0_2 = arith.constant 0 : index
    %3 = vector.load %arg3[%c0, %c0_1, %c0_2] : memref<1x8x32xbf16, #tpu.memory_space<vmem>>, vector<1x8x32xbf16>
    %4 = vector.shape_cast %3 : vector<1x8x32xbf16> to vector<8x32xbf16>
    %5 = arith.extf %4 : vector<8x32xbf16> to vector<8x32xf32>
    %c0_3 = arith.constant 0 : index
    %c0_4 = arith.constant 0 : index
    %6 = vector.load %arg4[%c0_3, %c0_4] : memref<1x32xbf16, #tpu.memory_space<vmem>>, vector<1x32xbf16>
    %c0_5 = arith.constant 0 : index
    %c0_6 = arith.constant 0 : index
    %7 = vector.load %arg5[%c0_5, %c0_6] : memref<1x32xbf16, #tpu.memory_space<vmem>>, vector<1x32xbf16>
    %cst = arith.constant dense<0.000000e+00> : vector<8xf32>
    %8 = vector.multi_reduction <add>, %5, %cst [1] : vector<8x32xf32> to vector<8xf32>
    %9 = vector.shape_cast %8 : vector<8xf32> to vector<8x1xf32>
    %cst_7 = arith.constant 3.200000e+01 : f32
    %10 = vector.broadcast %cst_7 : f32 to vector<8x1xf32>
    %11 = arith.divf %9, %10 : vector<8x1xf32>
    %12 = vector.broadcast %11 : vector<8x1xf32> to vector<8x32xf32>
    %13 = arith.subf %5, %12 : vector<8x32xf32>
    %14 = arith.mulf %13, %13 : vector<8x32xf32>
    %cst_8 = arith.constant dense<0.000000e+00> : vector<8xf32>
    %15 = vector.multi_reduction <add>, %14, %cst_8 [1] : vector<8x32xf32> to vector<8xf32>
    %16 = vector.shape_cast %15 : vector<8xf32> to vector<8x1xf32>
    %cst_9 = arith.constant 3.200000e+01 : f32
    %17 = vector.broadcast %cst_9 : f32 to vector<8x1xf32>
    %18 = arith.divf %16, %17 : vector<8x1xf32>
    %cst_10 = arith.constant 9.99999974E-6 : f32
    %19 = vector.broadcast %cst_10 : f32 to vector<8x1xf32>
    %20 = arith.addf %18, %19 : vector<8x1xf32>
    %21 = math.rsqrt %20 : vector<8x1xf32>
    %22 = vector.broadcast %21 : vector<8x1xf32> to vector<8x32xf32>
    %23 = arith.mulf %13, %22 : vector<8x32xf32>
    %24 = arith.extf %6 : vector<1x32xbf16> to vector<1x32xf32>
    %25 = vector.broadcast %24 : vector<1x32xf32> to vector<8x32xf32>
    %26 = arith.mulf %23, %25 : vector<8x32xf32>
    %27 = arith.extf %7 : vector<1x32xbf16> to vector<1x32xf32>
    %28 = vector.broadcast %27 : vector<1x32xf32> to vector<8x32xf32>
    %29 = arith.addf %26, %28 : vector<8x32xf32>
    %c0_11 = arith.constant 0 : index
    %c0_12 = arith.constant 0 : index
    %30 = vector.load %arg6[%c0_11, %c0_12] : memref<32x32xbf16, #tpu.memory_space<vmem>>, vector<32x32xbf16>
    %c0_13 = arith.constant 0 : index
    %c0_14 = arith.constant 0 : index
    %31 = vector.load %arg7[%c0_13, %c0_14] : memref<1x32xbf16, #tpu.memory_space<vmem>>, vector<1x32xbf16>
    %c0_15 = arith.constant 0 : index
    %c0_16 = arith.constant 0 : index
    %32 = vector.load %arg12[%c0_15, %c0_16] : memref<32x32xbf16, #tpu.memory_space<vmem>>, vector<32x32xbf16>
    %c0_17 = arith.constant 0 : index
    %c0_18 = arith.constant 0 : index
    %33 = vector.load %arg13[%c0_17, %c0_18] : memref<1x32xbf16, #tpu.memory_space<vmem>>, vector<1x32xbf16>
    %c8_i32 = arith.constant 8 : i32
    %34 = arith.muli %arg1, %c8_i32 : i32
    %35 = arith.truncf %29 : vector<8x32xf32> to vector<8x32xbf16>
    %cst_19 = arith.constant dense<0.000000e+00> : vector<8x32xf32>
    %36 = tpu.matmul %35, %30, %cst_19 {dimension_numbers = #tpu.dot_dimension_numbers<[1], [0], [0], [1], [0, 0, 1, 1], [], []>} : vector<8x32xbf16>, vector<32x32xbf16>, vector<8x32xf32> -> vector<8x32xf32>
    %37 = arith.extf %31 : vector<1x32xbf16> to vector<1x32xf32>
    %38 = vector.broadcast %37 : vector<1x32xf32> to vector<8x32xf32>
    %39 = arith.addf %36, %38 : vector<8x32xf32>
    %cst_20 = arith.constant 0.353553385 : f32
    %40 = vector.broadcast %cst_20 : f32 to vector<8x32xf32>
    %41 = arith.mulf %39, %40 : vector<8x32xf32>
    %42 = vector.shape_cast %41 : vector<8x32xf32> to vector<8x4x8xf32>
    %43 = tpu.transpose %42, [1, 0, 2] : vector<8x4x8xf32> -> vector<4x8x8xf32>
    %44 = arith.truncf %43 : vector<4x8x8xf32> to vector<4x8x8xbf16>
    %c0_21 = arith.constant 0 : index
    %c0_22 = arith.constant 0 : index
    %c0_23 = arith.constant 0 : index
    %45 = vector.load %arg15[%c0_21, %c0_22, %c0_23] : memref<4x8x8xbf16, #tpu.memory_space<vmem>>, vector<4x8x8xbf16>
    "tpu.trace_start"() <{level = 10 : i32, message = "hqd,hkd->hqk"}> : () -> ()
    %cst_24 = arith.constant dense<0.000000e+00> : vector<4x8x8xf32>
    %46 = tpu.matmul %44, %45, %cst_24 {dimension_numbers = #tpu.dot_dimension_numbers<[2], [2], [1], [1], [0, 0, 0, 1, 1, 1], [0], [0]>} : vector<4x8x8xbf16>, vector<4x8x8xbf16>, vector<4x8x8xf32> -> vector<4x8x8xf32>
    "tpu.trace_stop"() : () -> ()
    %47 = tpu.iota {dimensions = array<i32: 0>} : vector<8x8xi32>
    %48 = vector.broadcast %34 : i32 to vector<8x8xi32>
    %49 = arith.addi %48, %47 : vector<8x8xi32>
    %50 = tpu.iota {dimensions = array<i32: 1>} : vector<8x8xi32>
    %51 = arith.cmpi sle, %50, %49 : vector<8x8xi32>
    %52 = vector.shape_cast %51 : vector<8x8xi1> to vector<1x8x8xi1>
    %cst_25 = arith.constant -1.000000e+30 : f32
    %53 = vector.shape_cast %52 : vector<1x8x8xi1> to vector<1x8x8xi1>
    %54 = vector.broadcast %53 : vector<1x8x8xi1> to vector<4x8x8xi1>
    %55 = vector.broadcast %cst_25 : f32 to vector<4x8x8xf32>
    %56 = arith.select %54, %46, %55 : vector<4x8x8xi1>, vector<4x8x8xf32>
    %cst_26 = arith.constant dense<0xFF800000> : vector<4x8xf32>
    %57 = vector.multi_reduction <maximumf>, %56, %cst_26 [2] : vector<4x8x8xf32> to vector<4x8xf32>
    %58 = vector.shape_cast %57 : vector<4x8xf32> to vector<4x8x1xf32>
    %59 = vector.broadcast %58 : vector<4x8x1xf32> to vector<4x8x8xf32>
    %60 = arith.subf %56, %59 : vector<4x8x8xf32>
    %61 = math.exp %60 : vector<4x8x8xf32>
    %cst_27 = arith.constant dense<0.000000e+00> : vector<4x8xf32>
    %62 = vector.multi_reduction <add>, %61, %cst_27 [2] : vector<4x8x8xf32> to vector<4x8xf32>
    %63 = vector.shape_cast %62 : vector<4x8xf32> to vector<4x8x1xf32>
    %64 = tpu.reciprocal %63 {approx = true} : vector<4x8x1xf32> -> vector<4x8x1xf32>
    %65 = vector.broadcast %64 : vector<4x8x1xf32> to vector<4x8x8xf32>
    %66 = arith.mulf %61, %65 : vector<4x8x8xf32>
    %67 = arith.truncf %66 : vector<4x8x8xf32> to vector<4x8x8xbf16>
    %c0_28 = arith.constant 0 : index
    %c0_29 = arith.constant 0 : index
    %c0_30 = arith.constant 0 : index
    %68 = vector.load %arg16[%c0_28, %c0_29, %c0_30] : memref<4x8x8xbf16, #tpu.memory_space<vmem>>, vector<4x8x8xbf16>
    "tpu.trace_start"() <{level = 10 : i32, message = "hqk,hkd->hqd"}> : () -> ()
    %cst_31 = arith.constant dense<0.000000e+00> : vector<4x8x8xf32>
    %69 = tpu.matmul %67, %68, %cst_31 {dimension_numbers = #tpu.dot_dimension_numbers<[2], [1], [1], [2], [0, 0, 0, 1, 1, 2], [0], [0]>} : vector<4x8x8xbf16>, vector<4x8x8xbf16>, vector<4x8x8xf32> -> vector<4x8x8xf32>
    "tpu.trace_stop"() : () -> ()
    %70 = tpu.transpose %69, [1, 0, 2] : vector<4x8x8xf32> -> vector<8x4x8xf32>
    %71 = vector.shape_cast %70 : vector<8x4x8xf32> to vector<8x32xf32>
    %72 = arith.truncf %71 : vector<8x32xf32> to vector<8x32xbf16>
    %cst_32 = arith.constant dense<0.000000e+00> : vector<8x32xf32>
    %73 = tpu.matmul %72, %32, %cst_32 {dimension_numbers = #tpu.dot_dimension_numbers<[1], [0], [0], [1], [0, 0, 1, 1], [], []>} : vector<8x32xbf16>, vector<32x32xbf16>, vector<8x32xf32> -> vector<8x32xf32>
    %74 = arith.extf %33 : vector<1x32xbf16> to vector<1x32xf32>
    %75 = vector.broadcast %74 : vector<1x32xf32> to vector<8x32xf32>
    %76 = arith.addf %73, %75 : vector<8x32xf32>
    %77 = arith.addf %5, %76 : vector<8x32xf32>
    %78 = arith.truncf %77 : vector<8x32xf32> to vector<8x32xbf16>
    %c0_33 = arith.constant 0 : index
    %c0_34 = arith.constant 0 : index
    %c0_35 = arith.constant 0 : index
    %79 = vector.load %arg14[%c0_33, %c0_34, %c0_35] : memref<1x8x32xbf16, #tpu.memory_space<vmem>>, vector<1x8x32xbf16>
    %80 = vector.shape_cast %79 : vector<1x8x32xbf16> to vector<8x32xbf16>
    %81 = vector.shape_cast %78 : vector<8x32xbf16> to vector<1x8x32xbf16>
    tpu.vector_store %arg14[%c0_33, %c0_34, %c0_35], %81 {strides = array<i32>} : memref<1x8x32xbf16, #tpu.memory_space<vmem>>, vector<1x8x32xbf16>,
    return
  }
  func.func @transform_0(%arg0: i32, %arg1: i32) -> (i32, i32, i32) {
    %c0_i32 = arith.constant 0 : i32
    %c0_i32_0 = arith.constant 0 : i32
    %c0_i32_1 = arith.constant 0 : i32
    return %arg0, %c0_i32, %c0_i32_0 : i32, i32, i32
  }
  func.func @transform_1(%arg0: i32, %arg1: i32) -> (i32, i32, i32) {
    %c0_i32 = arith.constant 0 : i32
    %c0_i32_0 = arith.constant 0 : i32
    return %arg0, %arg1, %c0_i32 : i32, i32, i32
  }
  func.func @transform_2(%arg0: i32, %arg1: i32) -> (i32, i32) {
    %c0_i32 = arith.constant 0 : i32
    %c0_i32_0 = arith.constant 0 : i32
    %c0_i32_1 = arith.constant 0 : i32
    return %c0_i32, %c0_i32_0 : i32, i32
  }
  func.func @transform_3(%arg0: i32, %arg1: i32) -> (i32, i32) {
    %c0_i32 = arith.constant 0 : i32
    %c0_i32_0 = arith.constant 0 : i32
    %c0_i32_1 = arith.constant 0 : i32
    return %c0_i32, %c0_i32_0 : i32, i32
  }
  func.func @transform_4(%arg0: i32, %arg1: i32) -> (i32, i32) {
    %c0_i32 = arith.constant 0 : i32
    %c0_i32_0 = arith.constant 0 : i32
    %c0_i32_1 = arith.constant 0 : i32
    return %c0_i32, %c0_i32_0 : i32, i32
  }
  func.func @transform_5(%arg0: i32, %arg1: i32) -> (i32, i32) {
    %c0_i32 = arith.constant 0 : i32
    %c0_i32_0 = arith.constant 0 : i32
    %c0_i32_1 = arith.constant 0 : i32
    return %c0_i32, %c0_i32_0 : i32, i32
  }
  func.func @transform_6(%arg0: i32, %arg1: i32) -> (i32, i32) {
    %c0_i32 = arith.constant 0 : i32
    %c0_i32_0 = arith.constant 0 : i32
    %c0_i32_1 = arith.constant 0 : i32
    return %c0_i32, %c0_i32_0 : i32, i32
  }
  func.func @transform_7(%arg0: i32, %arg1: i32) -> (i32, i32) {
    %c0_i32 = arith.constant 0 : i32
    %c0_i32_0 = arith.constant 0 : i32
    %c0_i32_1 = arith.constant 0 : i32
    return %c0_i32, %c0_i32_0 : i32, i32
  }
  func.func @transform_8(%arg0: i32, %arg1: i32) -> (i32, i32) {
    %c0_i32 = arith.constant 0 : i32
    %c0_i32_0 = arith.constant 0 : i32
    %c0_i32_1 = arith.constant 0 : i32
    return %c0_i32, %c0_i32_0 : i32, i32
  }
  func.func @transform_9(%arg0: i32, %arg1: i32) -> (i32, i32) {
    %c0_i32 = arith.constant 0 : i32
    %c0_i32_0 = arith.constant 0 : i32
    %c0_i32_1 = arith.constant 0 : i32
    return %c0_i32, %c0_i32_0 : i32, i32
  }
  func.func @transform_10(%arg0: i32, %arg1: i32) -> (i32, i32) {
    %c0_i32 = arith.constant 0 : i32
    %c0_i32_0 = arith.constant 0 : i32
    %c0_i32_1 = arith.constant 0 : i32
    return %c0_i32, %c0_i32_0 : i32, i32
  }
  func.func @transform_11(%arg0: i32, %arg1: i32) -> (i32, i32) {
    %c0_i32 = arith.constant 0 : i32
    %c0_i32_0 = arith.constant 0 : i32
    %c0_i32_1 = arith.constant 0 : i32
    return %c0_i32, %c0_i32_0 : i32, i32
  }
  func.func @transform_12(%arg0: i32, %arg1: i32) -> (i32, i32, i32) {
    %c0_i32 = arith.constant 0 : i32
    %c0_i32_0 = arith.constant 0 : i32
    return %arg0, %arg1, %c0_i32 : i32, i32, i32
  }
}

module attributes {stable_mosaic.version = 11 : i64} {
  func.func @_ffn_block_kernel(%arg0: i32, %arg1: i32, %arg2: memref<16x32xbf16, #tpu.memory_space<vmem>>, %arg3: memref<1x32xbf16, #tpu.memory_space<vmem>>, %arg4: memref<1x32xbf16, #tpu.memory_space<vmem>>, %arg5: memref<32x64xbf16, #tpu.memory_space<vmem>>, %arg6: memref<1x64xbf16, #tpu.memory_space<vmem>>, %arg7: memref<32x64xbf16, #tpu.memory_space<vmem>>, %arg8: memref<1x64xbf16, #tpu.memory_space<vmem>>, %arg9: memref<64x32xbf16, #tpu.memory_space<vmem>>, %arg10: memref<1x32xbf16, #tpu.memory_space<vmem>>, %arg11: memref<16x32xbf16, #tpu.memory_space<vmem>>, %arg12: memref<16x32xbf16, #tpu.memory_space<vmem>>, %arg13: memref<16x32xf32, #tpu.memory_space<vmem>>) attributes {dimension_semantics = [#tpu.dimension_semantics<parallel>, #tpu.dimension_semantics<arbitrary>], iteration_bounds = array<i64: 1, 1>, scalar_prefetch = 0 : i64, scratch_operands = 2 : i64, tpu.core_type = #tpu.core_type<tc>, window_params = [{transform_indices = @transform_0, window_bounds = array<i64: 16, 32>}, {pipeline_mode = #tpu.pipeline_mode<synchronous>, transform_indices = @transform_1, window_bounds = array<i64: 1, 32>}, {pipeline_mode = #tpu.pipeline_mode<synchronous>, transform_indices = @transform_2, window_bounds = array<i64: 1, 32>}, {transform_indices = @transform_3, window_bounds = array<i64: 32, 64>}, {transform_indices = @transform_4, window_bounds = array<i64: 1, 64>}, {transform_indices = @transform_5, window_bounds = array<i64: 32, 64>}, {transform_indices = @transform_6, window_bounds = array<i64: 1, 64>}, {transform_indices = @transform_7, window_bounds = array<i64: 64, 32>}, {pipeline_mode = #tpu.pipeline_mode<synchronous>, transform_indices = @transform_8, window_bounds = array<i64: 1, 32>}, {transform_indices = @transform_9, window_bounds = array<i64: 16, 32>}]} {
    %c0_i32 = arith.constant 0 : i32
    %0 = arith.cmpi eq, %arg1, %c0_i32 : i32
    %1 = arith.extui %0 : i1 to i32
    %c0_i32_0 = arith.constant 0 : i32
    %2 = arith.cmpi ne, %1, %c0_i32_0 : i32
    scf.if %2 {
      %c0_21 = arith.constant 0 : index
      %c0_22 = arith.constant 0 : index
      %32 = vector.load %arg2[%c0_21, %c0_22] : memref<16x32xbf16, #tpu.memory_space<vmem>>, vector<16x32xbf16>
      %33 = arith.extf %32 : vector<16x32xbf16> to vector<16x32xf32>
      %c0_23 = arith.constant 0 : index
      %c0_24 = arith.constant 0 : index
      %34 = vector.load %arg3[%c0_23, %c0_24] : memref<1x32xbf16, #tpu.memory_space<vmem>>, vector<1x32xbf16>
      %c0_25 = arith.constant 0 : index
      %c0_26 = arith.constant 0 : index
      %35 = vector.load %arg4[%c0_25, %c0_26] : memref<1x32xbf16, #tpu.memory_space<vmem>>, vector<1x32xbf16>
      %cst_27 = arith.constant dense<0.000000e+00> : vector<16xf32>
      %36 = vector.multi_reduction <add>, %33, %cst_27 [1] : vector<16x32xf32> to vector<16xf32>
      %37 = vector.shape_cast %36 : vector<16xf32> to vector<16x1xf32>
      %cst_28 = arith.constant 3.200000e+01 : f32
      %38 = vector.broadcast %cst_28 : f32 to vector<16x1xf32>
      %39 = arith.divf %37, %38 : vector<16x1xf32>
      %40 = vector.broadcast %39 : vector<16x1xf32> to vector<16x32xf32>
      %41 = arith.subf %33, %40 : vector<16x32xf32>
      %42 = arith.mulf %41, %41 : vector<16x32xf32>
      %cst_29 = arith.constant dense<0.000000e+00> : vector<16xf32>
      %43 = vector.multi_reduction <add>, %42, %cst_29 [1] : vector<16x32xf32> to vector<16xf32>
      %44 = vector.shape_cast %43 : vector<16xf32> to vector<16x1xf32>
      %cst_30 = arith.constant 3.200000e+01 : f32
      %45 = vector.broadcast %cst_30 : f32 to vector<16x1xf32>
      %46 = arith.divf %44, %45 : vector<16x1xf32>
      %cst_31 = arith.constant 9.99999974E-6 : f32
      %47 = vector.broadcast %cst_31 : f32 to vector<16x1xf32>
      %48 = arith.addf %46, %47 : vector<16x1xf32>
      %49 = math.rsqrt %48 : vector<16x1xf32>
      %50 = vector.broadcast %49 : vector<16x1xf32> to vector<16x32xf32>
      %51 = arith.mulf %41, %50 : vector<16x32xf32>
      %52 = arith.extf %34 : vector<1x32xbf16> to vector<1x32xf32>
      %53 = vector.broadcast %52 : vector<1x32xf32> to vector<16x32xf32>
      %54 = arith.mulf %51, %53 : vector<16x32xf32>
      %55 = arith.extf %35 : vector<1x32xbf16> to vector<1x32xf32>
      %56 = vector.broadcast %55 : vector<1x32xf32> to vector<16x32xf32>
      %57 = arith.addf %54, %56 : vector<16x32xf32>
      %58 = arith.truncf %57 : vector<16x32xf32> to vector<16x32xbf16>
      %c0_32 = arith.constant 0 : index
      %c0_33 = arith.constant 0 : index
      %59 = vector.load %arg12[%c0_32, %c0_33] : memref<16x32xbf16, #tpu.memory_space<vmem>>, vector<16x32xbf16>
      tpu.vector_store %arg12[%c0_32, %c0_33], %58 {strides = array<i32>} : memref<16x32xbf16, #tpu.memory_space<vmem>>, vector<16x32xbf16>,
      %cst_34 = arith.constant 0.000000e+00 : f32
      %60 = vector.broadcast %cst_34 : f32 to vector<16x32xf32>
      %c0_35 = arith.constant 0 : index
      %c0_36 = arith.constant 0 : index
      %61 = vector.load %arg13[%c0_35, %c0_36] : memref<16x32xf32, #tpu.memory_space<vmem>>, vector<16x32xf32>
      tpu.vector_store %arg13[%c0_35, %c0_36], %60 {strides = array<i32>} : memref<16x32xf32, #tpu.memory_space<vmem>>, vector<16x32xf32>,
    } else {
    }
    %c0 = arith.constant 0 : index
    %c0_1 = arith.constant 0 : index
    %3 = vector.load %arg12[%c0, %c0_1] : memref<16x32xbf16, #tpu.memory_space<vmem>>, vector<16x32xbf16>
    %c0_2 = arith.constant 0 : index
    %c0_3 = arith.constant 0 : index
    %4 = vector.load %arg5[%c0_2, %c0_3] : memref<32x64xbf16, #tpu.memory_space<vmem>>, vector<32x64xbf16>
    %cst = arith.constant dense<0.000000e+00> : vector<16x64xf32>
    %5 = tpu.matmul %3, %4, %cst {dimension_numbers = #tpu.dot_dimension_numbers<[1], [0], [0], [1], [0, 0, 1, 1], [], []>} : vector<16x32xbf16>, vector<32x64xbf16>, vector<16x64xf32> -> vector<16x64xf32>
    %c0_4 = arith.constant 0 : index
    %c0_5 = arith.constant 0 : index
    %6 = vector.load %arg6[%c0_4, %c0_5] : memref<1x64xbf16, #tpu.memory_space<vmem>>, vector<1x64xbf16>
    %7 = arith.extf %6 : vector<1x64xbf16> to vector<1x64xf32>
    %8 = vector.broadcast %7 : vector<1x64xf32> to vector<16x64xf32>
    %9 = arith.addf %5, %8 : vector<16x64xf32>
    %c0_6 = arith.constant 0 : index
    %c0_7 = arith.constant 0 : index
    %10 = vector.load %arg7[%c0_6, %c0_7] : memref<32x64xbf16, #tpu.memory_space<vmem>>, vector<32x64xbf16>
    %cst_8 = arith.constant dense<0.000000e+00> : vector<16x64xf32>
    %11 = tpu.matmul %3, %10, %cst_8 {dimension_numbers = #tpu.dot_dimension_numbers<[1], [0], [0], [1], [0, 0, 1, 1], [], []>} : vector<16x32xbf16>, vector<32x64xbf16>, vector<16x64xf32> -> vector<16x64xf32>
    %c0_9 = arith.constant 0 : index
    %c0_10 = arith.constant 0 : index
    %12 = vector.load %arg8[%c0_9, %c0_10] : memref<1x64xbf16, #tpu.memory_space<vmem>>, vector<1x64xbf16>
    %13 = arith.extf %12 : vector<1x64xbf16> to vector<1x64xf32>
    %14 = vector.broadcast %13 : vector<1x64xf32> to vector<16x64xf32>
    %15 = arith.addf %11, %14 : vector<16x64xf32>
    %16 = arith.negf %9 : vector<16x64xf32>
    %17 = math.exp %16 : vector<16x64xf32>
    %cst_11 = arith.constant 1.000000e+00 : f32
    %18 = vector.broadcast %cst_11 : f32 to vector<16x64xf32>
    %19 = arith.addf %18, %17 : vector<16x64xf32>
    %20 = arith.divf %18, %19 : vector<16x64xf32>
    %21 = arith.mulf %9, %20 : vector<16x64xf32>
    %22 = arith.mulf %21, %15 : vector<16x64xf32>
    %c0_12 = arith.constant 0 : index
    %c0_13 = arith.constant 0 : index
    %23 = vector.load %arg13[%c0_12, %c0_13] : memref<16x32xf32, #tpu.memory_space<vmem>>, vector<16x32xf32>
    %c0_14 = arith.constant 0 : index
    %c0_15 = arith.constant 0 : index
    %24 = vector.load %arg9[%c0_14, %c0_15] : memref<64x32xbf16, #tpu.memory_space<vmem>>, vector<64x32xbf16>
    %25 = arith.truncf %22 : vector<16x64xf32> to vector<16x64xbf16>
    %cst_16 = arith.constant dense<0.000000e+00> : vector<16x32xf32>
    %26 = tpu.matmul %25, %24, %cst_16 {dimension_numbers = #tpu.dot_dimension_numbers<[1], [0], [0], [1], [0, 0, 1, 1], [], []>} : vector<16x64xbf16>, vector<64x32xbf16>, vector<16x32xf32> -> vector<16x32xf32>
    %27 = arith.addf %23, %26 : vector<16x32xf32>
    %c0_17 = arith.constant 0 : index
    %c0_18 = arith.constant 0 : index
    %28 = vector.load %arg13[%c0_17, %c0_18] : memref<16x32xf32, #tpu.memory_space<vmem>>, vector<16x32xf32>
    tpu.vector_store %arg13[%c0_17, %c0_18], %27 {strides = array<i32>} : memref<16x32xf32, #tpu.memory_space<vmem>>, vector<16x32xf32>,
    %c0_i32_19 = arith.constant 0 : i32
    %29 = arith.cmpi eq, %arg1, %c0_i32_19 : i32
    %30 = arith.extui %29 : i1 to i32
    %c0_i32_20 = arith.constant 0 : i32
    %31 = arith.cmpi ne, %30, %c0_i32_20 : i32
    scf.if %31 {
      %c0_21 = arith.constant 0 : index
      %c0_22 = arith.constant 0 : index
      %32 = vector.load %arg2[%c0_21, %c0_22] : memref<16x32xbf16, #tpu.memory_space<vmem>>, vector<16x32xbf16>
      %33 = arith.extf %32 : vector<16x32xbf16> to vector<16x32xf32>
      %c0_23 = arith.constant 0 : index
      %c0_24 = arith.constant 0 : index
      %34 = vector.load %arg13[%c0_23, %c0_24] : memref<16x32xf32, #tpu.memory_space<vmem>>, vector<16x32xf32>
      %35 = arith.addf %33, %34 : vector<16x32xf32>
      %c0_25 = arith.constant 0 : index
      %c0_26 = arith.constant 0 : index
      %36 = vector.load %arg10[%c0_25, %c0_26] : memref<1x32xbf16, #tpu.memory_space<vmem>>, vector<1x32xbf16>
      %37 = arith.extf %36 : vector<1x32xbf16> to vector<1x32xf32>
      %38 = vector.broadcast %37 : vector<1x32xf32> to vector<16x32xf32>
      %39 = arith.addf %35, %38 : vector<16x32xf32>
      %40 = arith.truncf %39 : vector<16x32xf32> to vector<16x32xbf16>
      %c0_27 = arith.constant 0 : index
      %c0_28 = arith.constant 0 : index
      %41 = vector.load %arg11[%c0_27, %c0_28] : memref<16x32xbf16, #tpu.memory_space<vmem>>, vector<16x32xbf16>
      tpu.vector_store %arg11[%c0_27, %c0_28], %40 {strides = array<i32>} : memref<16x32xbf16, #tpu.memory_space<vmem>>, vector<16x32xbf16>,
    } else {
    }
    return
  }
  func.func @transform_0(%arg0: i32, %arg1: i32) -> (i32, i32) {
    %c0_i32 = arith.constant 0 : i32
    %c0_i32_0 = arith.constant 0 : i32
    return %arg0, %c0_i32 : i32, i32
  }
  func.func @transform_1(%arg0: i32, %arg1: i32) -> (i32, i32) {
    %c0_i32 = arith.constant 0 : i32
    %c0_i32_0 = arith.constant 0 : i32
    %c0_i32_1 = arith.constant 0 : i32
    return %c0_i32, %c0_i32_0 : i32, i32
  }
  func.func @transform_2(%arg0: i32, %arg1: i32) -> (i32, i32) {
    %c0_i32 = arith.constant 0 : i32
    %c0_i32_0 = arith.constant 0 : i32
    %c0_i32_1 = arith.constant 0 : i32
    return %c0_i32, %c0_i32_0 : i32, i32
  }
  func.func @transform_3(%arg0: i32, %arg1: i32) -> (i32, i32) {
    %c0_i32 = arith.constant 0 : i32
    %c0_i32_0 = arith.constant 0 : i32
    return %c0_i32, %arg1 : i32, i32
  }
  func.func @transform_4(%arg0: i32, %arg1: i32) -> (i32, i32) {
    %c0_i32 = arith.constant 0 : i32
    %c0_i32_0 = arith.constant 0 : i32
    return %c0_i32, %arg1 : i32, i32
  }
  func.func @transform_5(%arg0: i32, %arg1: i32) -> (i32, i32) {
    %c0_i32 = arith.constant 0 : i32
    %c0_i32_0 = arith.constant 0 : i32
    return %c0_i32, %arg1 : i32, i32
  }
  func.func @transform_6(%arg0: i32, %arg1: i32) -> (i32, i32) {
    %c0_i32 = arith.constant 0 : i32
    %c0_i32_0 = arith.constant 0 : i32
    return %c0_i32, %arg1 : i32, i32
  }
  func.func @transform_7(%arg0: i32, %arg1: i32) -> (i32, i32) {
    %c0_i32 = arith.constant 0 : i32
    %c0_i32_0 = arith.constant 0 : i32
    return %arg1, %c0_i32 : i32, i32
  }
  func.func @transform_8(%arg0: i32, %arg1: i32) -> (i32, i32) {
    %c0_i32 = arith.constant 0 : i32
    %c0_i32_0 = arith.constant 0 : i32
    %c0_i32_1 = arith.constant 0 : i32
    return %c0_i32, %c0_i32_0 : i32, i32
  }
  func.func @transform_9(%arg0: i32, %arg1: i32) -> (i32, i32) {
    %c0_i32 = arith.constant 0 : i32
    %c0_i32_0 = arith.constant 0 : i32
    return %arg0, %c0_i32 : i32, i32
  }
}

module attributes {stable_mosaic.version = 11 : i64} {
  func.func @_input_proj_kernel(%arg0: i32, %arg1: memref<1x8x16xf32, #tpu.memory_space<vmem>>, %arg2: memref<16x32xbf16, #tpu.memory_space<vmem>>, %arg3: memref<1x32xbf16, #tpu.memory_space<vmem>>, %arg4: memref<8x32xbf16, #tpu.memory_space<vmem>>, %arg5: memref<1x8x32xbf16, #tpu.memory_space<vmem>>) attributes {dimension_semantics = [#tpu.dimension_semantics<parallel>], iteration_bounds = array<i64: 2>, scalar_prefetch = 0 : i64, scratch_operands = 0 : i64, tpu.core_type = #tpu.core_type<tc>, window_params = [{transform_indices = @transform_0, window_bounds = array<i64: 1, 8, 16>}, {pipeline_mode = #tpu.pipeline_mode<synchronous>, transform_indices = @transform_1, window_bounds = array<i64: 16, 32>}, {pipeline_mode = #tpu.pipeline_mode<synchronous>, transform_indices = @transform_2, window_bounds = array<i64: 1, 32>}, {pipeline_mode = #tpu.pipeline_mode<synchronous>, transform_indices = @transform_3, window_bounds = array<i64: 8, 32>}, {transform_indices = @transform_4, window_bounds = array<i64: 1, 8, 32>}]} {
    %c0 = arith.constant 0 : index
    %c0_0 = arith.constant 0 : index
    %c0_1 = arith.constant 0 : index
    %0 = vector.load %arg1[%c0, %c0_0, %c0_1] : memref<1x8x16xf32, #tpu.memory_space<vmem>>, vector<1x8x16xf32>
    %1 = vector.shape_cast %0 : vector<1x8x16xf32> to vector<8x16xf32>
    %c0_2 = arith.constant 0 : index
    %c0_3 = arith.constant 0 : index
    %2 = vector.load %arg2[%c0_2, %c0_3] : memref<16x32xbf16, #tpu.memory_space<vmem>>, vector<16x32xbf16>
    %3 = arith.truncf %1 : vector<8x16xf32> to vector<8x16xbf16>
    %cst = arith.constant dense<0.000000e+00> : vector<8x32xf32>
    %4 = tpu.matmul %3, %2, %cst {dimension_numbers = #tpu.dot_dimension_numbers<[1], [0], [0], [1], [0, 0, 1, 1], [], []>} : vector<8x16xbf16>, vector<16x32xbf16>, vector<8x32xf32> -> vector<8x32xf32>
    %c0_4 = arith.constant 0 : index
    %c0_5 = arith.constant 0 : index
    %5 = vector.load %arg3[%c0_4, %c0_5] : memref<1x32xbf16, #tpu.memory_space<vmem>>, vector<1x32xbf16>
    %6 = arith.extf %5 : vector<1x32xbf16> to vector<1x32xf32>
    %7 = vector.broadcast %6 : vector<1x32xf32> to vector<8x32xf32>
    %8 = arith.addf %4, %7 : vector<8x32xf32>
    %c0_6 = arith.constant 0 : index
    %c0_7 = arith.constant 0 : index
    %9 = vector.load %arg4[%c0_6, %c0_7] : memref<8x32xbf16, #tpu.memory_space<vmem>>, vector<8x32xbf16>
    %10 = arith.extf %9 : vector<8x32xbf16> to vector<8x32xf32>
    %cst_8 = arith.constant 1.000000e+00 : f32
    %11 = vector.broadcast %cst_8 : f32 to vector<8x32xf32>
    %12 = arith.mulf %10, %11 : vector<8x32xf32>
    %13 = arith.addf %8, %12 : vector<8x32xf32>
    %14 = arith.truncf %13 : vector<8x32xf32> to vector<8x32xbf16>
    %c0_9 = arith.constant 0 : index
    %c0_10 = arith.constant 0 : index
    %c0_11 = arith.constant 0 : index
    %15 = vector.load %arg5[%c0_9, %c0_10, %c0_11] : memref<1x8x32xbf16, #tpu.memory_space<vmem>>, vector<1x8x32xbf16>
    %16 = vector.shape_cast %15 : vector<1x8x32xbf16> to vector<8x32xbf16>
    %17 = vector.shape_cast %14 : vector<8x32xbf16> to vector<1x8x32xbf16>
    tpu.vector_store %arg5[%c0_9, %c0_10, %c0_11], %17 {strides = array<i32>} : memref<1x8x32xbf16, #tpu.memory_space<vmem>>, vector<1x8x32xbf16>,
    return
  }
  func.func @transform_0(%arg0: i32) -> (i32, i32, i32) {
    %c0_i32 = arith.constant 0 : i32
    %c0_i32_0 = arith.constant 0 : i32
    %c0_i32_1 = arith.constant 0 : i32
    return %arg0, %c0_i32, %c0_i32_0 : i32, i32, i32
  }
  func.func @transform_1(%arg0: i32) -> (i32, i32) {
    %c0_i32 = arith.constant 0 : i32
    %c0_i32_0 = arith.constant 0 : i32
    %c0_i32_1 = arith.constant 0 : i32
    return %c0_i32, %c0_i32_0 : i32, i32
  }
  func.func @transform_2(%arg0: i32) -> (i32, i32) {
    %c0_i32 = arith.constant 0 : i32
    %c0_i32_0 = arith.constant 0 : i32
    %c0_i32_1 = arith.constant 0 : i32
    return %c0_i32, %c0_i32_0 : i32, i32
  }
  func.func @transform_3(%arg0: i32) -> (i32, i32) {
    %c0_i32 = arith.constant 0 : i32
    %c0_i32_0 = arith.constant 0 : i32
    %c0_i32_1 = arith.constant 0 : i32
    return %c0_i32, %c0_i32_0 : i32, i32
  }
  func.func @transform_4(%arg0: i32) -> (i32, i32, i32) {
    %c0_i32 = arith.constant 0 : i32
    %c0_i32_0 = arith.constant 0 : i32
    %c0_i32_1 = arith.constant 0 : i32
    return %arg0, %c0_i32, %c0_i32_0 : i32, i32, i32
  }
}

module attributes {stable_mosaic.version = 11 : i64} {
  func.func @_cross_attn_block_kernel(%arg0: i32, %arg1: i32, %arg2: memref<1x8x32xbf16, #tpu.memory_space<vmem>>, %arg3: memref<1x8x32xbf16, #tpu.memory_space<vmem>>, %arg4: memref<1x32xbf16, #tpu.memory_space<vmem>>, %arg5: memref<1x32xbf16, #tpu.memory_space<vmem>>, %arg6: memref<32x32xbf16, #tpu.memory_space<vmem>>, %arg7: memref<1x32xbf16, #tpu.memory_space<vmem>>, %arg8: memref<32x32xbf16, #tpu.memory_space<vmem>>, %arg9: memref<1x32xbf16, #tpu.memory_space<vmem>>, %arg10: memref<32x32xbf16, #tpu.memory_space<vmem>>, %arg11: memref<1x32xbf16, #tpu.memory_space<vmem>>, %arg12: memref<32x32xbf16, #tpu.memory_space<vmem>>, %arg13: memref<1x32xbf16, #tpu.memory_space<vmem>>, %arg14: memref<1x8x32xbf16, #tpu.memory_space<vmem>>, %arg15: memref<4x8x8xbf16, #tpu.memory_space<vmem>>, %arg16: memref<4x8x8xbf16, #tpu.memory_space<vmem>>) attributes {dimension_semantics = [#tpu.dimension_semantics<parallel>, #tpu.dimension_semantics<arbitrary>], iteration_bounds = array<i64: 2, 1>, scalar_prefetch = 0 : i64, scratch_operands = 2 : i64, tpu.core_type = #tpu.core_type<tc>, window_params = [{transform_indices = @transform_0, window_bounds = array<i64: 1, 8, 32>}, {transform_indices = @transform_1, window_bounds = array<i64: 1, 8, 32>}, {pipeline_mode = #tpu.pipeline_mode<synchronous>, transform_indices = @transform_2, window_bounds = array<i64: 1, 32>}, {pipeline_mode = #tpu.pipeline_mode<synchronous>, transform_indices = @transform_3, window_bounds = array<i64: 1, 32>}, {pipeline_mode = #tpu.pipeline_mode<synchronous>, transform_indices = @transform_4, window_bounds = array<i64: 32, 32>}, {pipeline_mode = #tpu.pipeline_mode<synchronous>, transform_indices = @transform_5, window_bounds = array<i64: 1, 32>}, {pipeline_mode = #tpu.pipeline_mode<synchronous>, transform_indices = @transform_6, window_bounds = array<i64: 32, 32>}, {pipeline_mode = #tpu.pipeline_mode<synchronous>, transform_indices = @transform_7, window_bounds = array<i64: 1, 32>}, {pipeline_mode = #tpu.pipeline_mode<synchronous>, transform_indices = @transform_8, window_bounds = array<i64: 32, 32>}, {pipeline_mode = #tpu.pipeline_mode<synchronous>, transform_indices = @transform_9, window_bounds = array<i64: 1, 32>}, {pipeline_mode = #tpu.pipeline_mode<synchronous>, transform_indices = @transform_10, window_bounds = array<i64: 32, 32>}, {pipeline_mode = #tpu.pipeline_mode<synchronous>, transform_indices = @transform_11, window_bounds = array<i64: 1, 32>}, {transform_indices = @transform_12, window_bounds = array<i64: 1, 8, 32>}]} {
    %c0_i32 = arith.constant 0 : i32
    %0 = arith.cmpi eq, %arg1, %c0_i32 : i32
    %1 = arith.extui %0 : i1 to i32
    %c0_i32_0 = arith.constant 0 : i32
    %2 = arith.cmpi ne, %1, %c0_i32_0 : i32
    scf.if %2 {
      %c0_35 = arith.constant 0 : index
      %c0_36 = arith.constant 0 : index
      %c0_37 = arith.constant 0 : index
      %71 = vector.load %arg3[%c0_35, %c0_36, %c0_37] : memref<1x8x32xbf16, #tpu.memory_space<vmem>>, vector<1x8x32xbf16>
      %72 = vector.shape_cast %71 : vector<1x8x32xbf16> to vector<8x32xbf16>
      %c0_38 = arith.constant 0 : index
      %c0_39 = arith.constant 0 : index
      %73 = vector.load %arg8[%c0_38, %c0_39] : memref<32x32xbf16, #tpu.memory_space<vmem>>, vector<32x32xbf16>
      %cst_40 = arith.constant dense<0.000000e+00> : vector<8x32xf32>
      %74 = tpu.matmul %72, %73, %cst_40 {dimension_numbers = #tpu.dot_dimension_numbers<[1], [0], [0], [1], [0, 0, 1, 1], [], []>} : vector<8x32xbf16>, vector<32x32xbf16>, vector<8x32xf32> -> vector<8x32xf32>
      %c0_41 = arith.constant 0 : index
      %c0_42 = arith.constant 0 : index
      %75 = vector.load %arg9[%c0_41, %c0_42] : memref<1x32xbf16, #tpu.memory_space<vmem>>, vector<1x32xbf16>
      %76 = arith.extf %75 : vector<1x32xbf16> to vector<1x32xf32>
      %77 = vector.broadcast %76 : vector<1x32xf32> to vector<8x32xf32>
      %78 = arith.addf %74, %77 : vector<8x32xf32>
      %c0_43 = arith.constant 0 : index
      %c0_44 = arith.constant 0 : index
      %79 = vector.load %arg10[%c0_43, %c0_44] : memref<32x32xbf16, #tpu.memory_space<vmem>>, vector<32x32xbf16>
      %cst_45 = arith.constant dense<0.000000e+00> : vector<8x32xf32>
      %80 = tpu.matmul %72, %79, %cst_45 {dimension_numbers = #tpu.dot_dimension_numbers<[1], [0], [0], [1], [0, 0, 1, 1], [], []>} : vector<8x32xbf16>, vector<32x32xbf16>, vector<8x32xf32> -> vector<8x32xf32>
      %c0_46 = arith.constant 0 : index
      %c0_47 = arith.constant 0 : index
      %81 = vector.load %arg11[%c0_46, %c0_47] : memref<1x32xbf16, #tpu.memory_space<vmem>>, vector<1x32xbf16>
      %82 = arith.extf %81 : vector<1x32xbf16> to vector<1x32xf32>
      %83 = vector.broadcast %82 : vector<1x32xf32> to vector<8x32xf32>
      %84 = arith.addf %80, %83 : vector<8x32xf32>
      %85 = vector.shape_cast %78 : vector<8x32xf32> to vector<8x4x8xf32>
      %86 = tpu.transpose %85, [1, 0, 2] : vector<8x4x8xf32> -> vector<4x8x8xf32>
      %87 = arith.truncf %86 : vector<4x8x8xf32> to vector<4x8x8xbf16>
      %c0_48 = arith.constant 0 : index
      %c0_49 = arith.constant 0 : index
      %c0_50 = arith.constant 0 : index
      %88 = vector.load %arg15[%c0_48, %c0_49, %c0_50] : memref<4x8x8xbf16, #tpu.memory_space<vmem>>, vector<4x8x8xbf16>
      tpu.vector_store %arg15[%c0_48, %c0_49, %c0_50], %87 {strides = array<i32>} : memref<4x8x8xbf16, #tpu.memory_space<vmem>>, vector<4x8x8xbf16>,
      %89 = vector.shape_cast %84 : vector<8x32xf32> to vector<8x4x8xf32>
      %90 = tpu.transpose %89, [1, 0, 2] : vector<8x4x8xf32> -> vector<4x8x8xf32>
      %91 = arith.truncf %90 : vector<4x8x8xf32> to vector<4x8x8xbf16>
      %c0_51 = arith.constant 0 : index
      %c0_52 = arith.constant 0 : index
      %c0_53 = arith.constant 0 : index
      %92 = vector.load %arg16[%c0_51, %c0_52, %c0_53] : memref<4x8x8xbf16, #tpu.memory_space<vmem>>, vector<4x8x8xbf16>
      tpu.vector_store %arg16[%c0_51, %c0_52, %c0_53], %91 {strides = array<i32>} : memref<4x8x8xbf16, #tpu.memory_space<vmem>>, vector<4x8x8xbf16>,
    } else {
    }
    %c0 = arith.constant 0 : index
    %c0_1 = arith.constant 0 : index
    %c0_2 = arith.constant 0 : index
    %3 = vector.load %arg2[%c0, %c0_1, %c0_2] : memref<1x8x32xbf16, #tpu.memory_space<vmem>>, vector<1x8x32xbf16>
    %4 = vector.shape_cast %3 : vector<1x8x32xbf16> to vector<8x32xbf16>
    %5 = arith.extf %4 : vector<8x32xbf16> to vector<8x32xf32>
    %c0_3 = arith.constant 0 : index
    %c0_4 = arith.constant 0 : index
    %6 = vector.load %arg4[%c0_3, %c0_4] : memref<1x32xbf16, #tpu.memory_space<vmem>>, vector<1x32xbf16>
    %c0_5 = arith.constant 0 : index
    %c0_6 = arith.constant 0 : index
    %7 = vector.load %arg5[%c0_5, %c0_6] : memref<1x32xbf16, #tpu.memory_space<vmem>>, vector<1x32xbf16>
    %cst = arith.constant dense<0.000000e+00> : vector<8xf32>
    %8 = vector.multi_reduction <add>, %5, %cst [1] : vector<8x32xf32> to vector<8xf32>
    %9 = vector.shape_cast %8 : vector<8xf32> to vector<8x1xf32>
    %cst_7 = arith.constant 3.200000e+01 : f32
    %10 = vector.broadcast %cst_7 : f32 to vector<8x1xf32>
    %11 = arith.divf %9, %10 : vector<8x1xf32>
    %12 = vector.broadcast %11 : vector<8x1xf32> to vector<8x32xf32>
    %13 = arith.subf %5, %12 : vector<8x32xf32>
    %14 = arith.mulf %13, %13 : vector<8x32xf32>
    %cst_8 = arith.constant dense<0.000000e+00> : vector<8xf32>
    %15 = vector.multi_reduction <add>, %14, %cst_8 [1] : vector<8x32xf32> to vector<8xf32>
    %16 = vector.shape_cast %15 : vector<8xf32> to vector<8x1xf32>
    %cst_9 = arith.constant 3.200000e+01 : f32
    %17 = vector.broadcast %cst_9 : f32 to vector<8x1xf32>
    %18 = arith.divf %16, %17 : vector<8x1xf32>
    %cst_10 = arith.constant 9.99999974E-6 : f32
    %19 = vector.broadcast %cst_10 : f32 to vector<8x1xf32>
    %20 = arith.addf %18, %19 : vector<8x1xf32>
    %21 = math.rsqrt %20 : vector<8x1xf32>
    %22 = vector.broadcast %21 : vector<8x1xf32> to vector<8x32xf32>
    %23 = arith.mulf %13, %22 : vector<8x32xf32>
    %24 = arith.extf %6 : vector<1x32xbf16> to vector<1x32xf32>
    %25 = vector.broadcast %24 : vector<1x32xf32> to vector<8x32xf32>
    %26 = arith.mulf %23, %25 : vector<8x32xf32>
    %27 = arith.extf %7 : vector<1x32xbf16> to vector<1x32xf32>
    %28 = vector.broadcast %27 : vector<1x32xf32> to vector<8x32xf32>
    %29 = arith.addf %26, %28 : vector<8x32xf32>
    %c0_11 = arith.constant 0 : index
    %c0_12 = arith.constant 0 : index
    %30 = vector.load %arg6[%c0_11, %c0_12] : memref<32x32xbf16, #tpu.memory_space<vmem>>, vector<32x32xbf16>
    %c0_13 = arith.constant 0 : index
    %c0_14 = arith.constant 0 : index
    %31 = vector.load %arg7[%c0_13, %c0_14] : memref<1x32xbf16, #tpu.memory_space<vmem>>, vector<1x32xbf16>
    %c0_15 = arith.constant 0 : index
    %c0_16 = arith.constant 0 : index
    %32 = vector.load %arg12[%c0_15, %c0_16] : memref<32x32xbf16, #tpu.memory_space<vmem>>, vector<32x32xbf16>
    %c0_17 = arith.constant 0 : index
    %c0_18 = arith.constant 0 : index
    %33 = vector.load %arg13[%c0_17, %c0_18] : memref<1x32xbf16, #tpu.memory_space<vmem>>, vector<1x32xbf16>
    %34 = arith.truncf %29 : vector<8x32xf32> to vector<8x32xbf16>
    %cst_19 = arith.constant dense<0.000000e+00> : vector<8x32xf32>
    %35 = tpu.matmul %34, %30, %cst_19 {dimension_numbers = #tpu.dot_dimension_numbers<[1], [0], [0], [1], [0, 0, 1, 1], [], []>} : vector<8x32xbf16>, vector<32x32xbf16>, vector<8x32xf32> -> vector<8x32xf32>
    %36 = arith.extf %31 : vector<1x32xbf16> to vector<1x32xf32>
    %37 = vector.broadcast %36 : vector<1x32xf32> to vector<8x32xf32>
    %38 = arith.addf %35, %37 : vector<8x32xf32>
    %cst_20 = arith.constant 0.353553385 : f32
    %39 = vector.broadcast %cst_20 : f32 to vector<8x32xf32>
    %40 = arith.mulf %38, %39 : vector<8x32xf32>
    %41 = vector.shape_cast %40 : vector<8x32xf32> to vector<8x4x8xf32>
    %42 = tpu.transpose %41, [1, 0, 2] : vector<8x4x8xf32> -> vector<4x8x8xf32>
    %43 = arith.truncf %42 : vector<4x8x8xf32> to vector<4x8x8xbf16>
    %c0_21 = arith.constant 0 : index
    %c0_22 = arith.constant 0 : index
    %c0_23 = arith.constant 0 : index
    %44 = vector.load %arg15[%c0_21, %c0_22, %c0_23] : memref<4x8x8xbf16, #tpu.memory_space<vmem>>, vector<4x8x8xbf16>
    "tpu.trace_start"() <{level = 10 : i32, message = "hqd,hkd->hqk"}> : () -> ()
    %cst_24 = arith.constant dense<0.000000e+00> : vector<4x8x8xf32>
    %45 = tpu.matmul %43, %44, %cst_24 {dimension_numbers = #tpu.dot_dimension_numbers<[2], [2], [1], [1], [0, 0, 0, 1, 1, 1], [0], [0]>} : vector<4x8x8xbf16>, vector<4x8x8xbf16>, vector<4x8x8xf32> -> vector<4x8x8xf32>
    "tpu.trace_stop"() : () -> ()
    %cst_25 = arith.constant dense<0xFF800000> : vector<4x8xf32>
    %46 = vector.multi_reduction <maximumf>, %45, %cst_25 [2] : vector<4x8x8xf32> to vector<4x8xf32>
    %47 = vector.shape_cast %46 : vector<4x8xf32> to vector<4x8x1xf32>
    %48 = vector.broadcast %47 : vector<4x8x1xf32> to vector<4x8x8xf32>
    %49 = arith.subf %45, %48 : vector<4x8x8xf32>
    %50 = math.exp %49 : vector<4x8x8xf32>
    %cst_26 = arith.constant dense<0.000000e+00> : vector<4x8xf32>
    %51 = vector.multi_reduction <add>, %50, %cst_26 [2] : vector<4x8x8xf32> to vector<4x8xf32>
    %52 = vector.shape_cast %51 : vector<4x8xf32> to vector<4x8x1xf32>
    %53 = tpu.reciprocal %52 {approx = true} : vector<4x8x1xf32> -> vector<4x8x1xf32>
    %54 = vector.broadcast %53 : vector<4x8x1xf32> to vector<4x8x8xf32>
    %55 = arith.mulf %50, %54 : vector<4x8x8xf32>
    %56 = arith.truncf %55 : vector<4x8x8xf32> to vector<4x8x8xbf16>
    %c0_27 = arith.constant 0 : index
    %c0_28 = arith.constant 0 : index
    %c0_29 = arith.constant 0 : index
    %57 = vector.load %arg16[%c0_27, %c0_28, %c0_29] : memref<4x8x8xbf16, #tpu.memory_space<vmem>>, vector<4x8x8xbf16>
    "tpu.trace_start"() <{level = 10 : i32, message = "hqk,hkd->hqd"}> : () -> ()
    %cst_30 = arith.constant dense<0.000000e+00> : vector<4x8x8xf32>
    %58 = tpu.matmul %56, %57, %cst_30 {dimension_numbers = #tpu.dot_dimension_numbers<[2], [1], [1], [2], [0, 0, 0, 1, 1, 2], [0], [0]>} : vector<4x8x8xbf16>, vector<4x8x8xbf16>, vector<4x8x8xf32> -> vector<4x8x8xf32>
    "tpu.trace_stop"() : () -> ()
    %59 = tpu.transpose %58, [1, 0, 2] : vector<4x8x8xf32> -> vector<8x4x8xf32>
    %60 = vector.shape_cast %59 : vector<8x4x8xf32> to vector<8x32xf32>
    %61 = arith.truncf %60 : vector<8x32xf32> to vector<8x32xbf16>
    %cst_31 = arith.constant dense<0.000000e+00> : vector<8x32xf32>
    %62 = tpu.matmul %61, %32, %cst_31 {dimension_numbers = #tpu.dot_dimension_numbers<[1], [0], [0], [1], [0, 0, 1, 1], [], []>} : vector<8x32xbf16>, vector<32x32xbf16>, vector<8x32xf32> -> vector<8x32xf32>
    %63 = arith.extf %33 : vector<1x32xbf16> to vector<1x32xf32>
    %64 = vector.broadcast %63 : vector<1x32xf32> to vector<8x32xf32>
    %65 = arith.addf %62, %64 : vector<8x32xf32>
    %66 = arith.addf %5, %65 : vector<8x32xf32>
    %67 = arith.truncf %66 : vector<8x32xf32> to vector<8x32xbf16>
    %c0_32 = arith.constant 0 : index
    %c0_33 = arith.constant 0 : index
    %c0_34 = arith.constant 0 : index
    %68 = vector.load %arg14[%c0_32, %c0_33, %c0_34] : memref<1x8x32xbf16, #tpu.memory_space<vmem>>, vector<1x8x32xbf16>
    %69 = vector.shape_cast %68 : vector<1x8x32xbf16> to vector<8x32xbf16>
    %70 = vector.shape_cast %67 : vector<8x32xbf16> to vector<1x8x32xbf16>
    tpu.vector_store %arg14[%c0_32, %c0_33, %c0_34], %70 {strides = array<i32>} : memref<1x8x32xbf16, #tpu.memory_space<vmem>>, vector<1x8x32xbf16>,
    return
  }
  func.func @transform_0(%arg0: i32, %arg1: i32) -> (i32, i32, i32) {
    %c0_i32 = arith.constant 0 : i32
    %c0_i32_0 = arith.constant 0 : i32
    return %arg0, %arg1, %c0_i32 : i32, i32, i32
  }
  func.func @transform_1(%arg0: i32, %arg1: i32) -> (i32, i32, i32) {
    %c0_i32 = arith.constant 0 : i32
    %c0_i32_0 = arith.constant 0 : i32
    %c0_i32_1 = arith.constant 0 : i32
    return %arg0, %c0_i32, %c0_i32_0 : i32, i32, i32
  }
  func.func @transform_2(%arg0: i32, %arg1: i32) -> (i32, i32) {
    %c0_i32 = arith.constant 0 : i32
    %c0_i32_0 = arith.constant 0 : i32
    %c0_i32_1 = arith.constant 0 : i32
    return %c0_i32, %c0_i32_0 : i32, i32
  }
  func.func @transform_3(%arg0: i32, %arg1: i32) -> (i32, i32) {
    %c0_i32 = arith.constant 0 : i32
    %c0_i32_0 = arith.constant 0 : i32
    %c0_i32_1 = arith.constant 0 : i32
    return %c0_i32, %c0_i32_0 : i32, i32
  }
  func.func @transform_4(%arg0: i32, %arg1: i32) -> (i32, i32) {
    %c0_i32 = arith.constant 0 : i32
    %c0_i32_0 = arith.constant 0 : i32
    %c0_i32_1 = arith.constant 0 : i32
    return %c0_i32, %c0_i32_0 : i32, i32
  }
  func.func @transform_5(%arg0: i32, %arg1: i32) -> (i32, i32) {
    %c0_i32 = arith.constant 0 : i32
    %c0_i32_0 = arith.constant 0 : i32
    %c0_i32_1 = arith.constant 0 : i32
    return %c0_i32, %c0_i32_0 : i32, i32
  }
  func.func @transform_6(%arg0: i32, %arg1: i32) -> (i32, i32) {
    %c0_i32 = arith.constant 0 : i32
    %c0_i32_0 = arith.constant 0 : i32
    %c0_i32_1 = arith.constant 0 : i32
    return %c0_i32, %c0_i32_0 : i32, i32
  }
  func.func @transform_7(%arg0: i32, %arg1: i32) -> (i32, i32) {
    %c0_i32 = arith.constant 0 : i32
    %c0_i32_0 = arith.constant 0 : i32
    %c0_i32_1 = arith.constant 0 : i32
    return %c0_i32, %c0_i32_0 : i32, i32
  }
  func.func @transform_8(%arg0: i32, %arg1: i32) -> (i32, i32) {
    %c0_i32 = arith.constant 0 : i32
    %c0_i32_0 = arith.constant 0 : i32
    %c0_i32_1 = arith.constant 0 : i32
    return %c0_i32, %c0_i32_0 : i32, i32
  }
  func.func @transform_9(%arg0: i32, %arg1: i32) -> (i32, i32) {
    %c0_i32 = arith.constant 0 : i32
    %c0_i32_0 = arith.constant 0 : i32
    %c0_i32_1 = arith.constant 0 : i32
    return %c0_i32, %c0_i32_0 : i32, i32
  }
  func.func @transform_10(%arg0: i32, %arg1: i32) -> (i32, i32) {
    %c0_i32 = arith.constant 0 : i32
    %c0_i32_0 = arith.constant 0 : i32
    %c0_i32_1 = arith.constant 0 : i32
    return %c0_i32, %c0_i32_0 : i32, i32
  }
  func.func @transform_11(%arg0: i32, %arg1: i32) -> (i32, i32) {
    %c0_i32 = arith.constant 0 : i32
    %c0_i32_0 = arith.constant 0 : i32
    %c0_i32_1 = arith.constant 0 : i32
    return %c0_i32, %c0_i32_0 : i32, i32
  }
  func.func @transform_12(%arg0: i32, %arg1: i32) -> (i32, i32, i32) {
    %c0_i32 = arith.constant 0 : i32
    %c0_i32_0 = arith.constant 0 : i32
    return %arg0, %arg1, %c0_i32 : i32, i32, i32
  }
}

module attributes {stable_mosaic.version = 11 : i64} {
  func.func @_final_head_kernel(%arg0: i32, %arg1: memref<16x32xbf16, #tpu.memory_space<vmem>>, %arg2: memref<1x32xbf16, #tpu.memory_space<vmem>>, %arg3: memref<1x32xbf16, #tpu.memory_space<vmem>>, %arg4: memref<32x128xbf16, #tpu.memory_space<vmem>>, %arg5: memref<1x128xbf16, #tpu.memory_space<vmem>>, %arg6: memref<16x128xf32, #tpu.memory_space<vmem>>) attributes {dimension_semantics = [#tpu.dimension_semantics<parallel>], iteration_bounds = array<i64: 1>, scalar_prefetch = 0 : i64, scratch_operands = 0 : i64, tpu.core_type = #tpu.core_type<tc>, window_params = [{transform_indices = @transform_0, window_bounds = array<i64: 16, 32>}, {pipeline_mode = #tpu.pipeline_mode<synchronous>, transform_indices = @transform_1, window_bounds = array<i64: 1, 32>}, {pipeline_mode = #tpu.pipeline_mode<synchronous>, transform_indices = @transform_2, window_bounds = array<i64: 1, 32>}, {pipeline_mode = #tpu.pipeline_mode<synchronous>, transform_indices = @transform_3, window_bounds = array<i64: 32, 128>}, {pipeline_mode = #tpu.pipeline_mode<synchronous>, transform_indices = @transform_4, window_bounds = array<i64: 1, 128>}, {transform_indices = @transform_5, window_bounds = array<i64: 16, 128>}]} {
    %c0 = arith.constant 0 : index
    %c0_0 = arith.constant 0 : index
    %0 = vector.load %arg1[%c0, %c0_0] : memref<16x32xbf16, #tpu.memory_space<vmem>>, vector<16x32xbf16>
    %1 = arith.extf %0 : vector<16x32xbf16> to vector<16x32xf32>
    %c0_1 = arith.constant 0 : index
    %c0_2 = arith.constant 0 : index
    %2 = vector.load %arg2[%c0_1, %c0_2] : memref<1x32xbf16, #tpu.memory_space<vmem>>, vector<1x32xbf16>
    %c0_3 = arith.constant 0 : index
    %c0_4 = arith.constant 0 : index
    %3 = vector.load %arg3[%c0_3, %c0_4] : memref<1x32xbf16, #tpu.memory_space<vmem>>, vector<1x32xbf16>
    %cst = arith.constant dense<0.000000e+00> : vector<16xf32>
    %4 = vector.multi_reduction <add>, %1, %cst [1] : vector<16x32xf32> to vector<16xf32>
    %5 = vector.shape_cast %4 : vector<16xf32> to vector<16x1xf32>
    %cst_5 = arith.constant 3.200000e+01 : f32
    %6 = vector.broadcast %cst_5 : f32 to vector<16x1xf32>
    %7 = arith.divf %5, %6 : vector<16x1xf32>
    %8 = vector.broadcast %7 : vector<16x1xf32> to vector<16x32xf32>
    %9 = arith.subf %1, %8 : vector<16x32xf32>
    %10 = arith.mulf %9, %9 : vector<16x32xf32>
    %cst_6 = arith.constant dense<0.000000e+00> : vector<16xf32>
    %11 = vector.multi_reduction <add>, %10, %cst_6 [1] : vector<16x32xf32> to vector<16xf32>
    %12 = vector.shape_cast %11 : vector<16xf32> to vector<16x1xf32>
    %cst_7 = arith.constant 3.200000e+01 : f32
    %13 = vector.broadcast %cst_7 : f32 to vector<16x1xf32>
    %14 = arith.divf %12, %13 : vector<16x1xf32>
    %cst_8 = arith.constant 9.99999974E-6 : f32
    %15 = vector.broadcast %cst_8 : f32 to vector<16x1xf32>
    %16 = arith.addf %14, %15 : vector<16x1xf32>
    %17 = math.rsqrt %16 : vector<16x1xf32>
    %18 = vector.broadcast %17 : vector<16x1xf32> to vector<16x32xf32>
    %19 = arith.mulf %9, %18 : vector<16x32xf32>
    %20 = arith.extf %2 : vector<1x32xbf16> to vector<1x32xf32>
    %21 = vector.broadcast %20 : vector<1x32xf32> to vector<16x32xf32>
    %22 = arith.mulf %19, %21 : vector<16x32xf32>
    %23 = arith.extf %3 : vector<1x32xbf16> to vector<1x32xf32>
    %24 = vector.broadcast %23 : vector<1x32xf32> to vector<16x32xf32>
    %25 = arith.addf %22, %24 : vector<16x32xf32>
    %c0_9 = arith.constant 0 : index
    %c0_10 = arith.constant 0 : index
    %26 = vector.load %arg4[%c0_9, %c0_10] : memref<32x128xbf16, #tpu.memory_space<vmem>>, vector<32x128xbf16>
    %27 = arith.truncf %25 : vector<16x32xf32> to vector<16x32xbf16>
    %cst_11 = arith.constant dense<0.000000e+00> : vector<16x128xf32>
    %28 = tpu.matmul %27, %26, %cst_11 {dimension_numbers = #tpu.dot_dimension_numbers<[1], [0], [0], [1], [0, 0, 1, 1], [], []>} : vector<16x32xbf16>, vector<32x128xbf16>, vector<16x128xf32> -> vector<16x128xf32>
    %c0_12 = arith.constant 0 : index
    %c0_13 = arith.constant 0 : index
    %29 = vector.load %arg5[%c0_12, %c0_13] : memref<1x128xbf16, #tpu.memory_space<vmem>>, vector<1x128xbf16>
    %30 = arith.extf %29 : vector<1x128xbf16> to vector<1x128xf32>
    %31 = vector.broadcast %30 : vector<1x128xf32> to vector<16x128xf32>
    %32 = arith.addf %28, %31 : vector<16x128xf32>
    %c0_14 = arith.constant 0 : index
    %c0_15 = arith.constant 0 : index
    %33 = vector.load %arg6[%c0_14, %c0_15] : memref<16x128xf32, #tpu.memory_space<vmem>>, vector<16x128xf32>
    tpu.vector_store %arg6[%c0_14, %c0_15], %32 {strides = array<i32>} : memref<16x128xf32, #tpu.memory_space<vmem>>, vector<16x128xf32>,
    return
  }
  func.func @transform_0(%arg0: i32) -> (i32, i32) {
    %c0_i32 = arith.constant 0 : i32
    %c0_i32_0 = arith.constant 0 : i32
    return %arg0, %c0_i32 : i32, i32
  }
  func.func @transform_1(%arg0: i32) -> (i32, i32) {
    %c0_i32 = arith.constant 0 : i32
    %c0_i32_0 = arith.constant 0 : i32
    %c0_i32_1 = arith.constant 0 : i32
    return %c0_i32, %c0_i32_0 : i32, i32
  }
  func.func @transform_2(%arg0: i32) -> (i32, i32) {
    %c0_i32 = arith.constant 0 : i32
    %c0_i32_0 = arith.constant 0 : i32
    %c0_i32_1 = arith.constant 0 : i32
    return %c0_i32, %c0_i32_0 : i32, i32
  }
  func.func @transform_3(%arg0: i32) -> (i32, i32) {
    %c0_i32 = arith.constant 0 : i32
    %c0_i32_0 = arith.constant 0 : i32
    %c0_i32_1 = arith.constant 0 : i32
    return %c0_i32, %c0_i32_0 : i32, i32
  }
  func.func @transform_4(%arg0: i32) -> (i32, i32) {
    %c0_i32 = arith.constant 0 : i32
    %c0_i32_0 = arith.constant 0 : i32
    %c0_i32_1 = arith.constant 0 : i32
    return %c0_i32, %c0_i32_0 : i32, i32
  }
  func.func @transform_5(%arg0: i32) -> (i32, i32) {
    %c0_i32 = arith.constant 0 : i32
    %c0_i32_0 = arith.constant 0 : i32
    return %arg0, %c0_i32 : i32, i32
  }
}

</mosaic_0001>

<bundles_post_ra>
// kernel: _lambda_.8
= control target key start
LH: loop header
LB: loop body
LE: loop exit
PB: predicated region body
PF: predicated region fallthrough
CT: control target
= control target key end

     0   :  { %s378_s15 = smov 0   ;;  %s404_s0 = inlined_call_operand.vmem [shape: f32[2,8,16], index: 0, kind: input, shape index: {}]   ;;  %s405_s1 = inlined_call_operand.vmem [shape: bf16[16,32], index: 1, kind: input, shape index: {}]   ;;  %s406_s2 = inlined_call_operand.vmem [shape: bf16[1,32], index: 2, kind: input, shape index: {}]   ;;  %s407_s3 = inlined_call_operand.vmem [shape: bf16[8,32], index: 3, kind: input, shape index: {}]   ;;  %s408_s4 = inlined_call_operand.vmem [shape: bf16[2,8,32], index: 4, kind: output, shape index: {}]  }
   0x1 LB: > { %s313_s16 = sadd.s32 4294967295, %s349_s15   ;;  %p317_p0 = scmp.ge.s32.totalorder %s349_s15, 1  ;;  %s349_s15 = sphi %s378_s15, %s14_s15  }
   0x2   : > { %p161_p1 = scmp.lt.s32.totalorder %s349_s15, 3 }
   0x4   : > { %p162_p2 = pnand %p317_p0, %p161_p1 }
   0x5   : > { %v342_v0 = vld [vmem:[%s405_s1] sm:$0xff] (!%p162_p2)   ;;  %v351_v1 = vmov (!%p162_p2), 0.0   ;;  %p185_p3 = scmp.lt.s32.totalorder (!%p162_p2), %s313_s16, 1  ;;  %vm352_vm0 = vmmov (!%p162_p2), 0   ;;  %vm210_vm1 = vcmask (!%p162_p2), 130048   ;;  %v200_v4 = vlaneseq (!%p162_p2) }
   0x6   : > { %165 = sbr.rel (%p162_p2) target bundleno = 238 (0xee), region = 36  ;;  %326 = vmatprep.subr.bf16.mxu0 (!%p162_p2), %v351_v1  ;;  %328 = vmatprep.mubr.msk.bf16.mxu0 (!%p162_p2), %vm352_vm0, %v351_v1  ;;  %v198_v6 = vld [vmem:[%s406_s2] sm:$0x1] (!%p162_p2)  ;;  %vm258_vm2 = vcmask (!%p162_p2), 257024  }
   0x7   : > { %327 = vmatpush3.bf16.msra.mxu0 (!%p162_p2), %v342_v0  ;;  %v201_v5 = vshrl.u32 (!%p162_p2), %v200_v4, 7  ;;  %v199_v7 = vunpack.c.l.bf16 (!%p162_p2), %v198_v6  ;;  %v254_v9 = vld [vmem:[%s407_s3] sm:$0xf] (!%p162_p2) }
   0x8   : > { %v255_v11 = vunpack.c.l.bf16 (!%p162_p2), %v254_v9 }
   0x9   : > { %v202_v8 = vsub.s32 (!%p162_p2), 0, %v201_v5 }
   0xb   : > { %v203_v10 = vrot.slane (!%p162_p2), %v199_v7, %v202_v8 }
   0xd   : > { %s410_s16 = smov (!%p185_p3, %s313_s16), 1 }
   0xe   : > { %s318_s19 = sshll.u32 %s410_s16, 3  ;;  %s319_s27 = sshll.u32 %s410_s16, 2 }
   0xf   : > { %s188_s22 = scalar_lea.vmem %s404_s0, %s318_s19  ;;  %s192_s30 = scalar_lea.vmem %s408_s4, %s319_s27 }
  0x10   : > { %v194_v2 = vld [vmem:[%s188_s22] sm:$0xff] }
  0x11   : > { %v197_v3 = vpack.c.bf16 %v194_v2, %v194_v2 }
  0x13   : > { %329 = vmatmul.mubr.msk.bf16.vlgmr.msra.gmra.mrb[0].mxu0 %vm210_vm1, %v197_v3 }
  0xe6   : > { %v248_v12 = vpop.f32.mrb[0].mxu0 }
  0xe7   : > { %v249_v13 = vadd.f32 %v248_v12, %v203_v10  ;;  %v330_v14 = vpop.f32.mrb[1].mxu0 }
  0xe8   : > { %v251_v15 = vpop.f32.mrb[2].mxu0 }
  0xe9   : > { %v256_v16 = vadd.f32 %v255_v11, %v249_v13  ;;  %v331_v17 = vpop.f32.mrb[3].mxu0 }
  0xeb   : > { %v257_v18 = vpack.c.bf16 %v256_v16, %v256_v16 }
  0xed   : > { %259 = vst.msk [vmem:[%s192_s30] sm:$0xf] %vm258_vm2, %v257_v18 }
  0xee PF: > { %s14_s15 = sadd.s32 1, %s349_s15  }
  0xef   : > { %p11_p4 = scmp.ge.s32.totalorder %s14_s15, 4  }
  0xf1   :  { %13 = sbr.rel (!%p11_p4) target bundleno = 1 (0x1), region = 66 }

// kernel: _lambda_.11
= control target key start
LH: loop header
LB: loop body
LE: loop exit
PB: predicated region body
PF: predicated region fallthrough
CT: control target
= control target key end

     0   :  { %vm43_vm0 = vcmask 261120   ;;  %v440_v16 = vmov 0.0   ;;  %vm441_vm1 = vmmov 0   ;;  %v72_v21 = vlaneseq  ;;  %s571_s0 = inlined_call_operand.vmem [shape: bf16[16,32], index: 0, kind: input, shape index: {}]   ;;  %s572_s3 = inlined_call_operand.vmem [shape: bf16[32,64], index: 3, kind: input, shape index: {}]   ;;  %s573_s5 = inlined_call_operand.vmem [shape: bf16[32,64], index: 5, kind: input, shape index: {}]   ;;  %s574_s1 = inlined_call_operand.vmem [shape: bf16[1,32], index: 1, kind: input, shape index: {}]   ;;  %s575_s2 = inlined_call_operand.vmem [shape: bf16[1,32], index: 2, kind: input, shape index: {}, may-alias: {2,8}]   ;;  %s576_s7 = inlined_call_operand.vmem [shape: bf16[64,32], index: 7, kind: input, shape index: {}]   ;;  %s577_s4 = inlined_call_operand.vmem [shape: bf16[1,64], index: 4, kind: input, shape index: {}, may-alias: {4,6}]   ;;  %s578_s6 = inlined_call_operand.vmem [shape: bf16[1,64], index: 6, kind: input, shape index: {}, may-alias: {4,6}]   ;;  %s579_s8 = inlined_call_operand.vmem [shape: bf16[1,32], index: 8, kind: input, shape index: {}, may-alias: {2,8}]   ;;  %s580_s9 = inlined_call_operand.vmem [shape: bf16[16,32], index: 9, kind: output, shape index: {}]  }
   0x1   :  { %v372_v0 = vld [vmem:[%s571_s0] sm:$0xff]   ;;  %390 = vmatprep.subr.bf16.mxu1 %v440_v16  ;;  %87 = vst.msk [vmem:[#allocation3] sm:$0xff] %vm43_vm0, %v440_v16  ;;  %88 = vst.msk [vmem:[#allocation3 + $0x8] sm:$0xff] %vm43_vm0, %v440_v16  ;;  %406 = vmatprep.subr.bf16.mxu0 %v440_v16  ;;  %v421_v17 = vld [vmem:[%s572_s3 + $0x8] sm:$0xff]   ;;  %vm271_vm2 = vcmask 523264   ;;  %vm347_vm3 = vcmask 257024  }
   0x2   :  { %v495_v1 = vunpack.c.l.bf16 %v372_v0  ;;  %v497_v2 = vunpack.c.h.bf16 %v372_v0  ;;  %v420_v15 = vld [vmem:[%s572_s3] sm:$0xff]   ;;  %394 = vmatprep.mubr.msk.bf16.mxu1 %vm441_vm1, %v440_v16  ;;  %414 = vmatprep.mubr.msk.bf16.mxu0 %vm441_vm1, %v440_v16  ;;  %v73_v25 = vshrl.u32 %v72_v21, 7  ;;  %v423_v44 = vld [vmem:[%s573_s5 + $0x8] sm:$0xff]   ;;  %v426_v47 = vld [vmem:[%s576_s7 + $0x10] sm:$0xff]  }
   0x3   :  { %391 = vmatpush3.bf16.msra.mxu1 %v420_v15  ;;  %v41_v26 = vld [vmem:[%s574_s1] sm:$0x1]  ;;  %v425_v46 = vld [vmem:[%s576_s7 + $0x8] sm:$0xff]   ;;  %v427_v48 = vld [vmem:[%s576_s7 + $0x18] sm:$0xff]  }
   0x4   :  { %v44_v3 = vsel %vm43_vm0, %v495_v1, 0.0  ;;  %v47_v4 = vsel %vm43_vm0, %v497_v2, 0.0  ;;  %392 = vmatprep.subr.bf16.mxu1 %v440_v16  ;;  %v71_v27 = vunpack.c.l.bf16 %v41_v26  ;;  %v520_v28 = vsub.s32 0, %v73_v25  ;;  %v42_v29 = vld [vmem:[%s575_s2] sm:$0x1] }
   0x5   :  { %45 = vadd.xlane.f32.xlu0 %v44_v3  ;;  %v78_v32 = vunpack.c.l.bf16 %v42_v29  ;;  %v422_v42 = vld [vmem:[%s573_s5] sm:$0xff]  }
   0x6   :  { %v75_v31 = vrot.slane %v71_v27, %v520_v28  ;;  %v424_v45 = vld [vmem:[%s576_s7] sm:$0xff]  }
   0x7   :  { %393 = vmatpush3.bf16.msra.mxu1 %v421_v17  ;;  %v82_v35 = vrot.slane %v78_v32, %v520_v28  ;;  %407 = vmatpush3.bf16.msra.mxu0 %v424_v45  ;;  %v94_v49 = vld [vmem:[%s577_s4] sm:$0x1] }
   0x8   :  { %398 = vmatprep.subr.bf16.mxu1 %v440_v16  ;;  %408 = vmatprep.subr.bf16.mxu0 %v440_v16  ;;  %v95_v50 = vunpack.c.l.bf16 %v94_v49 }
   0x9   :  { %48 = vadd.xlane.f32.xlu0 %v47_v4 }
   0xa   :  { %v99_v51 = vrot.slane %v95_v50, %v520_v28 }
   0xb   :  { %409 = vmatpush3.bf16.msra.mxu0 %v425_v46 }
   0xc   :  { %410 = vmatprep.subr.bf16.mxu0 %v440_v16 }
   0xf   :  { %411 = vmatpush3.bf16.msra.mxu0 %v426_v47 }
  0x10   :  { %412 = vmatprep.subr.bf16.mxu0 %v440_v16 }
  0x13   :  { %413 = vmatpush3.bf16.msra.mxu0 %v427_v48 }
  0x92   :  { %v46_v5 = vpop.xlane.xlu0 %45 }
  0x93   :  { %v51_v6 = vmul.f32 0.03125, %v46_v5 }
  0x95   :  { %v53_v7 = vsub.f32 %v495_v1, %v51_v6  ;;  %v161_v6 = vld [vmem:[%s578_s6] sm:$0x1] }
  0x96   :  { %v49_v8 = vpop.xlane.xlu0 %48 }
  0x97   :  { %v52_v9 = vmul.f32 0.03125, %v49_v8  ;;  %v55_v10 = vmul.f32 %v53_v7, %v53_v7 }
  0x99   :  { %v54_v11 = vsub.f32 %v497_v2, %v52_v9  ;;  %v57_v12 = vsel %vm43_vm0, %v55_v10, 0.0 }
  0x9a   :  { %58 = vadd.xlane.f32.xlu1 %v57_v12 }
  0x9b   :  { %v56_v13 = vmul.f32 %v54_v11, %v54_v11 }
  0x9d   :  { %v60_v14 = vsel %vm43_vm0, %v56_v13, 0.0 }
  0x9e   :  { %61 = vadd.xlane.f32.xlu1 %v60_v14 }
 0x127   :  { %v59_v18 = vpop.xlane.xlu1 %58 }
 0x128   :  { %v63_v19 = vmul.f32 0.03125, %v59_v18  ;;  %v236_v18 = vld [vmem:[#allocation3] sm:$0xff] }
 0x12a   :  { %v65_v20 = vadd.f32 1e-05, %v63_v19 }
 0x12b   :  { %v62_v22 = vpop.xlane.xlu1 %61 }
 0x12c   :  { %428 = vrsqrt.f32 %v65_v20  ;;  %v64_v23 = vmul.f32 0.03125, %v62_v22  ;;  %v237_v20 = vld [vmem:[#allocation3 + $0x8] sm:$0xff] }
 0x12e   :  { %v66_v24 = vadd.f32 1e-05, %v64_v23  ;;  %v331_v23 = vld [vmem:[%s579_s8] sm:$0x1] }
 0x12f   :  { %v332_v27 = vunpack.c.l.bf16 %v331_v23 }
 0x130   :  { %430 = vrsqrt.f32 %v66_v24 }
 0x131   :  { %v336_v29 = vrot.slane %v332_v27, %v520_v28 }
 0x136   :  { %v429_v30 = vpop.eup %428 }
 0x137   :  { %v69_v33 = vmul.f32 %v429_v30, %v53_v7  ;;  %v162_v7 = vunpack.c.l.bf16 %v161_v6 }
 0x139   :  { %v76_v36 = vmul.f32 %v75_v31, %v69_v33  ;;  %v166_v8 = vrot.slane %v162_v7, %v520_v28 }
 0x13a   :  { %v431_v34 = vpop.eup %430 }
 0x13b   :  { %v70_v37 = vmul.f32 %v431_v34, %v54_v11  ;;  %v83_v39 = vadd.f32 %v82_v35, %v76_v36 }
 0x13d   :  { %v77_v38 = vmul.f32 %v75_v31, %v70_v37 }
 0x13f   :  { %v84_v40 = vadd.f32 %v82_v35, %v77_v38 }
 0x141   :  { %v85_v41 = vpack.c.bf16 %v84_v40, %v83_v39 }
 0x143   :  { %86 = vst.msk [vmem:[#allocation2] sm:$0xff] %vm43_vm0, %v85_v41 }
 0x14a   :  { %v89_v43 = vld [vmem:[#allocation2] sm:$0xff] }
 0x14b   :  { %395 = vmatmul.mubr.msk.bf16.vlgmr.msra.gmra.mrb[0].mxu1 %vm43_vm0, %v89_v43 }
 0x14c   :  { %399 = vmatpush3.bf16.msra.mxu1 %v422_v42  ;;  %402 = vmatprep.mubr.msk.bf16.mxu1 %vm441_vm1, %v440_v16 }
 0x14d   :  { %400 = vmatprep.subr.bf16.mxu1 %v440_v16 }
 0x150   :  { %401 = vmatpush3.bf16.msra.mxu1 %v423_v44 }
 0x153   :  { %403 = vmatmul.mubr.msk.bf16.vlgmr.msra.gmra.mrb[4].mxu1 %vm43_vm0, %v89_v43 }
 0x21e   :  { %v150_v52 = vpop.f32.mrb[0].mxu1 }
 0x21f   :  { %v151_v53 = vadd.f32 %v150_v52, %v99_v51  ;;  %v396_v54 = vpop.f32.mrb[1].mxu1 }
 0x220   :  { %v153_v55 = vpop.f32.mrb[2].mxu1 }
 0x221   :  { %v360_v56 = vmul.f32 -1.442695, %v151_v53  ;;  %v154_v57 = vadd.f32 %v153_v55, %v99_v51  ;;  %v397_v58 = vpop.f32.mrb[3].mxu1 }
 0x223   :  { %432 = vpow2.f32 %v360_v56  ;;  %v361_v59 = vmul.f32 -1.442695, %v154_v57 }
 0x225   :  { %434 = vpow2.f32 %v361_v59 }
 0x226   :  { %v213_v60 = vpop.f32.mrb[4].mxu1 }
 0x227   :  { %v404_v61 = vpop.f32.mrb[5].mxu1  ;;  %v214_v11 = vadd.f32 %v213_v60, %v166_v8 }
 0x228   :  { %v216_v62 = vpop.f32.mrb[6].mxu1 }
 0x229   :  { %v405_v63 = vpop.f32.mrb[7].mxu1  ;;  %v217_v15 = vadd.f32 %v216_v62, %v166_v8 }
 0x22d   :  { %v433_v0 = vpop.eup %432 }
 0x22e   :  { %v226_v3 = vadd.f32 1.0, %v433_v0 }
 0x22f   :  { %v435_v4 = vpop.eup %434 }
 0x230   :  { %436 = vrcp.f32 %v226_v3  ;;  %v227_v5 = vadd.f32 1.0, %v435_v4 }
 0x232   :  { %438 = vrcp.f32 %v227_v5 }
 0x23a   :  { %v437_v9 = vpop.eup %436 }
 0x23b   :  { %v232_v10 = vmul.f32 %v437_v9, %v151_v53 }
 0x23c   :  { %v439_v12 = vpop.eup %438 }
 0x23d   :  { %v233_v13 = vmul.f32 %v439_v12, %v154_v57  ;;  %v234_v14 = vmul.f32 %v232_v10, %v214_v11 }
 0x23f   :  { %v235_v16 = vmul.f32 %v233_v13, %v217_v15 }
 0x241   :  { %v246_v17 = vpack.c.bf16 %v235_v16, %v234_v14 }
 0x243   :  { %415 = vmatmul.mubr.msk.bf16.vlgmr.msra.gmra.mrb[0].mxu0 %vm271_vm2, %v246_v17 }
 0x316   :  { %v309_v19 = vpop.f32.mrb[0].mxu0 }
 0x317   :  { %v316_v21 = vadd.f32 %v309_v19, %v236_v18  ;;  %v416_v22 = vpop.f32.mrb[1].mxu0 }
 0x318   :  { %v312_v24 = vpop.f32.mrb[2].mxu0 }
 0x319   :  { %318 = vst.msk [vmem:[#allocation3] sm:$0xff] %vm43_vm0, %v316_v21  ;;  %v317_v25 = vadd.f32 %v312_v24, %v237_v20  ;;  %v417_v26 = vpop.f32.mrb[3].mxu0 }
 0x31b   :  { %319 = vst.msk [vmem:[#allocation3 + $0x8] sm:$0xff] %vm43_vm0, %v317_v25 }
 0x320   :  { %v327_v30 = vld [vmem:[#allocation3] sm:$0xff] }
 0x321   :  { %v329_v31 = vadd.f32 %v495_v1, %v327_v30 }
 0x322   :  { %v328_v32 = vld [vmem:[#allocation3 + $0x8] sm:$0xff] }
 0x323   :  { %v337_v33 = vadd.f32 %v336_v29, %v329_v31  ;;  %v330_v34 = vadd.f32 %v497_v2, %v328_v32 }
 0x325   :  { %v369_v35 = vpack.c.bf16 %v337_v33, %v337_v33  ;;  %v338_v36 = vadd.f32 %v336_v29, %v330_v34 }
 0x327   :  { %348 = vst.msk [vmem:[%s580_s9] sm:$0xf] %vm347_vm3, %v369_v35  ;;  %v370_v37 = vpack.c.bf16 %v338_v36, %v338_v36 }
 0x329   :  { %349 = vst.msk [vmem:[%s580_s9 + $0x4] sm:$0xf] %vm347_vm3, %v370_v37 }

// kernel: _lambda_.9
= control target key start
LH: loop header
LB: loop body
LE: loop exit
PB: predicated region body
PF: predicated region fallthrough
CT: control target
= control target key end

     0   :  { %s2234_s21 = smov 0   ;;  %s2236_s22 = smov 0   ;;  %s2531_s0 = inlined_call_operand.vmem [shape: bf16[2,8,32], index: 0, kind: input, shape index: {}, may-alias: {0,1}]   ;;  %s2532_s1 = inlined_call_operand.vmem [shape: bf16[2,8,32], index: 1, kind: input, shape index: {}, may-alias: {0,1}]   ;;  %s2533_s2 = inlined_call_operand.vmem [shape: bf16[1,32], index: 2, kind: input, shape index: {}]   ;;  %s2534_s3 = inlined_call_operand.vmem [shape: bf16[1,32], index: 3, kind: input, shape index: {}, may-alias: {3,5,7,9,11}]   ;;  %s2535_s4 = inlined_call_operand.vmem [shape: bf16[32,32], index: 4, kind: input, shape index: {}]   ;;  %s2536_s5 = inlined_call_operand.vmem [shape: bf16[1,32], index: 5, kind: input, shape index: {}, may-alias: {3,5,7,9,11}]   ;;  %s2537_s6 = inlined_call_operand.vmem [shape: bf16[32,32], index: 6, kind: input, shape index: {}]   ;;  %s2538_s7 = inlined_call_operand.vmem [shape: bf16[1,32], index: 7, kind: input, shape index: {}, may-alias: {3,5,7,9,11}]   ;;  %s2539_s8 = inlined_call_operand.vmem [shape: bf16[32,32], index: 8, kind: input, shape index: {}]   ;;  %s2540_s9 = inlined_call_operand.vmem [shape: bf16[1,32], index: 9, kind: input, shape index: {}, may-alias: {3,5,7,9,11}]   ;;  %s2541_s10 = inlined_call_operand.vmem [shape: bf16[32,32], index: 10, kind: input, shape index: {}]   ;;  %s2542_s11 = inlined_call_operand.vmem [shape: bf16[1,32], index: 11, kind: input, shape index: {}, may-alias: {3,5,7,9,11}]   ;;  %s2543_s12 = inlined_call_operand.vmem [shape: bf16[2,8,32], index: 12, kind: output, shape index: {}]  }
   0x1   :  { %s2238_s23 = smov 0  }
   0x2 LB: > { %s34_s24 = sadd.s32 1, %s2153_s22  ;;  %p1931_p0 = scmp.ge.s32.totalorder %s2157_s23, 1  ;;  %s2157_s23 = sphi %s2238_s23, %s22_s23   ;;  %s2153_s22 = sphi %s2236_s22, %s2545_s22   ;;  %s2149_s21 = sphi %s2234_s21, %s2544_s21  }
   0x3   : > { %p36_p1 = scmp.ge.s32.totalorder %s34_s24, 2  ;;  %p389_p2 = scmp.lt.s32.totalorder %s2157_s23, 3 }
   0x5   : > { %s2547_s24 = smov (%p36_p1, %s34_s24), 0  ;;  %p390_p3 = pnand %p1931_p0, %p389_p2 }
   0x6   : > { %p439_p4 = scmp.lt.s32.totalorder (!%p390_p3), %s2149_s21, 1  ;;  %vm466_vm0 = vcmask (!%p390_p3), 261120   ;;  %v2107_v16 = vld [vmem:[%s2537_s6] sm:$0xff] (!%p390_p3)   ;;  %v2159_v18 = vmov (!%p390_p3), 0.0   ;;  %v2109_v19 = vld [vmem:[%s2537_s6 + $0x8] sm:$0xff] (!%p390_p3)   ;;  %vm2160_vm1 = vmmov (!%p390_p3), 0   ;;  %v482_v23 = vlaneseq (!%p390_p3) }
   0x7   : > { %393 = sbr.rel (%p390_p3) target bundleno = 1816 (0x718), region = 68  ;;  %v2108_v17 = vld [vmem:[%s2539_s8] sm:$0xff] (!%p390_p3)   ;;  %1993 = vmatprep.subr.bf16.mxu0 (!%p390_p3), %v2159_v18  ;;  %2001 = vmatprep.subr.bf16.mxu1 (!%p390_p3), %v2159_v18  ;;  %v2110_v20 = vld [vmem:[%s2539_s8 + $0x8] sm:$0xff] (!%p390_p3)   ;;  %s2162_s29 = smov (!%p390_p3), 112   ;;  %vm771_vm2 = vcmask (!%p390_p3), 60416   ;;  %vm1188_vm3 = vcmask (!%p390_p3), 64512  }
   0x8   : > { %1994 = vmatpush3.bf16.msra.mxu0 (!%p390_p3), %v2107_v16  ;;  %2002 = vmatpush3.bf16.msra.mxu1 (!%p390_p3), %v2108_v17  ;;  %v2293_v27 = vshrl.u32 (!%p390_p3), %v482_v23, 7  ;;  %v464_v29 = vld [vmem:[%s2533_s2] sm:$0x1] (!%p390_p3)  ;;  %v2112_v51 = vld [vmem:[%s2535_s4 + $0x8] sm:$0xff] (!%p390_p3)   ;;  %s2163_s30 = smov (!%p390_p3), 104   ;;  %vm1441_vm5 = vcmask (!%p390_p3), 1043456  }
   0x9   : > { %1995 = vmatprep.subr.bf16.mxu0 (!%p390_p3), %v2159_v18  ;;  %2003 = vmatprep.subr.bf16.mxu1 (!%p390_p3), %v2159_v18  ;;  %v465_v30 = vld [vmem:[%s2534_s3] sm:$0x1] (!%p390_p3)  ;;  %v481_v31 = vunpack.c.l.bf16 (!%p390_p3), %v464_v29  ;;  %s2166_s19 = smov (!%p390_p3), 16   ;;  %s2167_s20 = smov (!%p390_p3), 8   ;;  %vm1772_vm6 = vcmask (!%p390_p3), 130048   ;;  %vm1774_vm7 = vcmask (!%p390_p3), 195584  }
   0xa   : > { %1997 = vmatprep.mubr.msk.bf16.mxu0 (!%p390_p3), %vm2160_vm1, %v2159_v18  ;;  %2005 = vmatprep.mubr.msk.bf16.mxu1 (!%p390_p3), %vm2160_vm1, %v2159_v18  ;;  %v2302_v32 = vsub.s32 (!%p390_p3), 0, %v2293_v27  ;;  %v932_v33 = vld [vmem:[%s2533_s2] sm:$0x1] (!%p390_p3)  ;;  %v487_v34 = vunpack.c.l.bf16 (!%p390_p3), %v465_v30  ;;  %vm1839_vm8 = vcmask (!%p390_p3), 257024  }
   0xb   : > { %v949_v36 = vunpack.c.l.bf16 (!%p390_p3), %v932_v33  ;;  %v933_v38 = vld [vmem:[%s2534_s3] sm:$0x1] (!%p390_p3) }
   0xc   : > { %1996 = vmatpush3.bf16.msra.mxu0 (!%p390_p3), %v2109_v19  ;;  %2004 = vmatpush3.bf16.msra.mxu1 (!%p390_p3), %v2110_v20  ;;  %v485_v35 = vrot.slane (!%p390_p3), %v481_v31, %v2302_v32  ;;  %v491_v40 = vrot.slane (!%p390_p3), %v487_v34, %v2302_v32  ;;  %v955_v43 = vunpack.c.l.bf16 (!%p390_p3), %v933_v38  ;;  %v2111_v47 = vld [vmem:[%s2535_s4] sm:$0xff] (!%p390_p3)  }
   0xd   : > { %2009 = vmatprep.subr.bf16.mxu0 (!%p390_p3), %v2159_v18  ;;  %2017 = vmatprep.subr.bf16.mxu1 (!%p390_p3), %v2159_v18  ;;  %v953_v42 = vrot.slane (!%p390_p3), %v949_v36, %v2302_v32  ;;  %v498_v54 = vld [vmem:[%s2538_s7] sm:$0x1] (!%p390_p3) }
   0xe   : > { %s2549_s21 = smov (!%p439_p4, %s2149_s21), 1  ;;  %v959_v50 = vrot.slane %v955_v43, %v2302_v32  ;;  %v499_v55 = vunpack.c.l.bf16 %v498_v54  ;;  %v965_v57 = vld [vmem:[%s2536_s5] sm:$0x1] }
   0xf   : > { %s2252_s25 = sshll.u32 %s2549_s21, 2  ;;  %v973_v63 = vunpack.c.l.bf16 %v965_v57  ;;  %s2168_s21 = smov 24  }
  0x10   : > { %s442_s28 = scalar_lea.vmem %s2531_s0, %s2252_s25  ;;  %s449_s13 = scalar_lea.vmem %s2532_s1, %s2252_s25  ;;  %v503_v56 = vrot.slane %v499_v55, %v2302_v32 }
  0x11   : > { %v462_v0 = vld [vmem:[%s442_s28] sm:$0xf]  ;;  %s2161_s28 = smov 120  }
  0x12   : > { %v463_v1 = vunpack.c.l.bf16 %v462_v0  ;;  %v930_v2 = vld [vmem:[%s449_s13] sm:$0xf] }
  0x13   : > { %v2262_v3 = vunpack.c.l.bf16 %v930_v2 }
  0x14   : > { %v467_v4 = vsel %vm466_vm0, %v463_v1, 0.0 }
  0x15   : > { %468 = vadd.xlane.f32.xlu0 %v467_v4  ;;  %v935_v5 = vsel %vm466_vm0, %v2262_v3, 0.0 }
  0x19   : > { %936 = vadd.xlane.f32.xlu0 %v935_v5  ;;  %v977_v5 = vrot.slane %v973_v63, %v2302_v32 }
  0xa2   : > { %v469_v6 = vpop.xlane.xlu0 %468 }
  0xa3   : > { %v471_v7 = vmul.f32 0.03125, %v469_v6 }
  0xa5   : > { %v472_v8 = vsub.f32 %v463_v1, %v471_v7 }
  0xa6   : > { %v937_v9 = vpop.xlane.xlu0 %936 }
  0xa7   : > { %v939_v10 = vmul.f32 0.03125, %v937_v9  ;;  %v473_v11 = vmul.f32 %v472_v8, %v472_v8 }
  0xa9   : > { %v940_v12 = vsub.f32 %v2262_v3, %v939_v10  ;;  %v474_v13 = vsel %vm466_vm0, %v473_v11, 0.0 }
  0xaa   : > { %475 = vadd.xlane.f32.xlu1 %v474_v13 }
  0xab   : > { %v941_v14 = vmul.f32 %v940_v12, %v940_v12 }
  0xad   : > { %v942_v15 = vsel %vm466_vm0, %v941_v14, 0.0  ;;  %v2165_v14 = vmov 1934713408  }
  0xae   : > { %943 = vadd.xlane.f32.xlu1 %v942_v15  ;;  %v666_v15 = vunpack.c.l.s4 %v2165_v14 }
  0xb0   : > { %v667_v19 = vunpack.c.0.s8 %v666_v15 }
  0xb2   : > { %v2351_v29 = vsub.s32 %v667_v19, %v2293_v27 }
 0x137   : > { %v476_v21 = vpop.xlane.xlu1 %475 }
 0x138   : > { %v477_v22 = vmul.f32 0.03125, %v476_v21 }
 0x13a   : > { %v478_v24 = vadd.f32 1e-05, %v477_v22 }
 0x13b   : > { %v944_v25 = vpop.xlane.xlu1 %943 }
 0x13c   : > { %2115 = vrsqrt.f32 %v478_v24  ;;  %v945_v26 = vmul.f32 0.03125, %v944_v25 }
 0x13e   : > { %v946_v28 = vadd.f32 1e-05, %v945_v26 }
 0x140   : > { %2117 = vrsqrt.f32 %v946_v28 }
 0x146   : > { %v2116_v37 = vpop.eup %2115 }
 0x147   : > { %v480_v39 = vmul.f32 %v2116_v37, %v472_v8 }
 0x149   : > { %v486_v41 = vmul.f32 %v485_v35, %v480_v39 }
 0x14a   : > { %v2118_v44 = vpop.eup %2117 }
 0x14b   : > { %v948_v45 = vmul.f32 %v2118_v44, %v940_v12  ;;  %v492_v46 = vadd.f32 %v491_v40, %v486_v41  ;;  %v2164_v12 = vmov 1983009808  }
 0x14c   : > { %v634_v13 = vunpack.c.l.s4 %v2164_v12 }
 0x14d   : > { %v497_v48 = vpack.c.bf16 %v492_v46, %v492_v46  ;;  %v954_v49 = vmul.f32 %v953_v42, %v948_v45 }
 0x14e   : > { %v635_v16 = vunpack.c.0.s8 %v634_v13 }
 0x14f   : > { %1998 = vmatmul.mubr.msk.bf16.vlgmr.msra.gmra.mrb[0].mxu0 %vm466_vm0, %v497_v48  ;;  %2006 = vmatmul.mubr.msk.bf16.vlgmr.msra.gmra.mrb[0].mxu1 %vm466_vm0, %v497_v48  ;;  %v960_v52 = vadd.f32 %v959_v50, %v954_v49 }
 0x150   : > { %2010 = vmatpush3.bf16.msra.mxu0 %v2111_v47  ;;  %2013 = vmatprep.mubr.msk.bf16.mxu0 %vm2160_vm1, %v2159_v18  ;;  %v2348_v20 = vsub.s32 %v635_v16, %v2293_v27 }
 0x151   : > { %2011 = vmatprep.subr.bf16.mxu0 %v2159_v18  ;;  %2019 = vmatprep.mubr.msk.bf16.mxu1 %vm2160_vm1, %v2159_v18  ;;  %v972_v53 = vpack.c.bf16 %v960_v52, %v960_v52 }
 0x154   : > { %2012 = vmatpush3.bf16.msra.mxu0 %v2112_v51 }
 0x155   : > { %2023 = vmatprep.subr.bf16.mxu0 %v2159_v18 }
 0x157   : > { %2014 = vmatmul.mubr.msk.bf16.vlgmr.msra.gmra.mrb[4].mxu0 %vm466_vm0, %v972_v53 }
 0x158   : > { %2025 = vmatprep.mubr.msk.bf16.mxu0 %vm2160_vm1, %v2159_v18 }
 0x222   : > { %v553_v58 = vpop.f32.mrb[0].mxu0  ;;  %v2338_v59 = vpop.f32.mrb[0].mxu1 }
 0x223   : > { %v554_v60 = vadd.f32 %v553_v58, %v503_v56  ;;  %v1999_v61 = vpop.f32.mrb[1].mxu0  ;;  %v2007_v62 = vpop.f32.mrb[1].mxu1 }
 0x224   : > { %v556_v0 = vpop.f32.mrb[2].mxu0  ;;  %v618_v1 = vpop.f32.mrb[2].mxu1 }
 0x225   : > { %v2008_v2 = vpop.f32.mrb[3].mxu1  ;;  %622 = vrot.lane.b32.xlu0 %v554_v60, %s2161_s28  ;;  %v2000_v4 = vpop.f32.mrb[3].mxu0  ;;  %625 = vrot.lane.b32.xlu1 %v554_v60, %s2162_s29 }
 0x229   : > { %628 = vrot.lane.b32.xlu1 %v554_v60, %s2163_s30 }
 0x22a   : > { %v1027_v6 = vpop.f32.mrb[4].mxu0 }
 0x22b   : > { %v1028_v7 = vadd.f32 %v1027_v6, %v977_v5  ;;  %v2015_v8 = vpop.f32.mrb[5].mxu0 }
 0x22c   : > { %v1030_v9 = vpop.f32.mrb[6].mxu0 }
 0x22d   : > { %v1033_v10 = vmul.f32 0.35355338, %v1028_v7  ;;  %v2016_v11 = vpop.f32.mrb[7].mxu0 }
 0x22f   : > { %1038 = vrot.lane.b32.xlu0 %v1033_v10, %s2162_s29  ;;  %1035 = vrot.lane.b32.xlu1 %v1033_v10, %s2161_s28 }
 0x233   : > { %1041 = vrot.lane.b32.xlu1 %v1033_v10, %s2163_s30 }
 0x297   : > { %v626_v17 = vpop.permute.xlu1 %625  ;;  %v623_v24 = vpop.permute.xlu0 %622 }
 0x298   : > { %v631_v21 = vcombine.low %v554_v60, %v626_v17  ;;  %v632_v22 = vcombine.high %v554_v60, %v626_v17 }
 0x29a   : > { %v639_v30 = vrot.slane %v631_v21, %v2348_v20  ;;  %v646_v31 = vrot.slane %v632_v22, %v2348_v20 }
 0x29b   : > { %v629_v25 = vpop.permute.xlu1 %628 }
 0x29c   : > { %v647_v26 = vcombine.low %v623_v24, %v629_v25  ;;  %v648_v28 = vcombine.high %v623_v24, %v629_v25 }
 0x29e   : > { %v655_v33 = vrot.slane %v647_v26, %v2348_v20  ;;  %v662_v34 = vrot.slane %v648_v28, %v2348_v20 }
 0x2a0   : > { %v663_v35 = vcombine.low %v639_v30, %v655_v33  ;;  %v664_v36 = vcombine.high %v639_v30, %v655_v33  ;;  %v679_v37 = vcombine.low %v646_v31, %v662_v34  ;;  %v680_v38 = vcombine.high %v646_v31, %v662_v34 }
 0x2a1   : > { %v1036_v39 = vpop.permute.xlu1 %1035  ;;  %v1039_v44 = vpop.permute.xlu0 %1038 }
 0x2a2   : > { %v671_v40 = vrot.slane %v663_v35, %v2351_v29  ;;  %v678_v41 = vrot.slane %v664_v36, %v2351_v29  ;;  %v687_v42 = vrot.slane %v679_v37, %v2351_v29  ;;  %v694_v43 = vrot.slane %v680_v38, %v2351_v29 }
 0x2a3   : > { %v1044_v49 = vcombine.low %v1033_v10, %v1039_v44  ;;  %v1045_v50 = vcombine.high %v1033_v10, %v1039_v44 }
 0x2a4   : > { %v699_v45 = vcombine.low %v671_v40, %v678_v41  ;;  %v1941_v46 = vcombine.high %v671_v40, %v678_v41  ;;  %v715_v47 = vcombine.low %v687_v42, %v694_v43  ;;  %v1942_v48 = vcombine.high %v687_v42, %v694_v43 }
 0x2a5   : > { %v1042_v51 = vpop.permute.xlu1 %1041  ;;  %v1052_v63 = vrot.slane %v1044_v49, %v2348_v20  ;;  %v1059_v0 = vrot.slane %v1045_v50, %v2348_v20 }
 0x2a6   : > { %v706_v52 = vrot.slane %v699_v45, %v2348_v20  ;;  %v714_v53 = vrot.slane %v1941_v46, %v2348_v20  ;;  %v722_v54 = vrot.slane %v715_v47, %v2348_v20  ;;  %v730_v55 = vrot.slane %v1942_v48, %v2348_v20 }
 0x2a7   : > { %v1060_v56 = vcombine.low %v1036_v39, %v1042_v51  ;;  %v1061_v57 = vcombine.high %v1036_v39, %v1042_v51 }
 0x2a8   : > { %v731_v58 = vcombine.low %v706_v52, %v714_v53  ;;  %v732_v60 = vcombine.high %v706_v52, %v714_v53  ;;  %v747_v61 = vcombine.low %v722_v54, %v730_v55  ;;  %v748_v62 = vcombine.high %v722_v54, %v730_v55 }
 0x2a9   : > { %v1068_v1 = vrot.slane %v1060_v56, %v2348_v20  ;;  %v1075_v2 = vrot.slane %v1061_v57, %v2348_v20 }
 0x2aa   : > { %v739_v4 = vrot.slane %v731_v58, %v2351_v29  ;;  %v746_v5 = vrot.slane %v732_v60, %v2351_v29  ;;  %v755_v6 = vrot.slane %v747_v61, %v2351_v29  ;;  %v762_v7 = vrot.slane %v748_v62, %v2351_v29 }
 0x2ab   : > { %v1076_v8 = vcombine.low %v1052_v63, %v1068_v1  ;;  %v1077_v9 = vcombine.high %v1052_v63, %v1068_v1  ;;  %v1092_v10 = vcombine.low %v1059_v0, %v1075_v2  ;;  %v1093_v11 = vcombine.high %v1059_v0, %v1075_v2 }
 0x2ac   : > { %v763_v12 = vcombine.low %v739_v4, %v755_v6  ;;  %v764_v13 = vcombine.high %v739_v4, %v755_v6  ;;  %v765_v14 = vcombine.low %v746_v5, %v762_v7  ;;  %v766_v15 = vcombine.high %v746_v5, %v762_v7 }
 0x2ad   : > { %v1084_v16 = vrot.slane %v1076_v8, %v2351_v29  ;;  %v1091_v17 = vrot.slane %v1077_v9, %v2351_v29  ;;  %v1100_v19 = vrot.slane %v1092_v10, %v2351_v29  ;;  %v1107_v21 = vrot.slane %v1093_v11, %v2351_v29 }
 0x2ae   : > { %v767_v22 = vpack.c.bf16 %v763_v12, %v763_v12  ;;  %v768_v24 = vpack.c.bf16 %v764_v13, %v764_v13  ;;  %v769_v25 = vpack.c.bf16 %v765_v14, %v765_v14  ;;  %v770_v26 = vpack.c.bf16 %v766_v15, %v766_v15  ;;  %v563_v12 = vld [vmem:[%s2540_s9] sm:$0x1] }
 0x2af   : > { %v1112_v28 = vcombine.low %v1084_v16, %v1091_v17  ;;  %v1948_v30 = vcombine.high %v1084_v16, %v1091_v17  ;;  %v1128_v31 = vcombine.low %v1100_v19, %v1107_v21  ;;  %v1949_v33 = vcombine.high %v1100_v19, %v1107_v21 }
 0x2b0   : > { %772 = vst.msk [vmem:[#allocation2] sm:$0xf] %vm771_vm2, %v767_v22  ;;  %773 = vst.msk [vmem:[#allocation2 + $0x4] sm:$0xf] %vm771_vm2, %v768_v24  ;;  %v1378_v63 = vand.u32 127, %v482_v23  ;;  %v564_v19 = vunpack.c.l.bf16 %v563_v12 }
 0x2b1   : > { %774 = vst.msk [vmem:[#allocation2 + $0x8] sm:$0xf] %vm771_vm2, %v769_v25  ;;  %775 = vst.msk [vmem:[#allocation2 + $0xc] sm:$0xf] %vm771_vm2, %v770_v26  ;;  %v1119_v34 = vrot.slane %v1112_v28, %v2348_v20  ;;  %v1127_v35 = vrot.slane %v1948_v30, %v2348_v20  ;;  %v1135_v36 = vrot.slane %v1128_v31, %v2348_v20 }
 0x2b2   : > { %v1143_v37 = vrot.slane %v1949_v33, %v2348_v20  ;;  %vm1379_vm4 = vcmp.le.s32.totalorder %v1378_v63, %v2293_v27  ;;  %v568_v30 = vrot.slane %v564_v19, %v2302_v32 }
 0x2b3   : > { %v1144_v38 = vcombine.low %v1119_v34, %v1127_v35  ;;  %v1145_v46 = vcombine.high %v1119_v34, %v1127_v35 }
 0x2b4   : > { %v1160_v39 = vcombine.low %v1135_v36, %v1143_v37  ;;  %v1161_v47 = vcombine.high %v1135_v36, %v1143_v37  ;;  %v616_v33 = vadd.f32 %v2338_v59, %v568_v30 }
 0x2b5   : > { %v1152_v40 = vrot.slane %v1144_v38, %v2351_v29  ;;  %v1159_v54 = vrot.slane %v1145_v46, %v2351_v29 }
 0x2b6   : > { %v1168_v41 = vrot.slane %v1160_v39, %v2351_v29  ;;  %v1175_v55 = vrot.slane %v1161_v47, %v2351_v29 }
 0x2b7   : > { %v1184_v42 = vld [vmem:[#allocation2] sm:$0xf]  ;;  %v1185_v43 = vld [vmem:[#allocation2 + $0x4] sm:$0xf] }
 0x2b8   : > { %v1193_v44 = vsel %vm1188_vm3, %v1184_v42, 0  ;;  %v1239_v45 = vsel %vm1188_vm3, %v1185_v43, 0  ;;  %v1176_v48 = vcombine.low %v1152_v40, %v1168_v41  ;;  %v1177_v49 = vcombine.high %v1152_v40, %v1168_v41  ;;  %v1186_v50 = vld [vmem:[#allocation2 + $0x8] sm:$0xf]  ;;  %v1187_v51 = vld [vmem:[#allocation2 + $0xc] sm:$0xf] }
 0x2b9   : > { %2018 = vmatpush3.bf16.xpose.msra.mxu1 %v1193_v44  ;;  %2024 = vmatpush3.bf16.xpose.msra.mxu0 %v1239_v45  ;;  %v1285_v56 = vsel %vm1188_vm3, %v1186_v50, 0  ;;  %v1331_v57 = vsel %vm1188_vm3, %v1187_v51, 0  ;;  %v1178_v58 = vcombine.low %v1159_v54, %v1175_v55  ;;  %v1179_v60 = vcombine.high %v1159_v54, %v1175_v55 }
 0x2ba   : > { %2029 = vmatprep.subr.bf16.mxu1 %v2159_v18  ;;  %2035 = vmatprep.subr.bf16.mxu0 %v2159_v18  ;;  %v1180_v52 = vpack.c.bf16 %v1176_v48, %v1176_v48  ;;  %v1181_v53 = vpack.c.bf16 %v1177_v49, %v1177_v49 }
 0x2bb   : > { %v1182_v61 = vpack.c.bf16 %v1178_v58, %v1178_v58  ;;  %v1183_v62 = vpack.c.bf16 %v1179_v60, %v1179_v60 }
 0x2c0   : > { %2020 = vmatmul.mubr.msk.bf16.vlgmr.msra.gmra.mrb[4].mxu1 %vm1188_vm3, %v1180_v52  ;;  %2026 = vmatmul.mubr.msk.bf16.vlgmr.msra.gmra.mrb[8].mxu0 %vm1188_vm3, %v1181_v53 }
 0x2c1   : > { %2030 = vmatpush3.bf16.xpose.msra.mxu1 %v1285_v56  ;;  %2036 = vmatpush3.bf16.xpose.msra.mxu0 %v1331_v57 }
 0x2c2   : > { %2031 = vmatprep.mubr.msk.bf16.mxu1 %vm2160_vm1, %v2159_v18  ;;  %2037 = vmatprep.mubr.msk.bf16.mxu0 %vm2160_vm1, %v2159_v18 }
 0x2c3   : > { %2041 = vmatprep.subr.bf16.mxu1 %v2159_v18  ;;  %2047 = vmatprep.subr.bf16.mxu0 %v2159_v18 }
 0x2c8   : > { %2032 = vmatmul.mubr.msk.bf16.vlgmr.msra.gmra.mrb[8].mxu1 %vm1188_vm3, %v1182_v61  ;;  %2038 = vmatmul.mubr.msk.bf16.vlgmr.msra.gmra.mrb[12].mxu0 %vm1188_vm3, %v1183_v62 }
 0x2c9   : > { %2043 = vmatprep.mubr.msk.bf16.mxu1 %vm2160_vm1, %v2159_v18  ;;  %2049 = vmatprep.mubr.msk.bf16.mxu0 %vm2160_vm1, %v2159_v18 }
 0x393   : > { %v1229_v0 = vpop.f32.mrb[4].mxu1  ;;  %v1275_v1 = vpop.f32.mrb[8].mxu0 }
 0x394   : > { %v1382_v2 = vsel %vm1379_vm4, %v1229_v0, -1e+30  ;;  %v1383_v4 = vsel %vm1379_vm4, %v1275_v1, -1e+30  ;;  %v2021_v5 = vpop.f32.mrb[5].mxu1  ;;  %v2027_v6 = vpop.f32.mrb[9].mxu0 }
 0x395   : > { %v1232_v7 = vpop.f32.mrb[6].mxu1  ;;  %v1278_v8 = vpop.f32.mrb[10].mxu0  ;;  %v1389_v9 = vsel %vm1188_vm3, %v1383_v4, -inf  ;;  %v1386_v10 = vsel %vm1188_vm3, %v1382_v2, -inf }
 0x396   : > { %1390 = vmax.xlane.f32.xlu1 %v1389_v9  ;;  %v2028_v23 = vpop.f32.mrb[11].mxu0  ;;  %1387 = vmax.xlane.f32.xlu0 %v1386_v10  ;;  %v2022_v11 = vpop.f32.mrb[7].mxu1 }
 0x39b   : > { %v1321_v13 = vpop.f32.mrb[8].mxu1  ;;  %v1367_v14 = vpop.f32.mrb[12].mxu0 }
 0x39c   : > { %v1384_v15 = vsel %vm1379_vm4, %v1321_v13, -1e+30  ;;  %v2033_v16 = vpop.f32.mrb[9].mxu1  ;;  %v2039_v17 = vpop.f32.mrb[13].mxu0  ;;  %v1385_v25 = vsel %vm1379_vm4, %v1367_v14, -1e+30 }
 0x39d   : > { %v1324_v21 = vpop.f32.mrb[10].mxu1  ;;  %v1370_v22 = vpop.f32.mrb[14].mxu0  ;;  %v1392_v24 = vsel %vm1188_vm3, %v1384_v15, -inf  ;;  %v1395_v31 = vsel %vm1188_vm3, %v1385_v25, -inf }
 0x39e   : > { %v2040_v26 = vpop.f32.mrb[15].mxu0  ;;  %1393 = vmax.xlane.f32.xlu0 %v1392_v24  ;;  %v2034_v28 = vpop.f32.mrb[11].mxu1 }
 0x3a2   : > { %1396 = vmax.xlane.f32.xlu0 %v1395_v31 }
 0x3a7   : > { %780 = vrot.lane.b32.xlu1 %v616_v33, %s2162_s29 }
 0x3ab   : > { %783 = vrot.lane.b32.xlu1 %v616_v33, %s2163_s30  ;;  %s456_s30 = scalar_lea.vmem %s2543_s12, %s2252_s25 }
 0x3b8   : > { %777 = vrot.lane.b32.xlu0 %v616_v33, %s2161_s28 }
 0x423   : > { %v1391_v34 = vpop.xlane.xlu1 %1390  ;;  %v1388_v35 = vpop.xlane.xlu0 %1387 }
 0x424   : > { %v1399_v27 = vsub.f32 %v1383_v4, %v1391_v34  ;;  %v1398_v36 = vsub.f32 %v1382_v2, %v1388_v35 }
 0x426   : > { %v1404_v37 = vmul.f32 1.442695, %v1399_v27  ;;  %v1402_v38 = vmul.f32 1.442695, %v1398_v36 }
 0x427   : > { %v781_v41 = vpop.permute.xlu1 %780 }
 0x428   : > { %2119 = vpow2.f32 %v1404_v37  ;;  %v786_v45 = vcombine.low %v616_v33, %v781_v41  ;;  %v787_v46 = vcombine.high %v616_v33, %v781_v41 }
 0x429   : > { %2121 = vpow2.f32 %v1402_v38 }
 0x42a   : > { %v794_v55 = vrot.slane %v786_v45, %v2348_v20  ;;  %v801_v56 = vrot.slane %v787_v46, %v2348_v20 }
 0x42b   : > { %v1394_v39 = vpop.xlane.xlu0 %1393  ;;  %v784_v49 = vpop.permute.xlu1 %783 }
 0x42c   : > { %v1400_v40 = vsub.f32 %v1384_v15, %v1394_v39 }
 0x42e   : > { %v1406_v42 = vmul.f32 1.442695, %v1400_v40 }
 0x42f   : > { %v1397_v43 = vpop.xlane.xlu0 %1396 }
 0x430   : > { %2123 = vpow2.f32 %v1406_v42  ;;  %v1401_v59 = vsub.f32 %v1385_v25, %v1397_v43 }
 0x432   : > { %v2431_v44 = vpop.eup %2119  ;;  %v1408_v47 = vmul.f32 1.442695, %v1401_v59 }
 0x433   : > { %v2433_v48 = vpop.eup %2121  ;;  %v778_v50 = vpop.permute.xlu0 %777  ;;  %v1413_v51 = vsel %vm1188_vm3, %v2431_v44, 0.0 }
 0x434   : > { %2125 = vpow2.f32 %v1408_v47  ;;  %v802_v52 = vcombine.low %v778_v50, %v784_v49  ;;  %v803_v53 = vcombine.high %v778_v50, %v784_v49  ;;  %v1410_v54 = vsel %vm1188_vm3, %v2433_v48, 0.0  ;;  %1414 = vadd.xlane.f32.xlu0 %v1413_v51 }
 0x435   : > { %1411 = vadd.xlane.f32.xlu1 %v1410_v54 }
 0x436   : > { %v810_v57 = vrot.slane %v802_v52, %v2348_v20  ;;  %v817_v58 = vrot.slane %v803_v53, %v2348_v20 }
 0x438   : > { %v818_v60 = vcombine.low %v794_v55, %v810_v57  ;;  %v819_v61 = vcombine.high %v794_v55, %v810_v57  ;;  %v834_v62 = vcombine.low %v801_v56, %v817_v58  ;;  %v835_v63 = vcombine.high %v801_v56, %v817_v58 }
 0x43a   : > { %v2443_v0 = vpop.eup %2123  ;;  %v826_v1 = vrot.slane %v818_v60, %v2351_v29  ;;  %v833_v2 = vrot.slane %v819_v61, %v2351_v29  ;;  %v842_v4 = vrot.slane %v834_v62, %v2351_v29  ;;  %v849_v5 = vrot.slane %v835_v63, %v2351_v29 }
 0x43b   : > { %v1416_v6 = vsel %vm1188_vm3, %v2443_v0, 0.0 }
 0x43c   : > { %v854_v7 = vcombine.low %v826_v1, %v833_v2  ;;  %v1943_v8 = vcombine.high %v826_v1, %v833_v2  ;;  %v870_v9 = vcombine.low %v842_v4, %v849_v5  ;;  %v1944_v10 = vcombine.high %v842_v4, %v849_v5  ;;  %1417 = vadd.xlane.f32.xlu0 %v1416_v6 }
 0x43e   : > { %v2451_v23 = vpop.eup %2125  ;;  %v861_v11 = vrot.slane %v854_v7, %v2348_v20  ;;  %v869_v12 = vrot.slane %v1943_v8, %v2348_v20  ;;  %v877_v13 = vrot.slane %v870_v9, %v2348_v20  ;;  %v885_v14 = vrot.slane %v1944_v10, %v2348_v20 }
 0x43f   : > { %v1419_v15 = vsel %vm1188_vm3, %v2451_v23, 0.0 }
 0x440   : > { %v886_v16 = vcombine.low %v861_v11, %v869_v12  ;;  %v887_v17 = vcombine.high %v861_v11, %v869_v12  ;;  %v902_v19 = vcombine.low %v877_v13, %v885_v14  ;;  %v903_v21 = vcombine.high %v877_v13, %v885_v14  ;;  %1420 = vadd.xlane.f32.xlu0 %v1419_v15 }
 0x442   : > { %v894_v22 = vrot.slane %v886_v16, %v2351_v29  ;;  %v901_v24 = vrot.slane %v887_v17, %v2351_v29  ;;  %v910_v25 = vrot.slane %v902_v19, %v2351_v29  ;;  %v917_v26 = vrot.slane %v903_v21, %v2351_v29 }
 0x444   : > { %v918_v28 = vcombine.low %v894_v22, %v910_v25  ;;  %v919_v30 = vcombine.high %v894_v22, %v910_v25  ;;  %v920_v31 = vcombine.low %v901_v24, %v917_v26  ;;  %v921_v33 = vcombine.high %v901_v24, %v917_v26 }
 0x446   : > { %v922_v34 = vpack.c.bf16 %v918_v28, %v918_v28  ;;  %v923_v35 = vpack.c.bf16 %v919_v30, %v919_v30  ;;  %v924_v27 = vpack.c.bf16 %v920_v31, %v920_v31  ;;  %v925_v36 = vpack.c.bf16 %v921_v33, %v921_v33  ;;  %v2113_v30 = vld [vmem:[%s2541_s10] sm:$0xff]  }
 0x448   : > { %926 = vst.msk [vmem:[#allocation3] sm:$0xf] %vm771_vm2, %v922_v34  ;;  %927 = vst.msk [vmem:[#allocation3 + $0x4] sm:$0xf] %vm771_vm2, %v923_v35 }
 0x449   : > { %928 = vst.msk [vmem:[#allocation3 + $0x8] sm:$0xf] %vm771_vm2, %v924_v27  ;;  %929 = vst.msk [vmem:[#allocation3 + $0xc] sm:$0xf] %vm771_vm2, %v925_v36 }
 0x44f   : > { %v1434_v37 = vld [vmem:[#allocation3] sm:$0xf]  ;;  %v1435_v38 = vld [vmem:[#allocation3 + $0x4] sm:$0xf] }
 0x450   : > { %v1443_v39 = vsel %vm1441_vm5, %v1434_v37, 0  ;;  %v1489_v40 = vsel %vm1441_vm5, %v1435_v38, 0  ;;  %v1437_v50 = vld [vmem:[#allocation3 + $0xc] sm:$0xf]  ;;  %v1436_v52 = vld [vmem:[#allocation3 + $0x8] sm:$0xf] }
 0x451   : > { %2042 = vmatpush3.bf16.msra.mxu1 %v1443_v39  ;;  %2048 = vmatpush3.bf16.msra.mxu0 %v1489_v40  ;;  %v1581_v54 = vsel %vm1441_vm5, %v1437_v50, 0  ;;  %v1535_v55 = vsel %vm1441_vm5, %v1436_v52, 0  ;;  %v2114_v39 = vld [vmem:[%s2541_s10 + $0x8] sm:$0xff]  }
 0x452   : > { %2053 = vmatprep.subr.bf16.mxu1 %v2159_v18  ;;  %2059 = vmatprep.subr.bf16.mxu0 %v2159_v18 }
 0x4c1   : > { %v1415_v41 = vpop.xlane.xlu0 %1414 }
 0x4c2   : > { %v1412_v42 = vpop.xlane.xlu1 %1411  ;;  %2127 = vrcp.f32 %v1415_v41 }
 0x4c3   : > { %2129 = vrcp.f32 %v1412_v42 }
 0x4c9   : > { %v1418_v43 = vpop.xlane.xlu0 %1417 }
 0x4ca   : > { %2131 = vrcp.f32 %v1418_v43 }
 0x4cc   : > { %v2128_v59 = vpop.eup %2127 }
 0x4cd   : > { %v2130_v45 = vpop.eup %2129  ;;  %v1427_v46 = vmul.f32 %v2128_v59, %v2431_v44  ;;  %v1421_v47 = vpop.xlane.xlu0 %1420 }
 0x4ce   : > { %v1426_v49 = vmul.f32 %v2130_v45, %v2433_v48  ;;  %2133 = vrcp.f32 %v1421_v47 }
 0x4cf   : > { %v1431_v51 = vpack.c.bf16 %v1427_v46, %v1427_v46 }
 0x4d0   : > { %v1430_v53 = vpack.c.bf16 %v1426_v49, %v1426_v49 }
 0x4d1   : > { %2050 = vmatmul.mubr.msk.bf16.vlgmr.msra.gmra.mrb[16].mxu0 %vm1188_vm3, %v1431_v51 }
 0x4d2   : > { %2044 = vmatmul.mubr.msk.bf16.vlgmr.msra.gmra.mrb[12].mxu1 %vm1188_vm3, %v1430_v53  ;;  %2060 = vmatpush3.bf16.msra.mxu0 %v1581_v54 }
 0x4d3   : > { %2054 = vmatpush3.bf16.msra.mxu1 %v1535_v55  ;;  %2055 = vmatprep.mubr.msk.bf16.mxu1 %vm2160_vm1, %v2159_v18 }
 0x4d4   : > { %v2132_v44 = vpop.eup %2131  ;;  %2061 = vmatprep.mubr.msk.bf16.mxu0 %vm2160_vm1, %v2159_v18  ;;  %2065 = vmatprep.subr.bf16.mxu1 %v2159_v18 }
 0x4d5   : > { %v1428_v48 = vmul.f32 %v2132_v44, %v2443_v0 }
 0x4d7   : > { %v1432_v56 = vpack.c.bf16 %v1428_v48, %v1428_v48 }
 0x4d8   : > { %v2134_v57 = vpop.eup %2133 }
 0x4d9   : > { %v1429_v58 = vmul.f32 %v2134_v57, %v2451_v23 }
 0x4da   : > { %2056 = vmatmul.mubr.msk.bf16.vlgmr.msra.gmra.mrb[16].mxu1 %vm1188_vm3, %v1432_v56 }
 0x4db   : > { %v1433_v60 = vpack.c.bf16 %v1429_v58, %v1429_v58  ;;  %2069 = vmatprep.mubr.msk.bf16.mxu1 %vm2160_vm1, %v2159_v18  ;;  %2066 = vmatpush3.bf16.msra.mxu1 %v2113_v30 }
 0x4dc   : > { %2067 = vmatprep.subr.bf16.mxu1 %v2159_v18 }
 0x4dd   : > { %2062 = vmatmul.mubr.msk.bf16.vlgmr.msra.gmra.mrb[20].mxu0 %vm1188_vm3, %v1433_v60  ;;  %v970_v60 = vld [vmem:[%s2542_s11] sm:$0x1] }
 0x4df   : > { %2068 = vmatpush3.bf16.msra.mxu1 %v2114_v39 }
 0x5a4   : > { %v1525_v61 = vpop.f32.mrb[16].mxu0 }
 0x5a5   : > { %v1479_v62 = vpop.f32.mrb[12].mxu1  ;;  %v2051_v63 = vpop.f32.mrb[17].mxu0 }
 0x5a6   : > { %v2045_v1 = vpop.f32.mrb[13].mxu1  ;;  %v1528_v2 = vpop.f32.mrb[18].mxu0 }
 0x5a7   : > { %v1482_v4 = vpop.f32.mrb[14].mxu1  ;;  %v2052_v5 = vpop.f32.mrb[19].mxu0 }
 0x5a8   : > { %v2046_v0 = vpop.f32.mrb[15].mxu1 }
 0x5ad   : > { %v1571_v6 = vpop.f32.mrb[16].mxu1 }
 0x5ae   : > { %v1623_v7 = vcombine.low %v1479_v62, %v1571_v6  ;;  %v1624_v8 = vcombine.high %v1479_v62, %v1571_v6  ;;  %v2057_v9 = vpop.f32.mrb[17].mxu1 }
 0x5af   : > { %v1574_v10 = vpop.f32.mrb[18].mxu1 }
 0x5b0   : > { %v2058_v23 = vpop.f32.mrb[19].mxu1  ;;  %v1617_v11 = vpop.f32.mrb[20].mxu0  ;;  %v1631_v16 = vrot.slane %v1623_v7, %v2348_v20  ;;  %v1638_v17 = vrot.slane %v1624_v8, %v2348_v20 }
 0x5b1   : > { %v1639_v12 = vcombine.low %v1525_v61, %v1617_v11  ;;  %v1640_v13 = vcombine.high %v1525_v61, %v1617_v11  ;;  %v2063_v14 = vpop.f32.mrb[21].mxu0  ;;  %v1777_v61 = vunpack.c.l.bf16 %v970_v60 }
 0x5b2   : > { %v1620_v15 = vpop.f32.mrb[22].mxu0 }
 0x5b3   : > { %v1647_v19 = vrot.slane %v1639_v12, %v2348_v20  ;;  %v1654_v21 = vrot.slane %v1640_v13, %v2348_v20  ;;  %v2064_v22 = vpop.f32.mrb[23].mxu0  ;;  %v1781_v62 = vrot.slane %v1777_v61, %v2302_v32 }
 0x5b5   : > { %v1655_v24 = vcombine.low %v1631_v16, %v1647_v19  ;;  %v1656_v25 = vcombine.high %v1631_v16, %v1647_v19  ;;  %v1671_v26 = vcombine.low %v1638_v17, %v1654_v21  ;;  %v1672_v28 = vcombine.high %v1638_v17, %v1654_v21 }
 0x5b7   : > { %v1663_v31 = vrot.slane %v1655_v24, %v2351_v29  ;;  %v1670_v33 = vrot.slane %v1656_v25, %v2351_v29  ;;  %v1679_v34 = vrot.slane %v1671_v26, %v2351_v29  ;;  %v1686_v35 = vrot.slane %v1672_v28, %v2351_v29 }
 0x5b9   : > { %v1691_v27 = vcombine.low %v1663_v31, %v1670_v33  ;;  %v1958_v36 = vcombine.high %v1663_v31, %v1670_v33  ;;  %v1707_v37 = vcombine.low %v1679_v34, %v1686_v35  ;;  %v1959_v38 = vcombine.high %v1679_v34, %v1686_v35 }
 0x5bb   : > { %v1698_v40 = vrot.slane %v1691_v27, %v2348_v20  ;;  %v1706_v41 = vrot.slane %v1958_v36, %v2348_v20  ;;  %v1714_v42 = vrot.slane %v1707_v37, %v2348_v20  ;;  %v1722_v43 = vrot.slane %v1959_v38, %v2348_v20 }
 0x5bd   : > { %v1724_v59 = vcombine.high %v1698_v40, %v1706_v41  ;;  %v1740_v45 = vcombine.high %v1714_v42, %v1722_v43  ;;  %v1723_v46 = vcombine.low %v1698_v40, %v1706_v41  ;;  %v1739_v47 = vcombine.low %v1714_v42, %v1722_v43 }
 0x5bf   : > { %v1738_v49 = vrot.slane %v1724_v59, %v2351_v29  ;;  %v1754_v18 = vrot.slane %v1740_v45, %v2351_v29  ;;  %v1731_v50 = vrot.slane %v1723_v46, %v2351_v29  ;;  %v1747_v51 = vrot.slane %v1739_v47, %v2351_v29 }
 0x5c1   : > { %v1757_v52 = vcombine.low %v1738_v49, %v1754_v18  ;;  %v1756_v53 = vcombine.high %v1731_v50, %v1747_v51  ;;  %v1758_v54 = vcombine.high %v1738_v49, %v1754_v18  ;;  %v1755_v55 = vcombine.low %v1731_v50, %v1747_v51 }
 0x5c3   : > { %1764 = vrot.lane.b32.xlu0 %v1757_v52, %s2166_s19  ;;  %1760 = vrot.lane.b32.xlu1 %v1756_v53, %s2167_s20 }
 0x5c7   : > { %1768 = vrot.lane.b32.xlu1 %v1758_v54, %s2168_s21 }
 0x635   : > { %v1761_v20 = vpop.permute.xlu1 %1760  ;;  %v1765_v44 = vpop.permute.xlu0 %1764 }
 0x636   : > { %v1771_v48 = vsel %vm1188_vm3, %v1755_v55, %v1761_v20 }
 0x637   : > { %v1773_v57 = vsel %vm1772_vm6, %v1771_v48, %v1765_v44 }
 0x639   : > { %v1769_v56 = vpop.permute.xlu1 %1768 }
 0x63a   : > { %v1775_v29 = vsel %vm1774_vm7, %v1773_v57, %v1769_v56 }
 0x63b   : > { %v1776_v58 = vpack.c.bf16 %v1775_v29, %v1775_v29 }
 0x63d   : > { %2070 = vmatmul.mubr.msk.bf16.vlgmr.msra.gmra.mrb[20].mxu1 %vm466_vm0, %v1776_v58 }
 0x710   : > { %v1831_v63 = vpop.f32.mrb[20].mxu1 }
 0x711   : > { %v1832_v1 = vadd.f32 %v1831_v63, %v1781_v62  ;;  %v2071_v2 = vpop.f32.mrb[21].mxu1 }
 0x712   : > { %v1834_v4 = vpop.f32.mrb[22].mxu1 }
 0x713   : > { %v1837_v5 = vadd.f32 %v1832_v1, %v2262_v3  ;;  %v2072_v0 = vpop.f32.mrb[23].mxu1 }
 0x715   : > { %v1838_v6 = vpack.c.bf16 %v1837_v5, %v1837_v5 }
 0x717   : > { %1840 = vst.msk [vmem:[%s456_s30] sm:$0xf] %vm1839_vm8, %v1838_v6 }
 0x718 PF: > { %s22_s23 = sadd.s32 1, %s2157_s23   ;;  %s2544_s21 = smov %s2153_s22 }
 0x719   : > { %p19_p5 = scmp.ge.s32.totalorder %s22_s23, 4   ;;  %s2545_s22 = smov %s2547_s24 }
 0x71b   :  { %21 = sbr.rel (!%p19_p5) target bundleno = 2 (0x2), region = 105 }

// kernel: _lambda_.10
= control target key start
LH: loop header
LB: loop body
LE: loop exit
PB: predicated region body
PF: predicated region fallthrough
CT: control target
= control target key end

     0   :  { %s2188_s21 = smov 0   ;;  %s2190_s22 = smov 0   ;;  %s2463_s0 = inlined_call_operand.vmem [shape: bf16[2,8,32], index: 0, kind: input, shape index: {}]   ;;  %s2464_s1 = inlined_call_operand.vmem [shape: bf16[2,8,32], index: 1, kind: input, shape index: {}]   ;;  %s2465_s2 = inlined_call_operand.vmem [shape: bf16[1,32], index: 2, kind: input, shape index: {}]   ;;  %s2466_s3 = inlined_call_operand.vmem [shape: bf16[1,32], index: 3, kind: input, shape index: {}, may-alias: {3,5,7,9,11}]   ;;  %s2467_s4 = inlined_call_operand.vmem [shape: bf16[32,32], index: 4, kind: input, shape index: {}]   ;;  %s2468_s5 = inlined_call_operand.vmem [shape: bf16[1,32], index: 5, kind: input, shape index: {}, may-alias: {3,5,7,9,11}]   ;;  %s2469_s6 = inlined_call_operand.vmem [shape: bf16[32,32], index: 6, kind: input, shape index: {}]   ;;  %s2470_s7 = inlined_call_operand.vmem [shape: bf16[1,32], index: 7, kind: input, shape index: {}, may-alias: {3,5,7,9,11}]   ;;  %s2471_s8 = inlined_call_operand.vmem [shape: bf16[32,32], index: 8, kind: input, shape index: {}]   ;;  %s2472_s9 = inlined_call_operand.vmem [shape: bf16[1,32], index: 9, kind: input, shape index: {}, may-alias: {3,5,7,9,11}]   ;;  %s2473_s10 = inlined_call_operand.vmem [shape: bf16[32,32], index: 10, kind: input, shape index: {}]   ;;  %s2474_s11 = inlined_call_operand.vmem [shape: bf16[1,32], index: 11, kind: input, shape index: {}, may-alias: {3,5,7,9,11}]   ;;  %s2475_s12 = inlined_call_operand.vmem [shape: bf16[2,8,32], index: 12, kind: output, shape index: {}]  }
   0x1   :  { %s2192_s23 = smov 0  }
   0x2 LB: > { %s34_s24 = sadd.s32 1, %s2107_s22  ;;  %p1887_p0 = scmp.ge.s32.totalorder %s2111_s23, 1  ;;  %s2111_s23 = sphi %s2192_s23, %s22_s23   ;;  %s2107_s22 = sphi %s2190_s22, %s2477_s22   ;;  %s2103_s21 = sphi %s2188_s21, %s2476_s21  }
   0x3   : > { %p36_p1 = scmp.ge.s32.totalorder %s34_s24, 2  ;;  %p389_p2 = scmp.lt.s32.totalorder %s2111_s23, 3 }
   0x5   : > { %s2479_s24 = smov (%p36_p1, %s34_s24), 0  ;;  %p390_p3 = pnand %p1887_p0, %p389_p2 }
   0x6   : > { %p439_p4 = scmp.lt.s32.totalorder (!%p390_p3), %s2103_s21, 1  ;;  %vm485_vm0 = vcmask (!%p390_p3), 261120   ;;  %v2063_v3 = vld [vmem:[%s2469_s6] sm:$0xff] (!%p390_p3)   ;;  %v2113_v4 = vmov (!%p390_p3), 0.0   ;;  %vm2114_vm1 = vmmov (!%p390_p3), 0   ;;  %v2064_v5 = vld [vmem:[%s2469_s6 + $0x8] sm:$0xff] (!%p390_p3)   ;;  %v469_v14 = vlaneseq (!%p390_p3) }
   0x7   : > { %393 = sbr.rel (%p390_p3) target bundleno = 1805 (0x70d), region = 68  ;;  %1949 = vmatprep.subr.bf16.mxu0 (!%p390_p3), %v2113_v4  ;;  %1953 = vmatprep.mubr.msk.bf16.mxu0 (!%p390_p3), %vm2114_vm1, %v2113_v4  ;;  %v2065_v12 = vld [vmem:[%s2467_s4] sm:$0xff] (!%p390_p3)   ;;  %v2066_v13 = vld [vmem:[%s2467_s4 + $0x8] sm:$0xff] (!%p390_p3)   ;;  %s2116_s29 = smov (!%p390_p3), 104   ;;  %v2118_v39 = vmov (!%p390_p3), 1983009808  }
   0x8   : > { %1950 = vmatpush3.bf16.msra.mxu0 (!%p390_p3), %v2063_v3  ;;  %1957 = vmatprep.subr.bf16.mxu1 (!%p390_p3), %v2113_v4  ;;  %v467_v15 = vld [vmem:[%s2470_s7] sm:$0x1] (!%p390_p3)  ;;  %v470_v16 = vshrl.u32 (!%p390_p3), %v469_v14, 7  ;;  %s2117_s30 = smov (!%p390_p3), 112   ;;  %v604_v40 = vunpack.c.l.s4 (!%p390_p3), %v2118_v39  ;;  %v2119_v42 = vmov (!%p390_p3), 1934713408  }
   0x9   : > { %1951 = vmatprep.subr.bf16.mxu0 (!%p390_p3), %v2113_v4  ;;  %1961 = vmatprep.mubr.msk.bf16.mxu1 (!%p390_p3), %vm2114_vm1, %v2113_v4  ;;  %v468_v17 = vunpack.c.l.bf16 (!%p390_p3), %v467_v15  ;;  %v902_v28 = vld [vmem:[%s2465_s2] sm:$0x1] (!%p390_p3)  ;;  %v636_v43 = vunpack.c.l.s4 (!%p390_p3), %v2119_v42  ;;  %vm741_vm2 = vcmask (!%p390_p3), 60416   ;;  %vm1157_vm3 = vcmask (!%p390_p3), 64512   ;;  %s2120_s15 = smov (!%p390_p3), 16   ;;  %s2121_s16 = smov (!%p390_p3), 8  }
   0xa   : > { %v2253_v18 = vsub.s32 (!%p390_p3), 0, %v470_v16  ;;  %v903_v29 = vld [vmem:[%s2466_s3] sm:$0x1] (!%p390_p3)  ;;  %v919_v30 = vunpack.c.l.bf16 (!%p390_p3), %v902_v28  ;;  %v605_v41 = vunpack.c.0.s8 (!%p390_p3), %v604_v40  ;;  %vm1397_vm4 = vcmask (!%p390_p3), 1043456  }
   0xb   : > { %v925_v31 = vunpack.c.l.bf16 (!%p390_p3), %v903_v29  ;;  %v637_v49 = vunpack.c.0.s8 (!%p390_p3), %v636_v43  ;;  %vm1728_vm5 = vcmask (!%p390_p3), 130048   ;;  %vm1730_vm6 = vcmask (!%p390_p3), 195584  }
   0xc   : > { %1952 = vmatpush3.bf16.msra.mxu0 (!%p390_p3), %v2064_v5  ;;  %v472_v19 = vrot.slane (!%p390_p3), %v468_v17, %v2253_v18  ;;  %v923_v32 = vrot.slane (!%p390_p3), %v919_v30, %v2253_v18  ;;  %v2270_v46 = vsub.s32 (!%p390_p3), %v605_v41, %v470_v16  ;;  %v2067_v30 = vld [vmem:[%s2471_s8] sm:$0xff] (!%p390_p3)   ;;  %vm1795_vm7 = vcmask (!%p390_p3), 257024  }
   0xd   : > { %1965 = vmatprep.subr.bf16.mxu0 (!%p390_p3), %v2113_v4  ;;  %v929_v35 = vrot.slane (!%p390_p3), %v925_v31, %v2253_v18  ;;  %v2274_v55 = vsub.s32 (!%p390_p3), %v637_v49, %v470_v16  ;;  %1958 = vmatpush3.bf16.msra.mxu1 (!%p390_p3), %v2067_v30  ;;  %v2068_v31 = vld [vmem:[%s2471_s8 + $0x8] sm:$0xff] (!%p390_p3)  }
   0xe   : > { %s2481_s21 = smov (!%p439_p4, %s2103_s21), 1  ;;  %1959 = vmatprep.subr.bf16.mxu1 %v2113_v4 }
   0xf   : > { %s2206_s25 = sshll.u32 %s2481_s21, 2 }
  0x10   : > { %s445_s28 = scalar_lea.vmem %s2463_s0, %s2206_s25  ;;  %s449_s17 = scalar_lea.vmem %s2464_s1, %s2206_s25 }
  0x11   : > { %v900_v0 = vld [vmem:[%s445_s28] sm:$0xf]  ;;  %s2115_s28 = smov 120   ;;  %1960 = vmatpush3.bf16.msra.mxu1 %v2068_v31  ;;  %s456_s26 = scalar_lea.vmem %s2475_s12, %s2206_s25 }
  0x12   : > { %v2212_v1 = vunpack.c.l.bf16 %v900_v0  ;;  %v2233_v6 = vld [vmem:[%s449_s17] sm:$0xf]  ;;  %1973 = vmatprep.subr.bf16.mxu1 %v2113_v4  ;;  %s2122_s17 = smov 24  }
  0x13   : > { %1954 = vmatmul.mubr.msk.bf16.vlgmr.msra.gmra.mrb[0].mxu0 %vm485_vm0, %v2233_v6 }
  0x14   : > { %v905_v2 = vsel %vm485_vm0, %v2212_v1, 0.0  ;;  %1969 = vmatprep.mubr.msk.bf16.mxu0 %vm2114_vm1, %v2113_v4  ;;  %1966 = vmatpush3.bf16.msra.mxu0 %v2065_v12 }
  0x15   : > { %906 = vadd.xlane.f32.xlu0 %v905_v2  ;;  %1967 = vmatprep.subr.bf16.mxu0 %v2113_v4 }
  0x16   : > { %1962 = vmatmul.mubr.msk.bf16.vlgmr.msra.gmra.mrb[0].mxu1 %vm485_vm0, %v2233_v6 }
  0x17   : > { %1975 = vmatprep.mubr.msk.bf16.mxu1 %vm2114_vm1, %v2113_v4 }
  0x18   : > { %1968 = vmatpush3.bf16.msra.mxu0 %v2066_v13 }
  0x19   : > { %1979 = vmatprep.subr.bf16.mxu0 %v2113_v4 }
  0xa2   : > { %v907_v7 = vpop.xlane.xlu0 %906 }
  0xa3   : > { %v909_v8 = vmul.f32 0.03125, %v907_v7 }
  0xa5   : > { %v910_v9 = vsub.f32 %v2212_v1, %v909_v8 }
  0xa7   : > { %v911_v10 = vmul.f32 %v910_v9, %v910_v9 }
  0xa9   : > { %v912_v11 = vsel %vm485_vm0, %v911_v10, 0.0 }
  0xaa   : > { %913 = vadd.xlane.f32.xlu0 %v912_v11 }
  0xe6   : > { %v523_v20 = vpop.f32.mrb[0].mxu0 }
  0xe7   : > { %v524_v21 = vadd.f32 %v523_v20, %v472_v19  ;;  %v1955_v22 = vpop.f32.mrb[1].mxu0 }
  0xe8   : > { %v526_v23 = vpop.f32.mrb[2].mxu0 }
  0xe9   : > { %592 = vrot.lane.b32.xlu1 %v524_v21, %s2115_s28  ;;  %598 = vrot.lane.b32.xlu0 %v524_v21, %s2116_s29  ;;  %v1956_v24 = vpop.f32.mrb[3].mxu0 }
  0xed   : > { %595 = vrot.lane.b32.xlu1 %v524_v21, %s2117_s30 }
 0x137   : > { %v914_v25 = vpop.xlane.xlu0 %913 }
 0x138   : > { %v915_v26 = vmul.f32 0.03125, %v914_v25 }
 0x13a   : > { %v916_v27 = vadd.f32 1e-05, %v915_v26 }
 0x13c   : > { %2071 = vrsqrt.f32 %v916_v27 }
 0x146   : > { %v2072_v33 = vpop.eup %2071 }
 0x147   : > { %v918_v34 = vmul.f32 %v2072_v33, %v910_v9 }
 0x149   : > { %v924_v36 = vmul.f32 %v923_v32, %v918_v34 }
 0x14b   : > { %v930_v37 = vadd.f32 %v929_v35, %v924_v36  ;;  %v935_v36 = vld [vmem:[%s2468_s5] sm:$0x1] }
 0x14d   : > { %v941_v38 = vpack.c.bf16 %v930_v37, %v930_v37  ;;  %v942_v37 = vunpack.c.l.bf16 %v935_v36 }
 0x14f   : > { %1970 = vmatmul.mubr.msk.bf16.vlgmr.msra.gmra.mrb[4].mxu0 %vm485_vm0, %v941_v38  ;;  %v946_v6 = vrot.slane %v942_v37, %v2253_v18 }
 0x150   : > { %1981 = vmatprep.mubr.msk.bf16.mxu0 %vm2114_vm1, %v2113_v4 }
 0x15b   : > { %v593_v44 = vpop.permute.xlu1 %592  ;;  %v599_v45 = vpop.permute.xlu0 %598 }
 0x15c   : > { %v617_v47 = vcombine.low %v593_v44, %v599_v45  ;;  %v618_v48 = vcombine.high %v593_v44, %v599_v45  ;;  %v2317_v44 = vpop.f32.mrb[0].mxu1 }
 0x15d   : > { %v1963_v45 = vpop.f32.mrb[1].mxu1 }
 0x15e   : > { %v625_v53 = vrot.slane %v617_v47, %v2270_v46  ;;  %v632_v54 = vrot.slane %v618_v48, %v2270_v46  ;;  %v588_v47 = vpop.f32.mrb[2].mxu1 }
 0x15f   : > { %v596_v50 = vpop.permute.xlu1 %595  ;;  %v1964_v48 = vpop.f32.mrb[3].mxu1 }
 0x160   : > { %v601_v51 = vcombine.low %v524_v21, %v596_v50  ;;  %v602_v52 = vcombine.high %v524_v21, %v596_v50 }
 0x162   : > { %v609_v56 = vrot.slane %v601_v51, %v2270_v46  ;;  %v616_v57 = vrot.slane %v602_v52, %v2270_v46 }
 0x164   : > { %v633_v58 = vcombine.low %v609_v56, %v625_v53  ;;  %v634_v59 = vcombine.high %v609_v56, %v625_v53  ;;  %v649_v60 = vcombine.low %v616_v57, %v632_v54  ;;  %v650_v61 = vcombine.high %v616_v57, %v632_v54 }
 0x166   : > { %v641_v62 = vrot.slane %v633_v58, %v2274_v55  ;;  %v648_v63 = vrot.slane %v634_v59, %v2274_v55  ;;  %v657_v0 = vrot.slane %v649_v60, %v2274_v55  ;;  %v664_v2 = vrot.slane %v650_v61, %v2274_v55 }
 0x168   : > { %v669_v3 = vcombine.low %v641_v62, %v648_v63  ;;  %v1897_v5 = vcombine.high %v641_v62, %v648_v63  ;;  %v685_v7 = vcombine.low %v657_v0, %v664_v2  ;;  %v1898_v8 = vcombine.high %v657_v0, %v664_v2 }
 0x16a   : > { %v676_v9 = vrot.slane %v669_v3, %v2270_v46  ;;  %v684_v10 = vrot.slane %v1897_v5, %v2270_v46  ;;  %v692_v11 = vrot.slane %v685_v7, %v2270_v46  ;;  %v700_v12 = vrot.slane %v1898_v8, %v2270_v46 }
 0x16c   : > { %v701_v13 = vcombine.low %v676_v9, %v684_v10  ;;  %v702_v14 = vcombine.high %v676_v9, %v684_v10  ;;  %v717_v15 = vcombine.low %v692_v11, %v700_v12  ;;  %v718_v16 = vcombine.high %v692_v11, %v700_v12 }
 0x16e   : > { %v709_v17 = vrot.slane %v701_v13, %v2274_v55  ;;  %v716_v19 = vrot.slane %v702_v14, %v2274_v55  ;;  %v725_v20 = vrot.slane %v717_v15, %v2274_v55  ;;  %v732_v21 = vrot.slane %v718_v16, %v2274_v55 }
 0x170   : > { %v733_v22 = vcombine.low %v709_v17, %v725_v20  ;;  %v734_v23 = vcombine.high %v709_v17, %v725_v20  ;;  %v735_v24 = vcombine.low %v716_v19, %v732_v21  ;;  %v736_v25 = vcombine.high %v716_v19, %v732_v21 }
 0x172   : > { %v737_v26 = vpack.c.bf16 %v733_v22, %v733_v22  ;;  %v738_v27 = vpack.c.bf16 %v734_v23, %v734_v23  ;;  %v739_v28 = vpack.c.bf16 %v735_v24, %v735_v24  ;;  %v740_v29 = vpack.c.bf16 %v736_v25, %v736_v25 }
 0x174   : > { %742 = vst.msk [vmem:[#allocation2] sm:$0xf] %vm741_vm2, %v737_v26  ;;  %743 = vst.msk [vmem:[#allocation2 + $0x4] sm:$0xf] %vm741_vm2, %v738_v27 }
 0x175   : > { %744 = vst.msk [vmem:[#allocation2 + $0x8] sm:$0xf] %vm741_vm2, %v739_v28  ;;  %745 = vst.msk [vmem:[#allocation2 + $0xc] sm:$0xf] %vm741_vm2, %v740_v29 }
 0x17b   : > { %v1154_v32 = vld [vmem:[#allocation2 + $0x4] sm:$0xf]  ;;  %v1153_v33 = vld [vmem:[#allocation2] sm:$0xf] }
 0x17c   : > { %v1208_v34 = vsel %vm1157_vm3, %v1154_v32, 0  ;;  %v1162_v35 = vsel %vm1157_vm3, %v1153_v33, 0  ;;  %v1155_v25 = vld [vmem:[#allocation2 + $0x8] sm:$0xf]  ;;  %v1156_v26 = vld [vmem:[#allocation2 + $0xc] sm:$0xf] }
 0x17d   : > { %1980 = vmatpush3.bf16.xpose.msra.mxu0 %v1208_v34  ;;  %1974 = vmatpush3.bf16.xpose.msra.mxu1 %v1162_v35  ;;  %v1254_v31 = vsel %vm1157_vm3, %v1155_v25, 0  ;;  %v1300_v32 = vsel %vm1157_vm3, %v1156_v26, 0 }
 0x17e   : > { %1991 = vmatprep.subr.bf16.mxu0 %v2113_v4  ;;  %1985 = vmatprep.subr.bf16.mxu1 %v2113_v4 }
 0x222   : > { %v996_v38 = vpop.f32.mrb[4].mxu0 }
 0x223   : > { %v997_v39 = vadd.f32 %v996_v38, %v946_v6  ;;  %v1971_v40 = vpop.f32.mrb[5].mxu0 }
 0x224   : > { %v999_v41 = vpop.f32.mrb[6].mxu0 }
 0x225   : > { %v1002_v42 = vmul.f32 0.35355338, %v997_v39  ;;  %v1972_v43 = vpop.f32.mrb[7].mxu0 }
 0x227   : > { %1004 = vrot.lane.b32.xlu1 %v1002_v42, %s2115_s28 }
 0x22b   : > { %1007 = vrot.lane.b32.xlu1 %v1002_v42, %s2117_s30 }
 0x22f   : > { %1010 = vrot.lane.b32.xlu1 %v1002_v42, %s2116_s29 }
 0x299   : > { %v1005_v49 = vpop.permute.xlu1 %1004 }
 0x29d   : > { %v1008_v50 = vpop.permute.xlu1 %1007 }
 0x29e   : > { %v1013_v51 = vcombine.low %v1002_v42, %v1008_v50  ;;  %v1014_v52 = vcombine.high %v1002_v42, %v1008_v50 }
 0x2a0   : > { %v1021_v57 = vrot.slane %v1013_v51, %v2270_v46  ;;  %v1028_v58 = vrot.slane %v1014_v52, %v2270_v46 }
 0x2a1   : > { %v1011_v53 = vpop.permute.xlu1 %1010 }
 0x2a2   : > { %v1029_v54 = vcombine.low %v1005_v49, %v1011_v53  ;;  %v1030_v56 = vcombine.high %v1005_v49, %v1011_v53 }
 0x2a4   : > { %v1037_v59 = vrot.slane %v1029_v54, %v2270_v46  ;;  %v1044_v60 = vrot.slane %v1030_v56, %v2270_v46  ;;  %v533_v56 = vld [vmem:[%s2472_s9] sm:$0x1] }
 0x2a6   : > { %v1045_v61 = vcombine.low %v1021_v57, %v1037_v59  ;;  %v1046_v62 = vcombine.high %v1021_v57, %v1037_v59  ;;  %v1061_v63 = vcombine.low %v1028_v58, %v1044_v60  ;;  %v1062_v0 = vcombine.high %v1028_v58, %v1044_v60 }
 0x2a7   : > { %v534_v60 = vunpack.c.l.bf16 %v533_v56 }
 0x2a8   : > { %v1053_v2 = vrot.slane %v1045_v61, %v2274_v55  ;;  %v1060_v3 = vrot.slane %v1046_v62, %v2274_v55  ;;  %v1069_v5 = vrot.slane %v1061_v63, %v2274_v55  ;;  %v1076_v7 = vrot.slane %v1062_v0, %v2274_v55 }
 0x2a9   : > { %v538_v61 = vrot.slane %v534_v60, %v2253_v18 }
 0x2aa   : > { %v1081_v8 = vcombine.low %v1053_v2, %v1060_v3  ;;  %v1904_v9 = vcombine.high %v1053_v2, %v1060_v3  ;;  %v1097_v10 = vcombine.low %v1069_v5, %v1076_v7  ;;  %v1905_v11 = vcombine.high %v1069_v5, %v1076_v7 }
 0x2ab   : > { %v586_v62 = vadd.f32 %v2317_v44, %v538_v61 }
 0x2ac   : > { %v1088_v12 = vrot.slane %v1081_v8, %v2270_v46  ;;  %v1096_v13 = vrot.slane %v1904_v9, %v2270_v46  ;;  %v1104_v14 = vrot.slane %v1097_v10, %v2270_v46  ;;  %v1112_v15 = vrot.slane %v1905_v11, %v2270_v46 }
 0x2ae   : > { %v1113_v16 = vcombine.low %v1088_v12, %v1096_v13  ;;  %v1129_v17 = vcombine.low %v1104_v14, %v1112_v15  ;;  %v1114_v19 = vcombine.high %v1088_v12, %v1096_v13  ;;  %v1130_v20 = vcombine.high %v1104_v14, %v1112_v15 }
 0x2b0   : > { %v1121_v21 = vrot.slane %v1113_v16, %v2274_v55  ;;  %v1137_v22 = vrot.slane %v1129_v17, %v2274_v55  ;;  %v1128_v29 = vrot.slane %v1114_v19, %v2274_v55  ;;  %v1144_v30 = vrot.slane %v1130_v20, %v2274_v55 }
 0x2b2   : > { %v1145_v23 = vcombine.low %v1121_v21, %v1137_v22  ;;  %v1146_v24 = vcombine.high %v1121_v21, %v1137_v22  ;;  %v1147_v33 = vcombine.low %v1128_v29, %v1144_v30  ;;  %v1148_v34 = vcombine.high %v1128_v29, %v1144_v30 }
 0x2b4   : > { %v1149_v27 = vpack.c.bf16 %v1145_v23, %v1145_v23  ;;  %v1150_v28 = vpack.c.bf16 %v1146_v24, %v1146_v24  ;;  %v1151_v35 = vpack.c.bf16 %v1147_v33, %v1147_v33  ;;  %v1152_v36 = vpack.c.bf16 %v1148_v34, %v1148_v34 }
 0x2b6   : > { %1976 = vmatmul.mubr.msk.bf16.vlgmr.msra.gmra.mrb[4].mxu1 %vm1157_vm3, %v1149_v27  ;;  %1982 = vmatmul.mubr.msk.bf16.vlgmr.msra.gmra.mrb[8].mxu0 %vm1157_vm3, %v1150_v28 }
 0x2b7   : > { %1986 = vmatpush3.bf16.xpose.msra.mxu1 %v1254_v31  ;;  %1992 = vmatpush3.bf16.xpose.msra.mxu0 %v1300_v32 }
 0x2b8   : > { %1987 = vmatprep.mubr.msk.bf16.mxu1 %vm2114_vm1, %v2113_v4  ;;  %1993 = vmatprep.mubr.msk.bf16.mxu0 %vm2114_vm1, %v2113_v4 }
 0x2b9   : > { %1997 = vmatprep.subr.bf16.mxu1 %v2113_v4  ;;  %2003 = vmatprep.subr.bf16.mxu0 %v2113_v4 }
 0x2be   : > { %1988 = vmatmul.mubr.msk.bf16.vlgmr.msra.gmra.mrb[8].mxu1 %vm1157_vm3, %v1151_v35  ;;  %1994 = vmatmul.mubr.msk.bf16.vlgmr.msra.gmra.mrb[12].mxu0 %vm1157_vm3, %v1152_v36 }
 0x2bf   : > { %1999 = vmatprep.mubr.msk.bf16.mxu1 %vm2114_vm1, %v2113_v4  ;;  %2005 = vmatprep.mubr.msk.bf16.mxu0 %vm2114_vm1, %v2113_v4 }
 0x389   : > { %v1198_v37 = vpop.f32.mrb[4].mxu1  ;;  %v1244_v6 = vpop.f32.mrb[8].mxu0 }
 0x38a   : > { %v1977_v38 = vpop.f32.mrb[5].mxu1  ;;  %v1983_v39 = vpop.f32.mrb[9].mxu0  ;;  %v1345_v40 = vsel %vm1157_vm3, %v1244_v6, -inf  ;;  %v1342_v41 = vsel %vm1157_vm3, %v1198_v37, -inf }
 0x38b   : > { %1346 = vmax.xlane.f32.xlu0 %v1345_v40  ;;  %v1247_v42 = vpop.f32.mrb[10].mxu0  ;;  %1343 = vmax.xlane.f32.xlu1 %v1342_v41  ;;  %v1201_v43 = vpop.f32.mrb[6].mxu1 }
 0x38c   : > { %v1978_v45 = vpop.f32.mrb[7].mxu1  ;;  %v1984_v47 = vpop.f32.mrb[11].mxu0 }
 0x391   : > { %v1290_v48 = vpop.f32.mrb[8].mxu1  ;;  %v1336_v49 = vpop.f32.mrb[12].mxu0 }
 0x392   : > { %v1989_v50 = vpop.f32.mrb[9].mxu1  ;;  %v1995_v51 = vpop.f32.mrb[13].mxu0  ;;  %v1348_v52 = vsel %vm1157_vm3, %v1290_v48, -inf  ;;  %v1351_v59 = vsel %vm1157_vm3, %v1336_v49, -inf }
 0x393   : > { %v1339_v53 = vpop.f32.mrb[14].mxu0  ;;  %1349 = vmax.xlane.f32.xlu1 %v1348_v52  ;;  %v1293_v54 = vpop.f32.mrb[10].mxu1 }
 0x394   : > { %v1990_v57 = vpop.f32.mrb[11].mxu1  ;;  %v1996_v58 = vpop.f32.mrb[15].mxu0 }
 0x397   : > { %1352 = vmax.xlane.f32.xlu1 %v1351_v59 }
 0x3a1   : > { %747 = vrot.lane.b32.xlu0 %v586_v62, %s2115_s28 }
 0x3a8   : > { %750 = vrot.lane.b32.xlu1 %v586_v62, %s2117_s30 }
 0x3ac   : > { %753 = vrot.lane.b32.xlu1 %v586_v62, %s2116_s29 }
 0x418   : > { %v1347_v63 = vpop.xlane.xlu0 %1346  ;;  %v1344_v0 = vpop.xlane.xlu1 %1343 }
 0x419   : > { %v1355_v2 = vsub.f32 %v1244_v6, %v1347_v63  ;;  %v1354_v3 = vsub.f32 %v1198_v37, %v1344_v0 }
 0x41b   : > { %v1360_v5 = vmul.f32 1.442695, %v1355_v2  ;;  %v1358_v7 = vmul.f32 1.442695, %v1354_v3 }
 0x41c   : > { %v748_v21 = vpop.permute.xlu0 %747 }
 0x41d   : > { %2073 = vpow2.f32 %v1360_v5 }
 0x41e   : > { %2075 = vpow2.f32 %v1358_v7 }
 0x420   : > { %v1350_v8 = vpop.xlane.xlu1 %1349 }
 0x421   : > { %v1356_v9 = vsub.f32 %v1290_v48, %v1350_v8 }
 0x423   : > { %v1362_v10 = vmul.f32 1.442695, %v1356_v9 }
 0x424   : > { %v1353_v11 = vpop.xlane.xlu1 %1352 }
 0x425   : > { %2077 = vpow2.f32 %v1362_v10  ;;  %v1357_v44 = vsub.f32 %v1336_v49, %v1353_v11 }
 0x427   : > { %v2363_v12 = vpop.eup %2073  ;;  %v1364_v13 = vmul.f32 1.442695, %v1357_v44 }
 0x428   : > { %v2365_v14 = vpop.eup %2075  ;;  %v751_v15 = vpop.permute.xlu1 %750  ;;  %v1369_v16 = vsel %vm1157_vm3, %v2363_v12, 0.0 }
 0x429   : > { %2079 = vpow2.f32 %v1364_v13  ;;  %v1366_v17 = vsel %vm1157_vm3, %v2365_v14, 0.0  ;;  %1370 = vadd.xlane.f32.xlu1 %v1369_v16  ;;  %v756_v19 = vcombine.low %v586_v62, %v751_v15  ;;  %v757_v20 = vcombine.high %v586_v62, %v751_v15 }
 0x42a   : > { %1367 = vadd.xlane.f32.xlu0 %v1366_v17 }
 0x42b   : > { %v764_v26 = vrot.slane %v756_v19, %v2270_v46  ;;  %v771_v27 = vrot.slane %v757_v20, %v2270_v46 }
 0x42c   : > { %v754_v22 = vpop.permute.xlu1 %753 }
 0x42d   : > { %v772_v23 = vcombine.low %v748_v21, %v754_v22  ;;  %v773_v24 = vcombine.high %v748_v21, %v754_v22 }
 0x42f   : > { %v2371_v25 = vpop.eup %2077  ;;  %v780_v28 = vrot.slane %v772_v23, %v2270_v46  ;;  %v787_v29 = vrot.slane %v773_v24, %v2270_v46 }
 0x430   : > { %v1372_v30 = vsel %vm1157_vm3, %v2371_v25, 0.0 }
 0x431   : > { %v788_v31 = vcombine.low %v764_v26, %v780_v28  ;;  %v789_v32 = vcombine.high %v764_v26, %v780_v28  ;;  %v804_v33 = vcombine.low %v771_v27, %v787_v29  ;;  %v805_v34 = vcombine.high %v771_v27, %v787_v29  ;;  %1373 = vadd.xlane.f32.xlu0 %v1372_v30 }
 0x433   : > { %v2379_v35 = vpop.eup %2079  ;;  %v796_v36 = vrot.slane %v788_v31, %v2274_v55  ;;  %v803_v37 = vrot.slane %v789_v32, %v2274_v55  ;;  %v812_v6 = vrot.slane %v804_v33, %v2274_v55  ;;  %v819_v38 = vrot.slane %v805_v34, %v2274_v55  ;;  %v2069_v31 = vld [vmem:[%s2473_s10] sm:$0xff]  }
 0x434   : > { %v1375_v39 = vsel %vm1157_vm3, %v2379_v35, 0.0 }
 0x435   : > { %v824_v40 = vcombine.low %v796_v36, %v803_v37  ;;  %v1899_v41 = vcombine.high %v796_v36, %v803_v37  ;;  %v840_v42 = vcombine.low %v812_v6, %v819_v38  ;;  %v1900_v43 = vcombine.high %v812_v6, %v819_v38  ;;  %1376 = vadd.xlane.f32.xlu0 %v1375_v39 }
 0x437   : > { %v831_v45 = vrot.slane %v824_v40, %v2270_v46  ;;  %v839_v47 = vrot.slane %v1899_v41, %v2270_v46  ;;  %v847_v48 = vrot.slane %v840_v42, %v2270_v46  ;;  %v855_v49 = vrot.slane %v1900_v43, %v2270_v46 }
 0x439   : > { %v856_v50 = vcombine.low %v831_v45, %v839_v47  ;;  %v857_v51 = vcombine.high %v831_v45, %v839_v47  ;;  %v872_v52 = vcombine.low %v847_v48, %v855_v49  ;;  %v873_v53 = vcombine.high %v847_v48, %v855_v49 }
 0x43b   : > { %v864_v54 = vrot.slane %v856_v50, %v2274_v55  ;;  %v871_v56 = vrot.slane %v857_v51, %v2274_v55  ;;  %v880_v57 = vrot.slane %v872_v52, %v2274_v55  ;;  %v887_v58 = vrot.slane %v873_v53, %v2274_v55 }
 0x43d   : > { %v888_v59 = vcombine.low %v864_v54, %v880_v57  ;;  %v889_v60 = vcombine.high %v864_v54, %v880_v57  ;;  %v890_v61 = vcombine.low %v871_v56, %v887_v58  ;;  %v891_v62 = vcombine.high %v871_v56, %v887_v58 }
 0x43f   : > { %v892_v63 = vpack.c.bf16 %v888_v59, %v888_v59  ;;  %v893_v0 = vpack.c.bf16 %v889_v60, %v889_v60  ;;  %v894_v2 = vpack.c.bf16 %v890_v61, %v890_v61  ;;  %v895_v3 = vpack.c.bf16 %v891_v62, %v891_v62  ;;  %v2070_v60 = vld [vmem:[%s2473_s10 + $0x8] sm:$0xff]  }
 0x441   : > { %896 = vst.msk [vmem:[#allocation3] sm:$0xf] %vm741_vm2, %v892_v63  ;;  %897 = vst.msk [vmem:[#allocation3 + $0x4] sm:$0xf] %vm741_vm2, %v893_v0 }
 0x442   : > { %898 = vst.msk [vmem:[#allocation3 + $0x8] sm:$0xf] %vm741_vm2, %v894_v2  ;;  %899 = vst.msk [vmem:[#allocation3 + $0xc] sm:$0xf] %vm741_vm2, %v895_v3 }
 0x448   : > { %v1390_v5 = vld [vmem:[#allocation3] sm:$0xf]  ;;  %v1391_v7 = vld [vmem:[#allocation3 + $0x4] sm:$0xf] }
 0x449   : > { %v1399_v8 = vsel %vm1397_vm4, %v1390_v5, 0  ;;  %v1445_v9 = vsel %vm1397_vm4, %v1391_v7, 0  ;;  %v1393_v20 = vld [vmem:[#allocation3 + $0xc] sm:$0xf]  ;;  %v1392_v22 = vld [vmem:[#allocation3 + $0x8] sm:$0xf] }
 0x44a   : > { %1998 = vmatpush3.bf16.msra.mxu1 %v1399_v8  ;;  %2004 = vmatpush3.bf16.msra.mxu0 %v1445_v9  ;;  %v1537_v24 = vsel %vm1397_vm4, %v1393_v20, 0  ;;  %v1491_v26 = vsel %vm1397_vm4, %v1392_v22, 0 }
 0x44b   : > { %2009 = vmatprep.subr.bf16.mxu1 %v2113_v4  ;;  %2015 = vmatprep.subr.bf16.mxu0 %v2113_v4 }
 0x4b6   : > { %v1371_v10 = vpop.xlane.xlu1 %1370 }
 0x4b7   : > { %v1368_v11 = vpop.xlane.xlu0 %1367  ;;  %2081 = vrcp.f32 %v1371_v10 }
 0x4b8   : > { %2083 = vrcp.f32 %v1368_v11 }
 0x4be   : > { %v1374_v44 = vpop.xlane.xlu0 %1373 }
 0x4bf   : > { %2085 = vrcp.f32 %v1374_v44 }
 0x4c1   : > { %v2082_v13 = vpop.eup %2081 }
 0x4c2   : > { %v2084_v15 = vpop.eup %2083  ;;  %v1383_v16 = vmul.f32 %v2082_v13, %v2363_v12  ;;  %v1377_v17 = vpop.xlane.xlu0 %1376 }
 0x4c3   : > { %v1382_v19 = vmul.f32 %v2084_v15, %v2365_v14  ;;  %2087 = vrcp.f32 %v1377_v17 }
 0x4c4   : > { %v1387_v21 = vpack.c.bf16 %v1383_v16, %v1383_v16 }
 0x4c5   : > { %v1386_v23 = vpack.c.bf16 %v1382_v19, %v1382_v19 }
 0x4c6   : > { %2006 = vmatmul.mubr.msk.bf16.vlgmr.msra.gmra.mrb[16].mxu0 %vm1157_vm3, %v1387_v21 }
 0x4c7   : > { %2000 = vmatmul.mubr.msk.bf16.vlgmr.msra.gmra.mrb[12].mxu1 %vm1157_vm3, %v1386_v23  ;;  %2016 = vmatpush3.bf16.msra.mxu0 %v1537_v24 }
 0x4c8   : > { %2010 = vmatpush3.bf16.msra.mxu1 %v1491_v26  ;;  %2011 = vmatprep.mubr.msk.bf16.mxu1 %vm2114_vm1, %v2113_v4 }
 0x4c9   : > { %v2086_v12 = vpop.eup %2085  ;;  %2017 = vmatprep.mubr.msk.bf16.mxu0 %vm2114_vm1, %v2113_v4  ;;  %2021 = vmatprep.subr.bf16.mxu1 %v2113_v4 }
 0x4ca   : > { %v1384_v14 = vmul.f32 %v2086_v12, %v2371_v25 }
 0x4cc   : > { %v1388_v27 = vpack.c.bf16 %v1384_v14, %v1384_v14 }
 0x4cd   : > { %v2088_v28 = vpop.eup %2087 }
 0x4ce   : > { %v1385_v29 = vmul.f32 %v2088_v28, %v2379_v35 }
 0x4cf   : > { %2012 = vmatmul.mubr.msk.bf16.vlgmr.msra.gmra.mrb[16].mxu1 %vm1157_vm3, %v1388_v27 }
 0x4d0   : > { %v1389_v30 = vpack.c.bf16 %v1385_v29, %v1385_v29  ;;  %2025 = vmatprep.mubr.msk.bf16.mxu1 %vm2114_vm1, %v2113_v4  ;;  %2022 = vmatpush3.bf16.msra.mxu1 %v2069_v31 }
 0x4d1   : > { %2023 = vmatprep.subr.bf16.mxu1 %v2113_v4 }
 0x4d2   : > { %2018 = vmatmul.mubr.msk.bf16.vlgmr.msra.gmra.mrb[20].mxu0 %vm1157_vm3, %v1389_v30  ;;  %v940_v30 = vld [vmem:[%s2474_s11] sm:$0x1] }
 0x4d3   : > { %v1733_v31 = vunpack.c.l.bf16 %v940_v30 }
 0x4d4   : > { %2024 = vmatpush3.bf16.msra.mxu1 %v2070_v60 }
 0x599   : > { %v1481_v25 = vpop.f32.mrb[16].mxu0 }
 0x59a   : > { %v1435_v32 = vpop.f32.mrb[12].mxu1  ;;  %v2007_v33 = vpop.f32.mrb[17].mxu0 }
 0x59b   : > { %v2001_v34 = vpop.f32.mrb[13].mxu1  ;;  %v1484_v35 = vpop.f32.mrb[18].mxu0 }
 0x59c   : > { %v1438_v36 = vpop.f32.mrb[14].mxu1  ;;  %v2008_v37 = vpop.f32.mrb[19].mxu0 }
 0x59d   : > { %v2002_v6 = vpop.f32.mrb[15].mxu1 }
 0x5a2   : > { %v1527_v38 = vpop.f32.mrb[16].mxu1 }
 0x5a3   : > { %v1579_v39 = vcombine.low %v1435_v32, %v1527_v38  ;;  %v1580_v40 = vcombine.high %v1435_v32, %v1527_v38  ;;  %v2013_v41 = vpop.f32.mrb[17].mxu1 }
 0x5a4   : > { %v1530_v42 = vpop.f32.mrb[18].mxu1 }
 0x5a5   : > { %v2014_v43 = vpop.f32.mrb[19].mxu1  ;;  %v1573_v45 = vpop.f32.mrb[20].mxu0  ;;  %v1587_v4 = vrot.slane %v1579_v39, %v2270_v46  ;;  %v1594_v51 = vrot.slane %v1580_v40, %v2270_v46 }
 0x5a6   : > { %v1595_v47 = vcombine.low %v1481_v25, %v1573_v45  ;;  %v1596_v48 = vcombine.high %v1481_v25, %v1573_v45  ;;  %v2019_v49 = vpop.f32.mrb[21].mxu0  ;;  %v1737_v25 = vrot.slane %v1733_v31, %v2253_v18 }
 0x5a7   : > { %v1576_v50 = vpop.f32.mrb[22].mxu0 }
 0x5a8   : > { %v1603_v52 = vrot.slane %v1595_v47, %v2270_v46  ;;  %v1610_v53 = vrot.slane %v1596_v48, %v2270_v46  ;;  %v2020_v54 = vpop.f32.mrb[23].mxu0 }
 0x5aa   : > { %v1611_v56 = vcombine.low %v1587_v4, %v1603_v52  ;;  %v1612_v57 = vcombine.high %v1587_v4, %v1603_v52  ;;  %v1627_v58 = vcombine.low %v1594_v51, %v1610_v53  ;;  %v1628_v59 = vcombine.high %v1594_v51, %v1610_v53 }
 0x5ac   : > { %v1619_v61 = vrot.slane %v1611_v56, %v2274_v55  ;;  %v1626_v62 = vrot.slane %v1612_v57, %v2274_v55  ;;  %v1635_v63 = vrot.slane %v1627_v58, %v2274_v55  ;;  %v1642_v0 = vrot.slane %v1628_v59, %v2274_v55 }
 0x5ae   : > { %v1647_v2 = vcombine.low %v1619_v61, %v1626_v62  ;;  %v1914_v3 = vcombine.high %v1619_v61, %v1626_v62  ;;  %v1663_v5 = vcombine.low %v1635_v63, %v1642_v0  ;;  %v1915_v7 = vcombine.high %v1635_v63, %v1642_v0 }
 0x5b0   : > { %v1654_v8 = vrot.slane %v1647_v2, %v2270_v46  ;;  %v1662_v9 = vrot.slane %v1914_v3, %v2270_v46  ;;  %v1670_v10 = vrot.slane %v1663_v5, %v2270_v46  ;;  %v1678_v11 = vrot.slane %v1915_v7, %v2270_v46 }
 0x5b2   : > { %v1680_v44 = vcombine.high %v1654_v8, %v1662_v9  ;;  %v1696_v13 = vcombine.high %v1670_v10, %v1678_v11  ;;  %v1679_v15 = vcombine.low %v1654_v8, %v1662_v9  ;;  %v1695_v16 = vcombine.low %v1670_v10, %v1678_v11 }
 0x5b4   : > { %v1694_v17 = vrot.slane %v1680_v44, %v2274_v55  ;;  %v1710_v19 = vrot.slane %v1696_v13, %v2274_v55  ;;  %v1687_v20 = vrot.slane %v1679_v15, %v2274_v55  ;;  %v1703_v21 = vrot.slane %v1695_v16, %v2274_v55 }
 0x5b6   : > { %v1713_v22 = vcombine.low %v1694_v17, %v1710_v19  ;;  %v1712_v23 = vcombine.high %v1687_v20, %v1703_v21  ;;  %v1714_v24 = vcombine.high %v1694_v17, %v1710_v19  ;;  %v1711_v26 = vcombine.low %v1687_v20, %v1703_v21 }
 0x5b8   : > { %1720 = vrot.lane.b32.xlu0 %v1713_v22, %s2120_s15  ;;  %1716 = vrot.lane.b32.xlu1 %v1712_v23, %s2121_s16 }
 0x5bc   : > { %1724 = vrot.lane.b32.xlu1 %v1714_v24, %s2122_s17 }
 0x62a   : > { %v1717_v46 = vpop.permute.xlu1 %1716  ;;  %v1721_v12 = vpop.permute.xlu0 %1720 }
 0x62b   : > { %v1727_v14 = vsel %vm1157_vm3, %v1711_v26, %v1717_v46 }
 0x62c   : > { %v1729_v28 = vsel %vm1728_vm5, %v1727_v14, %v1721_v12 }
 0x62e   : > { %v1725_v27 = vpop.permute.xlu1 %1724 }
 0x62f   : > { %v1731_v55 = vsel %vm1730_vm6, %v1729_v28, %v1725_v27 }
 0x630   : > { %v1732_v29 = vpack.c.bf16 %v1731_v55, %v1731_v55 }
 0x632   : > { %2026 = vmatmul.mubr.msk.bf16.vlgmr.msra.gmra.mrb[20].mxu1 %vm485_vm0, %v1732_v29 }
 0x705   : > { %v1787_v32 = vpop.f32.mrb[20].mxu1 }
 0x706   : > { %v1788_v33 = vadd.f32 %v1787_v32, %v1737_v25  ;;  %v2027_v34 = vpop.f32.mrb[21].mxu1 }
 0x707   : > { %v1790_v35 = vpop.f32.mrb[22].mxu1 }
 0x708   : > { %v1793_v36 = vadd.f32 %v1788_v33, %v2212_v1  ;;  %v2028_v37 = vpop.f32.mrb[23].mxu1 }
 0x70a   : > { %v1794_v6 = vpack.c.bf16 %v1793_v36, %v1793_v36 }
 0x70c   : > { %1796 = vst.msk [vmem:[%s456_s26] sm:$0xf] %vm1795_vm7, %v1794_v6 }
 0x70d PF: > { %s22_s23 = sadd.s32 1, %s2111_s23   ;;  %s2476_s21 = smov %s2107_s22 }
 0x70e   : > { %p19_p5 = scmp.ge.s32.totalorder %s22_s23, 4   ;;  %s2477_s22 = smov %s2479_s24 }
 0x710   :  { %21 = sbr.rel (!%p19_p5) target bundleno = 2 (0x2), region = 105 }

// kernel: _lambda_.15
= control target key start
LH: loop header
LB: loop body
LE: loop exit
PB: predicated region body
PF: predicated region fallthrough
CT: control target
= control target key end

     0   :  { %vm27_vm0 = vcmask 261120   ;;  %v168_v16 = vmov 0.0   ;;  %vm169_vm1 = vmmov 0   ;;  %v56_v22 = vlaneseq  ;;  %s229_s0 = inlined_call_operand.vmem [shape: bf16[16,32], index: 0, kind: input, shape index: {}]   ;;  %s230_s3 = inlined_call_operand.vmem [shape: bf16[32,128], index: 3, kind: input, shape index: {}]   ;;  %s231_s1 = inlined_call_operand.vmem [shape: bf16[1,32], index: 1, kind: input, shape index: {}]   ;;  %s232_s2 = inlined_call_operand.vmem [shape: bf16[1,32], index: 2, kind: input, shape index: {}]   ;;  %s233_s4 = inlined_call_operand.vmem [shape: bf16[1,128], index: 4, kind: input, shape index: {}]   ;;  %s234_s5 = inlined_call_operand.vmem [shape: f32[16,128], index: 5, kind: output, shape index: {}]  }
   0x1   :  { %v146_v0 = vld [vmem:[%s229_s0] sm:$0xff]   ;;  %152 = vmatprep.subr.bf16.mxu0 %v168_v16  ;;  %v163_v17 = vld [vmem:[%s230_s3 + $0x8] sm:$0xff]   ;;  %156 = vmatprep.mubr.msk.bf16.mxu0 %vm169_vm1, %v168_v16 }
   0x2   :  { %v147_v1 = vunpack.c.l.bf16 %v146_v0  ;;  %v148_v2 = vunpack.c.h.bf16 %v146_v0  ;;  %v162_v15 = vld [vmem:[%s230_s3] sm:$0xff]   ;;  %v57_v25 = vshrl.u32 %v56_v22, 7 }
   0x3   :  { %153 = vmatpush3.bf16.msra.mxu0 %v162_v15  ;;  %v25_v26 = vld [vmem:[%s231_s1] sm:$0x1] }
   0x4   :  { %v28_v3 = vsel %vm27_vm0, %v147_v1, 0.0  ;;  %v31_v4 = vsel %vm27_vm0, %v148_v2, 0.0  ;;  %154 = vmatprep.subr.bf16.mxu0 %v168_v16  ;;  %v55_v27 = vunpack.c.l.bf16 %v25_v26  ;;  %v58_v28 = vsub.s32 0, %v57_v25  ;;  %v26_v29 = vld [vmem:[%s232_s2] sm:$0x1] }
   0x5   :  { %29 = vadd.xlane.f32.xlu0 %v28_v3  ;;  %v62_v33 = vunpack.c.l.bf16 %v26_v29  ;;  %v74_v42 = vld [vmem:[%s233_s4] sm:$0x1] }
   0x6   :  { %v59_v32 = vrot.slane %v55_v27, %v58_v28  ;;  %v75_v43 = vunpack.c.l.bf16 %v74_v42 }
   0x7   :  { %155 = vmatpush3.bf16.msra.mxu0 %v163_v17  ;;  %v66_v37 = vrot.slane %v62_v33, %v58_v28 }
   0x8   :  { %v79_v44 = vrot.slane %v75_v43, %v58_v28 }
   0x9   :  { %32 = vadd.xlane.f32.xlu0 %v31_v4 }
  0x92   :  { %v30_v5 = vpop.xlane.xlu0 %29 }
  0x93   :  { %v35_v6 = vmul.f32 0.03125, %v30_v5 }
  0x95   :  { %v37_v7 = vsub.f32 %v147_v1, %v35_v6 }
  0x96   :  { %v33_v8 = vpop.xlane.xlu0 %32 }
  0x97   :  { %v36_v9 = vmul.f32 0.03125, %v33_v8  ;;  %v39_v10 = vmul.f32 %v37_v7, %v37_v7 }
  0x99   :  { %v38_v11 = vsub.f32 %v148_v2, %v36_v9  ;;  %v41_v12 = vsel %vm27_vm0, %v39_v10, 0.0 }
  0x9a   :  { %42 = vadd.xlane.f32.xlu1 %v41_v12 }
  0x9b   :  { %v40_v13 = vmul.f32 %v38_v11, %v38_v11 }
  0x9d   :  { %v44_v14 = vsel %vm27_vm0, %v40_v13, 0.0 }
  0x9e   :  { %45 = vadd.xlane.f32.xlu1 %v44_v14 }
 0x127   :  { %v43_v18 = vpop.xlane.xlu1 %42 }
 0x128   :  { %v47_v19 = vmul.f32 0.03125, %v43_v18 }
 0x12a   :  { %v49_v20 = vadd.f32 1e-05, %v47_v19 }
 0x12b   :  { %v46_v21 = vpop.xlane.xlu1 %45 }
 0x12c   :  { %164 = vrsqrt.f32 %v49_v20  ;;  %v48_v23 = vmul.f32 0.03125, %v46_v21 }
 0x12e   :  { %v50_v24 = vadd.f32 1e-05, %v48_v23 }
 0x130   :  { %166 = vrsqrt.f32 %v50_v24 }
 0x136   :  { %v165_v30 = vpop.eup %164 }
 0x137   :  { %v53_v31 = vmul.f32 %v165_v30, %v37_v7 }
 0x139   :  { %v60_v36 = vmul.f32 %v59_v32, %v53_v31 }
 0x13a   :  { %v167_v34 = vpop.eup %166 }
 0x13b   :  { %v54_v35 = vmul.f32 %v167_v34, %v38_v11  ;;  %v67_v39 = vadd.f32 %v66_v37, %v60_v36 }
 0x13d   :  { %v61_v38 = vmul.f32 %v59_v32, %v54_v35 }
 0x13f   :  { %v68_v40 = vadd.f32 %v66_v37, %v61_v38 }
 0x141   :  { %v73_v41 = vpack.c.bf16 %v68_v40, %v67_v39 }
 0x143   :  { %157 = vmatmul.mubr.msk.bf16.vlgmr.msra.gmra.mrb[0].mxu0 %vm27_vm0, %v73_v41 }
 0x216   :  { %v129_v45 = vpop.f32.mrb[0].mxu0 }
 0x217   :  { %v130_v46 = vadd.f32 %v129_v45, %v79_v44  ;;  %v158_v47 = vpop.f32.mrb[1].mxu0 }
 0x218   :  { %v132_v48 = vpop.f32.mrb[2].mxu0 }
 0x219   :  { %136 = vst [vmem:[%s234_s5] sm:$0xff] %v130_v46  ;;  %v133_v49 = vadd.f32 %v132_v48, %v79_v44  ;;  %v159_v50 = vpop.f32.mrb[3].mxu0 }
 0x21b   :  { %137 = vst [vmem:[%s234_s5 + $0x8] sm:$0xff] %v133_v49 }

</bundles_post_ra>
